<compile_context>
chip_gen: v7x
topology: tpu7x:2x2x1
jax: 0.10.0
libtpu: 0.0.40
codegen_flags: <defaults>
</compile_context>

<pallas_src>
import functools
import jax
import jax.numpy as jnp
from jax.experimental import pallas as pl
from jax.experimental.pallas import tpu as pltpu


def _round_up(x, m):
    return ((x + m - 1) // m) * m


def _cdiv(a, b):
    return (a + b - 1) // b


# ----------------------------------------------------------------------------
# Pallas kernel 1: 3x3 / stride 1 / pad 1 / dil 1 conv in NHWC.
#   The 3 W-direction taps are packed once into a 3C-wide tensor (xj); the 3
#   H-direction taps are shifted row blocks accumulated over an "arbitrary"
#   grid axis.  No (M, 9C) patch matrix is ever materialized in HBM.
#   Optionally applies hardtanh (clip to [-1,1]) to output columns
#   >= hardtanh_from (fuses the offset-conv activation).
# ----------------------------------------------------------------------------
def conv3x3_same(x_nhwc, wmat, bias, *, hardtanh_from=None,
                 out_dtype=jnp.bfloat16, tn=None):
    """x: (N,H,W,C); wmat: (9C, Nc) tap-major (ti,tj,c); bias: (Nc,).
    Returns (N, H, W, Ncp) with Ncp = Nc rounded up to the lane tile."""
    N, H, W, C = x_nhwc.shape
    K9, Nc = wmat.shape
    assert K9 == 9 * C
    if tn is None:
        tn = 256 if Nc >= 256 else 128     # 256 feeds full MXU width on v6e/v7x
    Ncp = _round_up(Nc, tn)
    nt = Ncp // tn

    x = x_nhwc.astype(jnp.bfloat16)
    # Pack the 3 W-taps once (3C channels, ordered (tj, c)) -- 3x write instead
    # of the 9x im2col write.
    xp = jnp.pad(x, ((0, 0), (1, 1), (1, 1), (0, 0)))
    xj = jnp.concatenate([xp[:, :, j:j + W, :] for j in range(3)], axis=-1)
    # xj: (N, H+2, W, 3C)
    # TODO(synk): full 9-tap implicit im2col (row reuse across output rows)
    # needs overlapping halo windows -> manual DMA double-buffering; the H-tap
    # axis here still re-reads each packed row 3x.

    w3 = wmat.reshape(3, 3 * C, Nc).astype(jnp.float32)     # rows (tj, c)
    b = bias.astype(jnp.float32).reshape(1, Nc)
    if Ncp != Nc:
        w3 = jnp.pad(w3, ((0, 0), (0, 0), (0, Ncp - Nc)))
        b = jnp.pad(b, ((0, 0), (0, Ncp - Nc)))
    w3 = w3.astype(jnp.bfloat16)

    apply_tanh = hardtanh_from is not None
    if apply_tanh:
        mask = (jnp.arange(Ncp) >= hardtanh_from).astype(jnp.float32)
    else:
        mask = jnp.zeros((Ncp,), jnp.float32)
    mask = mask.reshape(1, Ncp)

    def kernel(xj_ref, w_ref, b_ref, m_ref, o_ref, acc_ref):
        t = pl.program_id(3)                     # hoisted: never inside pl.when

        @pl.when(t == 0)
        def _():
            acc_ref[...] = jnp.zeros_like(acc_ref)

        acc_ref[...] += jnp.dot(xj_ref[0, 0], w_ref[0],
                                preferred_element_type=jnp.float32)

        @pl.when(t == 2)
        def _():
            r = acc_ref[...] + b_ref[...]
            if apply_tanh:
                r = jnp.where(m_ref[...] > 0.0, jnp.clip(r, -1.0, 1.0), r)
            o_ref[0, 0] = r.astype(o_ref.dtype)

    return pl.pallas_call(
        kernel,
        out_shape=jax.ShapeDtypeStruct((N, H, W, Ncp), out_dtype),
        grid=(N, H, nt, 3),
        in_specs=[
            pl.BlockSpec((1, 1, W, 3 * C), lambda n, h, j, t: (n, h + t, 0, 0)),
            pl.BlockSpec((1, 3 * C, tn), lambda n, h, j, t: (t, 0, j)),
            pl.BlockSpec((1, tn), lambda n, h, j, t: (0, j)),
            pl.BlockSpec((1, tn), lambda n, h, j, t: (0, j)),
        ],
        out_specs=pl.BlockSpec((1, 1, W, tn), lambda n, h, j, t: (n, h, 0, j)),
        scratch_shapes=[pltpu.VMEM((W, tn), jnp.float32)],
        compiler_params=pltpu.CompilerParams(
            dimension_semantics=("parallel", "parallel", "parallel", "arbitrary"),
            vmem_limit_bytes=32 * 1024 * 1024,
        ),
    )(xj, w3, b, mask)


# ----------------------------------------------------------------------------
# Pallas kernel 2: batched  out[b] = a[b] @ w[b] + bias[b]  (bf16 in, f32 acc)
#   Leading branch axis merges the two deformable-branch matmuls into one call.
#   kt == 1 (common case): no scratch, direct store.
# ----------------------------------------------------------------------------
def matmul_bias_batched(a, w, b, *, out_dtype=jnp.bfloat16, tm=1024):
    B, M, K = a.shape
    _, Kw, Nc = w.shape
    assert Kw == K
    tn = 256 if Nc >= 256 else 128
    Ncp = _round_up(Nc, tn)

    a = a.astype(jnp.bfloat16)
    w = w.astype(jnp.float32)
    bias = b.astype(jnp.float32).reshape(B, 1, Nc)
    if Ncp != Nc:
        w = jnp.pad(w, ((0, 0), (0, 0), (0, Ncp - Nc)))
        bias = jnp.pad(bias, ((0, 0), (0, 0), (0, Ncp - Nc)))
    w = w.astype(jnp.bfloat16)

    # K tiling: whole-K resident when it fits; otherwise a 128-aligned tk that
    # (nearly) divides K -- no big pad copy of the A operand.
    if K <= 2048:
        kt, tk = 1, K
    else:
        kt = _cdiv(K, 2048)
        tk = _round_up(_cdiv(K, kt), 128)
        Kp = kt * tk
        if Kp != K:
            a = jnp.pad(a, ((0, 0), (0, 0), (0, Kp - K)))
            w = jnp.pad(w, ((0, Kp - K), (0, 0))) if w.ndim == 2 else \
                jnp.pad(w, ((0, 0), (0, Kp - K), (0, 0)))

    tm = min(tm, _round_up(M, 8))
    mt, nt = _cdiv(M, tm), Ncp // tn

    if kt == 1:
        def kernel(a_ref, w_ref, b_ref, o_ref):
            o_ref[0] = (jnp.dot(a_ref[0], w_ref[0],
                                preferred_element_type=jnp.float32)
                        + b_ref[0]).astype(o_ref.dtype)

        grid = (B, mt, nt)
        in_specs = [
            pl.BlockSpec((1, tm, tk), lambda bb, i, j: (bb, i, 0)),
            pl.BlockSpec((1, tk, tn), lambda bb, i, j: (bb, 0, j)),
            pl.BlockSpec((1, 1, tn), lambda bb, i, j: (bb, 0, j)),
        ]
        out_specs = pl.BlockSpec((1, tm, tn), lambda bb, i, j: (bb, i, j))
        scratch = []
        sem = ("parallel", "parallel", "parallel")
    else:
        def kernel(a_ref, w_ref, b_ref, o_ref, acc_ref):
            k = pl.program_id(3)                 # hoisted outside pl.when

            @pl.when(k == 0)
            def _():
                acc_ref[...] = jnp.zeros_like(acc_ref)

            acc_ref[...] += jnp.dot(a_ref[0], w_ref[0],
                                    preferred_element_type=jnp.float32)

            @pl.when(k == kt - 1)
            def _():
                o_ref[0] = (acc_ref[...] + b_ref[0]).astype(o_ref.dtype)

        grid = (B, mt, nt, kt)
        in_specs = [
            pl.BlockSpec((1, tm, tk), lambda bb, i, j, k: (bb, i, k)),
            pl.BlockSpec((1, tk, tn), lambda bb, i, j, k: (bb, k, j)),
            pl.BlockSpec((1, 1, tn), lambda bb, i, j, k: (bb, 0, j)),
        ]
        out_specs = pl.BlockSpec((1, tm, tn), lambda bb, i, j, k: (bb, i, j))
        scratch = [pltpu.VMEM((tm, tn), jnp.float32)]
        sem = ("parallel", "parallel", "parallel", "arbitrary")

    return pl.pallas_call(
        kernel,
        out_shape=jax.ShapeDtypeStruct((B, M, Ncp), out_dtype),
        grid=grid,
        in_specs=in_specs,
        out_specs=out_specs,
        scratch_shapes=scratch,
        compiler_params=pltpu.CompilerParams(
            dimension_semantics=sem,
            vmem_limit_bytes=32 * 1024 * 1024,
        ),
    )(a, w, bias)


# ----------------------------------------------------------------------------
# Pallas kernel 3a: per-channel sum / sum-of-squares reduction.
#   Leading size-2 "parallel" core axis -> per-core partial (2, C) sums so
#   v7x's second TensorCore also streams HBM; reduced outside.
# ----------------------------------------------------------------------------
def bn_stats(x2d, tm=2048):
    M, C = x2d.shape
    tm = min(tm, _round_up(M, 8))
    mt = _cdiv(M, tm)
    mtc = _cdiv(mt, 2)

    def kernel(x_ref, o_ref):
        c = pl.program_id(0)                     # hoisted
        i = pl.program_id(1)

        @pl.when(i == 0)
        def _():
            o_ref[...] = jnp.zeros_like(o_ref)

        x = x_ref[...].astype(jnp.float32)
        start = (i * 2 + c) * tm                 # intended global row of tile
        row = start + jax.lax.broadcasted_iota(jnp.int32, x.shape, 0)
        x = jnp.where(row < M, x, 0.0)           # masks tail + clamped dup tile
        o_ref[0, 0:1, :] += jnp.sum(x, axis=0, keepdims=True)
        o_ref[0, 1:2, :] += jnp.sum(x * x, axis=0, keepdims=True)

    part = pl.pallas_call(
        kernel,
        out_shape=jax.ShapeDtypeStruct((2, 2, C), jnp.float32),
        grid=(2, mtc),
        in_specs=[pl.BlockSpec(
            (tm, C), lambda c, i: (jnp.minimum(i * 2 + c, mt - 1), 0))],
        out_specs=pl.BlockSpec((1, 2, C), lambda c, i: (c, 0, 0)),
        compiler_params=pltpu.CompilerParams(
            dimension_semantics=("parallel", "arbitrary")),
    )(x2d)
    return part.sum(axis=0)                      # (2, C): sum, sumsq


# ----------------------------------------------------------------------------
# Pallas kernel 3b: y = relu(x * scale + shift)
# ----------------------------------------------------------------------------
def affine_relu(x2d, scale, shift, *, out_dtype=jnp.bfloat16, tm=2048):
    M, C = x2d.shape
    tm = min(tm, _round_up(M, 8))
    mt = _cdiv(M, tm)

    def kernel(x_ref, s_ref, t_ref, o_ref):
        x = x_ref[...].astype(jnp.float32)
        o_ref[...] = jnp.maximum(x * s_ref[...] + t_ref[...],
                                 0.0).astype(o_ref.dtype)

    return pl.pallas_call(
        kernel,
        out_shape=jax.ShapeDtypeStruct((M, C), out_dtype),
        grid=(mt,),
        in_specs=[pl.BlockSpec((tm, C), lambda i: (i, 0)),
                  pl.BlockSpec((1, C), lambda i: (0, 0)),
                  pl.BlockSpec((1, C), lambda i: (0, 0))],
        out_specs=pl.BlockSpec((tm, C), lambda i: (i, 0)),
        compiler_params=pltpu.CompilerParams(
            dimension_semantics=("parallel",)),
    )(x2d, scale, shift)


def bn_scale_shift(y2d, gamma, beta, eps=1e-5):
    """PyTorch-train-mode BatchNorm (batch stats, biased var) as scale/shift."""
    M, C = y2d.shape
    stats = bn_stats(y2d)
    mean = stats[0] / M
    var = stats[1] / M - mean * mean
    # TODO(synk): E[x^2]-E[x]^2 can cancel for large activation means; switch
    # to a shifted sum-of-squares if stats drift.
    var = jnp.maximum(var, 0.0)
    inv = jax.lax.rsqrt(var + eps)
    scale = gamma.astype(jnp.float32) * inv
    shift = beta.astype(jnp.float32) - mean * scale
    return scale.reshape(1, C), shift.reshape(1, C)


# ----------------------------------------------------------------------------
# Glue helpers (plain JAX): weight repacking, upsample, deformable sampling
# ----------------------------------------------------------------------------
def torch_conv_weight_to_mat(w):
    """(Cout, Cin, 3, 3) -> (9*Cin, Cout), tap-major (ti, tj, cin) rows."""
    Cout, Cin, kh, kw = w.shape
    return jnp.transpose(w, (2, 3, 1, 0)).reshape(kh * kw * Cin, Cout)


def upsample2x_bilinear_nhwc(x):
    """nn.Upsample(scale_factor=2, mode='bilinear', align_corners=True), NHWC.
    Static-index gather + lerp; returns bf16 (consumers cast anyway)."""
    # TODO(synk): static gather/lerp kept in plain JAX; no clean Mosaic
    # cross-sublane gather — XLA fuses this into one streaming pass.
    N, H, W, C = x.shape
    x = x.astype(jnp.float32)

    def idx_w(n_in, n_out):
        if n_in == 1:
            z = jnp.zeros((n_out,), jnp.int32)
            return z, z, jnp.zeros((n_out,), jnp.float32)
        src = jnp.arange(n_out, dtype=jnp.float32) * (n_in - 1) / (n_out - 1)
        lo = jnp.clip(jnp.floor(src), 0, n_in - 2).astype(jnp.int32)
        return lo, lo + 1, src - lo.astype(jnp.float32)

    y0, y1, wy = idx_w(H, 2 * H)
    x0, x1, wx = idx_w(W, 2 * W)
    rows = (jnp.take(x, y0, axis=1) * (1.0 - wy)[None, :, None, None]
            + jnp.take(x, y1, axis=1) * wy[None, :, None, None])
    out = (jnp.take(rows, x0, axis=2) * (1.0 - wx)[None, None, :, None]
           + jnp.take(rows, x1, axis=2) * wx[None, None, :, None])
    return out.astype(jnp.bfloat16)


def deform_sample_pair(x_nhwc, off_pair, dils):
    """Bilinear sampling of torchvision DeformConv2d for BOTH branches at once
    (offset_groups=1, stride 1, padding=dil, dilation=dil).
    x: (N,H,W,C) bf16; off_pair: (2,N,H,W,18) f32 (dy,dx interleaved per tap);
    returns (2, N*H*W, 9*C) bf16 sampled patches, tap-major ordering."""
    # TODO(synk): data-dependent gather kept in plain JAX (bf16 payload,
    # f32-accumulated corner sum); a Pallas dynamic-slice gather is future work.
    N, H, W, C = x_nhwc.shape
    k = jnp.arange(9)
    ki = (k // 3).astype(jnp.float32)
    kj = (k % 3).astype(jnp.float32)
    dil = jnp.asarray(dils, jnp.float32).reshape(2, 1, 1)
    base_y = jnp.arange(H, dtype=jnp.float32)[None, :, None] \
        + (ki[None, None, :] - 1.0) * dil                      # (2,H,9)
    base_x = jnp.arange(W, dtype=jnp.float32)[None, :, None] \
        + (kj[None, None, :] - 1.0) * dil                      # (2,W,9)

    dy = off_pair[..., 0::2].astype(jnp.float32)               # (2,N,H,W,9)
    dx = off_pair[..., 1::2].astype(jnp.float32)
    py = base_y[:, None, :, None, :] + dy
    px = base_x[:, None, None, :, :] + dx
    y0f = jnp.floor(py)
    x0f = jnp.floor(px)
    wy1 = py - y0f
    wx1 = px - x0f

    ys = jnp.stack([y0f, y0f, y0f + 1.0, y0f + 1.0], axis=-1)  # (2,N,H,W,9,4)
    xs = jnp.stack([x0f, x0f + 1.0, x0f, x0f + 1.0], axis=-1)
    wgt = jnp.stack([(1 - wy1) * (1 - wx1), (1 - wy1) * wx1,
                     wy1 * (1 - wx1), wy1 * wx1], axis=-1)
    valid = ((ys >= 0) & (ys <= H - 1) & (xs >= 0) & (xs <= W - 1))
    wgt = (wgt * valid.astype(jnp.float32)).astype(jnp.bfloat16)

    yc = jnp.clip(ys, 0, H - 1).astype(jnp.int32)
    xc = jnp.clip(xs, 0, W - 1).astype(jnp.int32)
    flat = (yc * W + xc).reshape(2, N, -1)                     # one gather/branch
    x_flat = x_nhwc.astype(jnp.bfloat16).reshape(N, H * W, C)

    def gather_one(idx2):
        return jax.vmap(lambda xf, idx: jnp.take(xf, idx, axis=0))(x_flat, idx2)

    gathered = jax.vmap(gather_one)(flat)                      # (2,N,L,C) bf16
    gathered = gathered.reshape(2, N, H, W, 9, 4, C)
    # bf16 payload x bf16 corner weights, f32 accumulation: no f32 (…,9,4,C).
    sampled = jnp.einsum('bnhwkrc,bnhwkr->bnhwkc', gathered, wgt,
                         preferred_element_type=jnp.float32)
    return sampled.reshape(2, N * H * W, 9 * C).astype(jnp.bfloat16)


# ----------------------------------------------------------------------------
# Up.forward
# ----------------------------------------------------------------------------
def up_forward(params, x1_nchw, x2_nchw, dilations):
    # NHWC internally (channels -> lanes); bf16 activations from the start.
    x1 = jnp.transpose(x1_nchw, (0, 2, 3, 1))
    x2 = jnp.transpose(x2_nchw, (0, 2, 3, 1)).astype(jnp.bfloat16)
    x1_up = upsample2x_bilinear_nhwc(x1)
    x = jnp.concatenate([x2, x1_up], axis=-1)                  # torch cat dim=1
    N, H, W, C = x.shape
    M = N * H * W
    c4, c8 = C // 4, C // 8

    # fused conv0 + offset1 + offset2 (share the dil=1 3x3 taps); hardtanh
    # applied only to the offset columns.  f32 output keeps offsets exact.
    w_fused = jnp.concatenate(
        [torch_conv_weight_to_mat(params["conv0_w"]),
         torch_conv_weight_to_mat(params["db1"]["off_w"]),
         torch_conv_weight_to_mat(params["db2"]["off_w"])], axis=1)
    b_fused = jnp.concatenate(
        [params["conv0_b"], params["db1"]["off_b"], params["db2"]["off_b"]])
    fused = conv3x3_same(x, w_fused, b_fused, hardtanh_from=c4,
                         out_dtype=jnp.float32)                # (N,H,W,Ncp)
    branch0 = fused.reshape(M, -1)[:, :c4].astype(jnp.bfloat16)
    off_pair = jnp.stack([fused[..., c4:c4 + 18],
                          fused[..., c4 + 18:c4 + 36]])        # (2,N,H,W,18) f32

    # both deformable branches: one sampling pass + one batched Pallas matmul
    samp = deform_sample_pair(x, off_pair, dilations)          # (2, M, 9C) bf16
    wdef = jnp.stack([torch_conv_weight_to_mat(params["db1"]["def_w"]),
                      torch_conv_weight_to_mat(params["db2"]["def_w"])])
    bdef = jnp.stack([params["db1"]["def_b"], params["db2"]["def_b"]])
    br = matmul_bias_batched(samp, wdef, bdef, out_dtype=jnp.bfloat16)

    # NOTE: c4/c8 are not 128-aligned, so this concat costs one extra M x (C/2)
    # relayout pass (accepted; writing into aligned column offsets is a TODO).
    y = jnp.concatenate([branch0, br[0, :, :c8], br[1, :, :c8]], axis=-1)

    # --- out: BN -> ReLU -> Conv3x3 -> BN -> ReLU (train-mode batch stats) ---
    # TODO(synk): fuse the BN sum/sumsq into the producing matmul epilogues
    # (resident (2, tn) stats output over an arbitrary M axis) to drop 2 passes.
    s1, t1 = bn_scale_shift(y, params["bn1_g"], params["bn1_b"])
    y = affine_relu(y, s1, t1, out_dtype=jnp.bfloat16).reshape(N, H, W, -1)

    out_ch = params["out_w"].shape[0]
    z = conv3x3_same(y, torch_conv_weight_to_mat(params["out_w"]),
                     params["out_b"], out_dtype=jnp.bfloat16)
    z2d = z.reshape(M, -1)[:, :out_ch]
    s2, t2 = bn_scale_shift(z2d, params["bn2_g"], params["bn2_b"])
    z2d = affine_relu(z2d, s2, t2, out_dtype=jnp.float32)
    z = z2d.reshape(N, H, W, out_ch)
    return jnp.transpose(z, (0, 3, 1, 2))                      # back to NCHW


def init_params(key, in_channels, out_channels):
    ks = jax.random.split(key, 12)
    f = lambda k, shape: (0.1 * jax.random.normal(k, shape)).astype(jnp.float32)
    c4, c8, c2 = in_channels // 4, in_channels // 8, in_channels // 2
    return {
        "conv0_w": f(ks[0], (c4, in_channels, 3, 3)),
        "conv0_b": f(ks[1], (c4,)),
        "db1": {
            "off_w": f(ks[2], (18, in_channels, 3, 3)),
            "off_b": f(ks[3], (18,)),
            "def_w": f(ks[4], (c8, in_channels, 3, 3)),
            "def_b": f(ks[5], (c8,)),
        },
        "db2": {
            "off_w": f(ks[6], (18, in_channels, 3, 3)),
            "off_b": f(ks[7], (18,)),
            "def_w": f(ks[8], (c8, in_channels, 3, 3)),
            "def_b": f(ks[9], (c8,)),
        },
        "bn1_g": jnp.ones((c2,), jnp.float32),
        "bn1_b": jnp.zeros((c2,), jnp.float32),
        "out_w": f(ks[10], (out_channels, c2, 3, 3)),
        "out_b": f(ks[11], (out_channels,)),
        "bn2_g": jnp.ones((out_channels,), jnp.float32),
        "bn2_b": jnp.zeros((out_channels,), jnp.float32),
    }


if __name__ == "__main__":
    key = jax.random.PRNGKey(0)
    k_p, k_x1, k_x2 = jax.random.split(key, 3)

    in_channels = 16      # channels after concat(x2, upsample(x1))
    out_channels = 8
    dilations = (1, 2)
    N = 2

    x1 = jax.random.normal(k_x1, (N, 8, 8, 8), jnp.float32)    # NCHW, -> 16x16
    x2 = jax.random.normal(k_x2, (N, 8, 16, 16), jnp.float32)  # NCHW skip

    params = init_params(k_p, in_channels, out_channels)

    fwd = jax.jit(functools.partial(up_forward, dilations=dilations))
    out = jax.block_until_ready(fwd(params, x1, x2))
    assert out.shape == (N, out_channels, 16, 16), out.shape
    assert bool(jnp.all(jnp.isfinite(out)))
    print("KERNEL_OK")
</pallas_src>

<mosaic_0001>
module attributes {stable_mosaic.version = 11 : i64} {
  func.func @kernel(%arg0: i32, %arg1: i32, %arg2: i32, %arg3: i32, %arg4: memref<1x1x16x48xbf16, #tpu.memory_space<vmem>>, %arg5: memref<1x48x128xbf16, #tpu.memory_space<vmem>>, %arg6: memref<1x128xf32, #tpu.memory_space<vmem>>, %arg7: memref<1x128xf32, #tpu.memory_space<vmem>>, %arg8: memref<1x1x16x128xf32, #tpu.memory_space<vmem>>, %arg9: memref<16x128xf32, #tpu.memory_space<vmem>>) attributes {dimension_semantics = [#tpu.dimension_semantics<parallel>, #tpu.dimension_semantics<parallel>, #tpu.dimension_semantics<parallel>, #tpu.dimension_semantics<arbitrary>], iteration_bounds = array<i64: 2, 16, 1, 3>, scalar_prefetch = 0 : i64, scratch_operands = 1 : i64, tpu.core_type = #tpu.core_type<tc>, window_params = [{transform_indices = @transform_0, window_bounds = array<i64: 1, 1, 16, 48>}, {transform_indices = @transform_1, window_bounds = array<i64: 1, 48, 128>}, {transform_indices = @transform_2, window_bounds = array<i64: 1, 128>}, {transform_indices = @transform_3, window_bounds = array<i64: 1, 128>}, {transform_indices = @transform_4, window_bounds = array<i64: 1, 1, 16, 128>}]} {
    %c0_i32 = arith.constant 0 : i32
    %0 = arith.cmpi eq, %arg3, %c0_i32 : i32
    %1 = arith.extui %0 : i1 to i32
    %c0_i32_0 = arith.constant 0 : i32
    %2 = arith.cmpi ne, %1, %c0_i32_0 : i32
    scf.if %2 {
      %cst_12 = arith.constant 0.000000e+00 : f32
      %14 = vector.broadcast %cst_12 : f32 to vector<16x128xf32>
      %c0_13 = arith.constant 0 : index
      %c0_14 = arith.constant 0 : index
      %15 = vector.load %arg9[%c0_13, %c0_14] : memref<16x128xf32, #tpu.memory_space<vmem>>, vector<16x128xf32>
      tpu.vector_store %arg9[%c0_13, %c0_14], %14 {strides = array<i32>} : memref<16x128xf32, #tpu.memory_space<vmem>>, vector<16x128xf32>,
    } else {
    }
    %c0 = arith.constant 0 : index
    %c0_1 = arith.constant 0 : index
    %3 = vector.load %arg9[%c0, %c0_1] : memref<16x128xf32, #tpu.memory_space<vmem>>, vector<16x128xf32>
    %c0_2 = arith.constant 0 : index
    %c0_3 = arith.constant 0 : index
    %c0_4 = arith.constant 0 : index
    %c0_5 = arith.constant 0 : index
    %4 = vector.load %arg4[%c0_2, %c0_3, %c0_4, %c0_5] : memref<1x1x16x48xbf16, #tpu.memory_space<vmem>>, vector<1x1x16x48xbf16>
    %5 = vector.shape_cast %4 : vector<1x1x16x48xbf16> to vector<16x48xbf16>
    %c0_6 = arith.constant 0 : index
    %c0_7 = arith.constant 0 : index
    %c0_8 = arith.constant 0 : index
    %6 = vector.load %arg5[%c0_6, %c0_7, %c0_8] : memref<1x48x128xbf16, #tpu.memory_space<vmem>>, vector<1x48x128xbf16>
    %7 = vector.shape_cast %6 : vector<1x48x128xbf16> to vector<48x128xbf16>
    %cst = arith.constant dense<0.000000e+00> : vector<16x128xf32>
    %8 = tpu.matmul %5, %7, %cst {dimension_numbers = #tpu.dot_dimension_numbers<[1], [0], [0], [1], [0, 0, 1, 1], [], []>} : vector<16x48xbf16>, vector<48x128xbf16>, vector<16x128xf32> -> vector<16x128xf32>
    %9 = arith.addf %3, %8 : vector<16x128xf32>
    %c0_9 = arith.constant 0 : index
    %c0_10 = arith.constant 0 : index
    %10 = vector.load %arg9[%c0_9, %c0_10] : memref<16x128xf32, #tpu.memory_space<vmem>>, vector<16x128xf32>
    tpu.vector_store %arg9[%c0_9, %c0_10], %9 {strides = array<i32>} : memref<16x128xf32, #tpu.memory_space<vmem>>, vector<16x128xf32>,
    %c2_i32 = arith.constant 2 : i32
    %11 = arith.cmpi eq, %arg3, %c2_i32 : i32
    %12 = arith.extui %11 : i1 to i32
    %c0_i32_11 = arith.constant 0 : i32
    %13 = arith.cmpi ne, %12, %c0_i32_11 : i32
    scf.if %13 {
      %c0_12 = arith.constant 0 : index
      %c0_13 = arith.constant 0 : index
      %14 = vector.load %arg9[%c0_12, %c0_13] : memref<16x128xf32, #tpu.memory_space<vmem>>, vector<16x128xf32>
      %c0_14 = arith.constant 0 : index
      %c0_15 = arith.constant 0 : index
      %15 = vector.load %arg6[%c0_14, %c0_15] : memref<1x128xf32, #tpu.memory_space<vmem>>, vector<1x128xf32>
      %16 = vector.broadcast %15 : vector<1x128xf32> to vector<16x128xf32>
      %17 = arith.addf %14, %16 : vector<16x128xf32>
      %c0_16 = arith.constant 0 : index
      %c0_17 = arith.constant 0 : index
      %18 = vector.load %arg7[%c0_16, %c0_17] : memref<1x128xf32, #tpu.memory_space<vmem>>, vector<1x128xf32>
      %cst_18 = arith.constant 0.000000e+00 : f32
      %19 = vector.broadcast %cst_18 : f32 to vector<1x128xf32>
      %20 = arith.cmpf ogt, %18, %19 : vector<1x128xf32>
      %cst_19 = arith.constant -1.000000e+00 : f32
      %cst_20 = arith.constant 1.000000e+00 : f32
      %21 = vector.broadcast %cst_19 : f32 to vector<16x128xf32>
      %22 = arith.maximumf %21, %17 : vector<16x128xf32>
      %23 = vector.broadcast %cst_20 : f32 to vector<16x128xf32>
      %24 = arith.minimumf %23, %22 : vector<16x128xf32>
      %25 = vector.shape_cast %20 : vector<1x128xi1> to vector<1x128xi1>
      %26 = vector.broadcast %25 : vector<1x128xi1> to vector<16x128xi1>
      %27 = arith.select %26, %24, %17 : vector<16x128xi1>, vector<16x128xf32>
      %c0_21 = arith.constant 0 : index
      %c0_22 = arith.constant 0 : index
      %c0_23 = arith.constant 0 : index
      %c0_24 = arith.constant 0 : index
      %28 = vector.load %arg8[%c0_21, %c0_22, %c0_23, %c0_24] : memref<1x1x16x128xf32, #tpu.memory_space<vmem>>, vector<1x1x16x128xf32>
      %29 = vector.shape_cast %28 : vector<1x1x16x128xf32> to vector<16x128xf32>
      %30 = vector.shape_cast %27 : vector<16x128xf32> to vector<1x1x16x128xf32>
      tpu.vector_store %arg8[%c0_21, %c0_22, %c0_23, %c0_24], %30 {strides = array<i32>} : memref<1x1x16x128xf32, #tpu.memory_space<vmem>>, vector<1x1x16x128xf32>,
    } else {
    }
    return
  }
  func.func @transform_0(%arg0: i32, %arg1: i32, %arg2: i32, %arg3: i32) -> (i32, i32, i32, i32) {
    %0 = arith.addi %arg1, %arg3 : i32
    %c0_i32 = arith.constant 0 : i32
    %c0_i32_0 = arith.constant 0 : i32
    %c0_i32_1 = arith.constant 0 : i32
    return %arg0, %0, %c0_i32, %c0_i32_0 : i32, i32, i32, i32
  }
  func.func @transform_1(%arg0: i32, %arg1: i32, %arg2: i32, %arg3: i32) -> (i32, i32, i32) {
    %c0_i32 = arith.constant 0 : i32
    %c0_i32_0 = arith.constant 0 : i32
    return %arg3, %c0_i32, %arg2 : i32, i32, i32
  }
  func.func @transform_2(%arg0: i32, %arg1: i32, %arg2: i32, %arg3: i32) -> (i32, i32) {
    %c0_i32 = arith.constant 0 : i32
    %c0_i32_0 = arith.constant 0 : i32
    return %c0_i32, %arg2 : i32, i32
  }
  func.func @transform_3(%arg0: i32, %arg1: i32, %arg2: i32, %arg3: i32) -> (i32, i32) {
    %c0_i32 = arith.constant 0 : i32
    %c0_i32_0 = arith.constant 0 : i32
    return %c0_i32, %arg2 : i32, i32
  }
  func.func @transform_4(%arg0: i32, %arg1: i32, %arg2: i32, %arg3: i32) -> (i32, i32, i32, i32) {
    %c0_i32 = arith.constant 0 : i32
    %c0_i32_0 = arith.constant 0 : i32
    return %arg0, %arg1, %c0_i32, %arg2 : i32, i32, i32, i32
  }
}

module attributes {stable_mosaic.version = 11 : i64} {
  func.func @kernel(%arg0: i32, %arg1: i32, %arg2: i32, %arg3: memref<1x512x144xbf16, #tpu.memory_space<vmem>>, %arg4: memref<1x144x128xbf16, #tpu.memory_space<vmem>>, %arg5: memref<1x1x128xf32, #tpu.memory_space<vmem>>, %arg6: memref<1x512x128xbf16, #tpu.memory_space<vmem>>) attributes {dimension_semantics = [#tpu.dimension_semantics<parallel>, #tpu.dimension_semantics<parallel>, #tpu.dimension_semantics<parallel>], iteration_bounds = array<i64: 2, 1, 1>, scalar_prefetch = 0 : i64, scratch_operands = 0 : i64, tpu.core_type = #tpu.core_type<tc>, window_params = [{transform_indices = @transform_0, window_bounds = array<i64: 1, 512, 144>}, {transform_indices = @transform_1, window_bounds = array<i64: 1, 144, 128>}, {transform_indices = @transform_2, window_bounds = array<i64: 1, 1, 128>}, {transform_indices = @transform_3, window_bounds = array<i64: 1, 512, 128>}]} {
    %c0 = arith.constant 0 : index
    %c0_0 = arith.constant 0 : index
    %c0_1 = arith.constant 0 : index
    %0 = vector.load %arg3[%c0, %c0_0, %c0_1] : memref<1x512x144xbf16, #tpu.memory_space<vmem>>, vector<1x512x144xbf16>
    %1 = vector.shape_cast %0 : vector<1x512x144xbf16> to vector<512x144xbf16>
    %c0_2 = arith.constant 0 : index
    %c0_3 = arith.constant 0 : index
    %c0_4 = arith.constant 0 : index
    %2 = vector.load %arg4[%c0_2, %c0_3, %c0_4] : memref<1x144x128xbf16, #tpu.memory_space<vmem>>, vector<1x144x128xbf16>
    %3 = vector.shape_cast %2 : vector<1x144x128xbf16> to vector<144x128xbf16>
    %cst = arith.constant dense<0.000000e+00> : vector<512x128xf32>
    %4 = tpu.matmul %1, %3, %cst {dimension_numbers = #tpu.dot_dimension_numbers<[1], [0], [0], [1], [0, 0, 1, 1], [], []>} : vector<512x144xbf16>, vector<144x128xbf16>, vector<512x128xf32> -> vector<512x128xf32>
    %c0_5 = arith.constant 0 : index
    %c0_6 = arith.constant 0 : index
    %c0_7 = arith.constant 0 : index
    %5 = vector.load %arg5[%c0_5, %c0_6, %c0_7] : memref<1x1x128xf32, #tpu.memory_space<vmem>>, vector<1x1x128xf32>
    %6 = vector.shape_cast %5 : vector<1x1x128xf32> to vector<1x128xf32>
    %7 = vector.broadcast %6 : vector<1x128xf32> to vector<512x128xf32>
    %8 = arith.addf %4, %7 : vector<512x128xf32>
    %9 = arith.truncf %8 : vector<512x128xf32> to vector<512x128xbf16>
    %c0_8 = arith.constant 0 : index
    %c0_9 = arith.constant 0 : index
    %c0_10 = arith.constant 0 : index
    %10 = vector.load %arg6[%c0_8, %c0_9, %c0_10] : memref<1x512x128xbf16, #tpu.memory_space<vmem>>, vector<1x512x128xbf16>
    %11 = vector.shape_cast %10 : vector<1x512x128xbf16> to vector<512x128xbf16>
    %12 = vector.shape_cast %9 : vector<512x128xbf16> to vector<1x512x128xbf16>
    tpu.vector_store %arg6[%c0_8, %c0_9, %c0_10], %12 {strides = array<i32>} : memref<1x512x128xbf16, #tpu.memory_space<vmem>>, vector<1x512x128xbf16>,
    return
  }
  func.func @transform_0(%arg0: i32, %arg1: i32, %arg2: i32) -> (i32, i32, i32) {
    %c0_i32 = arith.constant 0 : i32
    %c0_i32_0 = arith.constant 0 : i32
    return %arg0, %arg1, %c0_i32 : i32, i32, i32
  }
  func.func @transform_1(%arg0: i32, %arg1: i32, %arg2: i32) -> (i32, i32, i32) {
    %c0_i32 = arith.constant 0 : i32
    %c0_i32_0 = arith.constant 0 : i32
    return %arg0, %c0_i32, %arg2 : i32, i32, i32
  }
  func.func @transform_2(%arg0: i32, %arg1: i32, %arg2: i32) -> (i32, i32, i32) {
    %c0_i32 = arith.constant 0 : i32
    %c0_i32_0 = arith.constant 0 : i32
    return %arg0, %c0_i32, %arg2 : i32, i32, i32
  }
  func.func @transform_3(%arg0: i32, %arg1: i32, %arg2: i32) -> (i32, i32, i32) {
    %c0_i32 = arith.constant 0 : i32
    return %arg0, %arg1, %arg2 : i32, i32, i32
  }
}

module attributes {stable_mosaic.version = 11 : i64} {
  func.func @kernel(%arg0: i32, %arg1: i32, %arg2: memref<512x8xbf16, #tpu.memory_space<vmem>>, %arg3: memref<1x2x8xf32, #tpu.memory_space<vmem>>) attributes {dimension_semantics = [#tpu.dimension_semantics<parallel>, #tpu.dimension_semantics<arbitrary>], iteration_bounds = array<i64: 2, 1>, scalar_prefetch = 0 : i64, scratch_operands = 0 : i64, tpu.core_type = #tpu.core_type<tc>, window_params = [{transform_indices = @transform_0, window_bounds = array<i64: 512, 8>}, {transform_indices = @transform_1, window_bounds = array<i64: 1, 2, 8>}]} {
    %c0_i32 = arith.constant 0 : i32
    %0 = arith.cmpi eq, %arg1, %c0_i32 : i32
    %1 = arith.extui %0 : i1 to i32
    %c0_i32_0 = arith.constant 0 : i32
    %2 = arith.cmpi ne, %1, %c0_i32_0 : i32
    scf.if %2 {
      %cst_16 = arith.constant 0.000000e+00 : f32
      %32 = vector.broadcast %cst_16 : f32 to vector<1x2x8xf32>
      %c0_17 = arith.constant 0 : index
      %c0_18 = arith.constant 0 : index
      %c0_19 = arith.constant 0 : index
      %33 = vector.load %arg3[%c0_17, %c0_18, %c0_19] : memref<1x2x8xf32, #tpu.memory_space<vmem>>, vector<1x2x8xf32>
      tpu.vector_store %arg3[%c0_17, %c0_18, %c0_19], %32 {strides = array<i32>} : memref<1x2x8xf32, #tpu.memory_space<vmem>>, vector<1x2x8xf32>,
    } else {
    }
    %c0 = arith.constant 0 : index
    %c0_1 = arith.constant 0 : index
    %3 = vector.load %arg2[%c0, %c0_1] : memref<512x8xbf16, #tpu.memory_space<vmem>>, vector<512x8xbf16>
    %4 = arith.extf %3 : vector<512x8xbf16> to vector<512x8xf32>
    %c2_i32 = arith.constant 2 : i32
    %5 = arith.muli %arg1, %c2_i32 : i32
    %6 = arith.addi %5, %arg0 : i32
    %c512_i32 = arith.constant 512 : i32
    %7 = arith.muli %6, %c512_i32 : i32
    %8 = tpu.iota {dimensions = array<i32: 0>} : vector<512x8xi32>
    %9 = vector.broadcast %7 : i32 to vector<512x8xi32>
    %10 = arith.addi %9, %8 : vector<512x8xi32>
    %c512_i32_2 = arith.constant 512 : i32
    %11 = vector.broadcast %c512_i32_2 : i32 to vector<512x8xi32>
    %12 = arith.cmpi slt, %10, %11 : vector<512x8xi32>
    %cst = arith.constant 0.000000e+00 : f32
    %13 = vector.broadcast %cst : f32 to vector<512x8xf32>
    %14 = arith.select %12, %4, %13 : vector<512x8xi1>, vector<512x8xf32>
    %c0_3 = arith.constant 0 : index
    %c0_4 = arith.constant 0 : index
    %c0_5 = arith.constant 0 : index
    %15 = vector.load %arg3[%c0_3, %c0_4, %c0_5] : memref<1x2x8xf32, #tpu.memory_space<vmem>>, vector<1x1x8xf32>
    %16 = vector.shape_cast %15 : vector<1x1x8xf32> to vector<1x8xf32>
    %cst_6 = arith.constant dense<0.000000e+00> : vector<8xf32>
    %17 = vector.multi_reduction <add>, %14, %cst_6 [0] : vector<512x8xf32> to vector<8xf32>
    %18 = vector.shape_cast %17 : vector<8xf32> to vector<1x8xf32>
    %19 = arith.addf %16, %18 : vector<1x8xf32>
    %c0_7 = arith.constant 0 : index
    %c0_8 = arith.constant 0 : index
    %c0_9 = arith.constant 0 : index
    %20 = vector.load %arg3[%c0_7, %c0_8, %c0_9] : memref<1x2x8xf32, #tpu.memory_space<vmem>>, vector<1x1x8xf32>
    %21 = vector.shape_cast %20 : vector<1x1x8xf32> to vector<1x8xf32>
    %22 = vector.shape_cast %19 : vector<1x8xf32> to vector<1x1x8xf32>
    tpu.vector_store %arg3[%c0_7, %c0_8, %c0_9], %22 {strides = array<i32>} : memref<1x2x8xf32, #tpu.memory_space<vmem>>, vector<1x1x8xf32>,
    %c0_10 = arith.constant 0 : index
    %c1 = arith.constant 1 : index
    %c0_11 = arith.constant 0 : index
    %23 = vector.load %arg3[%c0_10, %c1, %c0_11] : memref<1x2x8xf32, #tpu.memory_space<vmem>>, vector<1x1x8xf32>
    %24 = vector.shape_cast %23 : vector<1x1x8xf32> to vector<1x8xf32>
    %25 = arith.mulf %14, %14 : vector<512x8xf32>
    %cst_12 = arith.constant dense<0.000000e+00> : vector<8xf32>
    %26 = vector.multi_reduction <add>, %25, %cst_12 [0] : vector<512x8xf32> to vector<8xf32>
    %27 = vector.shape_cast %26 : vector<8xf32> to vector<1x8xf32>
    %28 = arith.addf %24, %27 : vector<1x8xf32>
    %c0_13 = arith.constant 0 : index
    %c1_14 = arith.constant 1 : index
    %c0_15 = arith.constant 0 : index
    %29 = vector.load %arg3[%c0_13, %c1_14, %c0_15] : memref<1x2x8xf32, #tpu.memory_space<vmem>>, vector<1x1x8xf32>
    %30 = vector.shape_cast %29 : vector<1x1x8xf32> to vector<1x8xf32>
    %31 = vector.shape_cast %28 : vector<1x8xf32> to vector<1x1x8xf32>
    tpu.vector_store %arg3[%c0_13, %c1_14, %c0_15], %31 {strides = array<i32>} : memref<1x2x8xf32, #tpu.memory_space<vmem>>, vector<1x1x8xf32>,
    return
  }
  func.func @transform_0(%arg0: i32, %arg1: i32) -> (i32, i32) {
    %c2_i32 = arith.constant 2 : i32
    %0 = arith.muli %arg1, %c2_i32 : i32
    %1 = arith.addi %0, %arg0 : i32
    %c0_i32 = arith.constant 0 : i32
    %2 = arith.minsi %1, %c0_i32 : i32
    %c0_i32_0 = arith.constant 0 : i32
    %c0_i32_1 = arith.constant 0 : i32
    return %2, %c0_i32_0 : i32, i32
  }
  func.func @transform_1(%arg0: i32, %arg1: i32) -> (i32, i32, i32) {
    %c0_i32 = arith.constant 0 : i32
    %c0_i32_0 = arith.constant 0 : i32
    %c0_i32_1 = arith.constant 0 : i32
    return %arg0, %c0_i32, %c0_i32_0 : i32, i32, i32
  }
}

module attributes {stable_mosaic.version = 11 : i64} {
  func.func @kernel(%arg0: i32, %arg1: memref<512x8xbf16, #tpu.memory_space<vmem>>, %arg2: memref<1x8xf32, #tpu.memory_space<vmem>>, %arg3: memref<1x8xf32, #tpu.memory_space<vmem>>, %arg4: memref<512x8xbf16, #tpu.memory_space<vmem>>) attributes {dimension_semantics = [#tpu.dimension_semantics<parallel>], iteration_bounds = array<i64: 1>, scalar_prefetch = 0 : i64, scratch_operands = 0 : i64, tpu.core_type = #tpu.core_type<tc>, window_params = [{transform_indices = @transform_0, window_bounds = array<i64: 512, 8>}, {pipeline_mode = #tpu.pipeline_mode<synchronous>, transform_indices = @transform_1, window_bounds = array<i64: 1, 8>}, {pipeline_mode = #tpu.pipeline_mode<synchronous>, transform_indices = @transform_2, window_bounds = array<i64: 1, 8>}, {transform_indices = @transform_3, window_bounds = array<i64: 512, 8>}]} {
    %c0 = arith.constant 0 : index
    %c0_0 = arith.constant 0 : index
    %0 = vector.load %arg1[%c0, %c0_0] : memref<512x8xbf16, #tpu.memory_space<vmem>>, vector<512x8xbf16>
    %1 = arith.extf %0 : vector<512x8xbf16> to vector<512x8xf32>
    %c0_1 = arith.constant 0 : index
    %c0_2 = arith.constant 0 : index
    %2 = vector.load %arg2[%c0_1, %c0_2] : memref<1x8xf32, #tpu.memory_space<vmem>>, vector<1x8xf32>
    %3 = vector.broadcast %2 : vector<1x8xf32> to vector<512x8xf32>
    %4 = arith.mulf %1, %3 : vector<512x8xf32>
    %c0_3 = arith.constant 0 : index
    %c0_4 = arith.constant 0 : index
    %5 = vector.load %arg3[%c0_3, %c0_4] : memref<1x8xf32, #tpu.memory_space<vmem>>, vector<1x8xf32>
    %6 = vector.broadcast %5 : vector<1x8xf32> to vector<512x8xf32>
    %7 = arith.addf %4, %6 : vector<512x8xf32>
    %cst = arith.constant 0.000000e+00 : f32
    %8 = vector.broadcast %cst : f32 to vector<512x8xf32>
    %9 = arith.maximumf %7, %8 : vector<512x8xf32>
    %10 = arith.truncf %9 : vector<512x8xf32> to vector<512x8xbf16>
    %c0_5 = arith.constant 0 : index
    %c0_6 = arith.constant 0 : index
    %11 = vector.load %arg4[%c0_5, %c0_6] : memref<512x8xbf16, #tpu.memory_space<vmem>>, vector<512x8xbf16>
    tpu.vector_store %arg4[%c0_5, %c0_6], %10 {strides = array<i32>} : memref<512x8xbf16, #tpu.memory_space<vmem>>, vector<512x8xbf16>,
    return
  }
  func.func @transform_0(%arg0: i32) -> (i32, i32) {
    %c0_i32 = arith.constant 0 : i32
    %c0_i32_0 = arith.constant 0 : i32
    return %arg0, %c0_i32 : i32, i32
  }
  func.func @transform_1(%arg0: i32) -> (i32, i32) {
    %c0_i32 = arith.constant 0 : i32
    %c0_i32_0 = arith.constant 0 : i32
    %c0_i32_1 = arith.constant 0 : i32
    return %c0_i32, %c0_i32_0 : i32, i32
  }
  func.func @transform_2(%arg0: i32) -> (i32, i32) {
    %c0_i32 = arith.constant 0 : i32
    %c0_i32_0 = arith.constant 0 : i32
    %c0_i32_1 = arith.constant 0 : i32
    return %c0_i32, %c0_i32_0 : i32, i32
  }
  func.func @transform_3(%arg0: i32) -> (i32, i32) {
    %c0_i32 = arith.constant 0 : i32
    %c0_i32_0 = arith.constant 0 : i32
    return %arg0, %c0_i32 : i32, i32
  }
}

module attributes {stable_mosaic.version = 11 : i64} {
  func.func @kernel(%arg0: i32, %arg1: i32, %arg2: i32, %arg3: i32, %arg4: memref<1x1x16x24xbf16, #tpu.memory_space<vmem>>, %arg5: memref<1x24x128xbf16, #tpu.memory_space<vmem>>, %arg6: memref<1x128xf32, #tpu.memory_space<vmem>>, %arg7: memref<1x128xf32, #tpu.memory_space<vmem>>, %arg8: memref<1x1x16x128xbf16, #tpu.memory_space<vmem>>, %arg9: memref<16x128xf32, #tpu.memory_space<vmem>>) attributes {dimension_semantics = [#tpu.dimension_semantics<parallel>, #tpu.dimension_semantics<parallel>, #tpu.dimension_semantics<parallel>, #tpu.dimension_semantics<arbitrary>], iteration_bounds = array<i64: 2, 16, 1, 3>, scalar_prefetch = 0 : i64, scratch_operands = 1 : i64, tpu.core_type = #tpu.core_type<tc>, window_params = [{transform_indices = @transform_0, window_bounds = array<i64: 1, 1, 16, 24>}, {transform_indices = @transform_1, window_bounds = array<i64: 1, 24, 128>}, {transform_indices = @transform_2, window_bounds = array<i64: 1, 128>}, {transform_indices = @transform_3, window_bounds = array<i64: 1, 128>}, {transform_indices = @transform_4, window_bounds = array<i64: 1, 1, 16, 128>}]} {
    %c0_i32 = arith.constant 0 : i32
    %0 = arith.cmpi eq, %arg3, %c0_i32 : i32
    %1 = arith.extui %0 : i1 to i32
    %c0_i32_0 = arith.constant 0 : i32
    %2 = arith.cmpi ne, %1, %c0_i32_0 : i32
    scf.if %2 {
      %cst_12 = arith.constant 0.000000e+00 : f32
      %14 = vector.broadcast %cst_12 : f32 to vector<16x128xf32>
      %c0_13 = arith.constant 0 : index
      %c0_14 = arith.constant 0 : index
      %15 = vector.load %arg9[%c0_13, %c0_14] : memref<16x128xf32, #tpu.memory_space<vmem>>, vector<16x128xf32>
      tpu.vector_store %arg9[%c0_13, %c0_14], %14 {strides = array<i32>} : memref<16x128xf32, #tpu.memory_space<vmem>>, vector<16x128xf32>,
    } else {
    }
    %c0 = arith.constant 0 : index
    %c0_1 = arith.constant 0 : index
    %3 = vector.load %arg9[%c0, %c0_1] : memref<16x128xf32, #tpu.memory_space<vmem>>, vector<16x128xf32>
    %c0_2 = arith.constant 0 : index
    %c0_3 = arith.constant 0 : index
    %c0_4 = arith.constant 0 : index
    %c0_5 = arith.constant 0 : index
    %4 = vector.load %arg4[%c0_2, %c0_3, %c0_4, %c0_5] : memref<1x1x16x24xbf16, #tpu.memory_space<vmem>>, vector<1x1x16x24xbf16>
    %5 = vector.shape_cast %4 : vector<1x1x16x24xbf16> to vector<16x24xbf16>
    %c0_6 = arith.constant 0 : index
    %c0_7 = arith.constant 0 : index
    %c0_8 = arith.constant 0 : index
    %6 = vector.load %arg5[%c0_6, %c0_7, %c0_8] : memref<1x24x128xbf16, #tpu.memory_space<vmem>>, vector<1x24x128xbf16>
    %7 = vector.shape_cast %6 : vector<1x24x128xbf16> to vector<24x128xbf16>
    %cst = arith.constant dense<0.000000e+00> : vector<16x128xf32>
    %8 = tpu.matmul %5, %7, %cst {dimension_numbers = #tpu.dot_dimension_numbers<[1], [0], [0], [1], [0, 0, 1, 1], [], []>} : vector<16x24xbf16>, vector<24x128xbf16>, vector<16x128xf32> -> vector<16x128xf32>
    %9 = arith.addf %3, %8 : vector<16x128xf32>
    %c0_9 = arith.constant 0 : index
    %c0_10 = arith.constant 0 : index
    %10 = vector.load %arg9[%c0_9, %c0_10] : memref<16x128xf32, #tpu.memory_space<vmem>>, vector<16x128xf32>
    tpu.vector_store %arg9[%c0_9, %c0_10], %9 {strides = array<i32>} : memref<16x128xf32, #tpu.memory_space<vmem>>, vector<16x128xf32>,
    %c2_i32 = arith.constant 2 : i32
    %11 = arith.cmpi eq, %arg3, %c2_i32 : i32
    %12 = arith.extui %11 : i1 to i32
    %c0_i32_11 = arith.constant 0 : i32
    %13 = arith.cmpi ne, %12, %c0_i32_11 : i32
    scf.if %13 {
      %c0_12 = arith.constant 0 : index
      %c0_13 = arith.constant 0 : index
      %14 = vector.load %arg9[%c0_12, %c0_13] : memref<16x128xf32, #tpu.memory_space<vmem>>, vector<16x128xf32>
      %c0_14 = arith.constant 0 : index
      %c0_15 = arith.constant 0 : index
      %15 = vector.load %arg6[%c0_14, %c0_15] : memref<1x128xf32, #tpu.memory_space<vmem>>, vector<1x128xf32>
      %16 = vector.broadcast %15 : vector<1x128xf32> to vector<16x128xf32>
      %17 = arith.addf %14, %16 : vector<16x128xf32>
      %18 = arith.truncf %17 : vector<16x128xf32> to vector<16x128xbf16>
      %c0_16 = arith.constant 0 : index
      %c0_17 = arith.constant 0 : index
      %c0_18 = arith.constant 0 : index
      %c0_19 = arith.constant 0 : index
      %19 = vector.load %arg8[%c0_16, %c0_17, %c0_18, %c0_19] : memref<1x1x16x128xbf16, #tpu.memory_space<vmem>>, vector<1x1x16x128xbf16>
      %20 = vector.shape_cast %19 : vector<1x1x16x128xbf16> to vector<16x128xbf16>
      %21 = vector.shape_cast %18 : vector<16x128xbf16> to vector<1x1x16x128xbf16>
      tpu.vector_store %arg8[%c0_16, %c0_17, %c0_18, %c0_19], %21 {strides = array<i32>} : memref<1x1x16x128xbf16, #tpu.memory_space<vmem>>, vector<1x1x16x128xbf16>,
    } else {
    }
    return
  }
  func.func @transform_0(%arg0: i32, %arg1: i32, %arg2: i32, %arg3: i32) -> (i32, i32, i32, i32) {
    %0 = arith.addi %arg1, %arg3 : i32
    %c0_i32 = arith.constant 0 : i32
    %c0_i32_0 = arith.constant 0 : i32
    %c0_i32_1 = arith.constant 0 : i32
    return %arg0, %0, %c0_i32, %c0_i32_0 : i32, i32, i32, i32
  }
  func.func @transform_1(%arg0: i32, %arg1: i32, %arg2: i32, %arg3: i32) -> (i32, i32, i32) {
    %c0_i32 = arith.constant 0 : i32
    %c0_i32_0 = arith.constant 0 : i32
    return %arg3, %c0_i32, %arg2 : i32, i32, i32
  }
  func.func @transform_2(%arg0: i32, %arg1: i32, %arg2: i32, %arg3: i32) -> (i32, i32) {
    %c0_i32 = arith.constant 0 : i32
    %c0_i32_0 = arith.constant 0 : i32
    return %c0_i32, %arg2 : i32, i32
  }
  func.func @transform_3(%arg0: i32, %arg1: i32, %arg2: i32, %arg3: i32) -> (i32, i32) {
    %c0_i32 = arith.constant 0 : i32
    %c0_i32_0 = arith.constant 0 : i32
    return %c0_i32, %arg2 : i32, i32
  }
  func.func @transform_4(%arg0: i32, %arg1: i32, %arg2: i32, %arg3: i32) -> (i32, i32, i32, i32) {
    %c0_i32 = arith.constant 0 : i32
    %c0_i32_0 = arith.constant 0 : i32
    return %arg0, %arg1, %c0_i32, %arg2 : i32, i32, i32, i32
  }
}

module attributes {stable_mosaic.version = 11 : i64} {
  func.func @kernel(%arg0: i32, %arg1: memref<512x8xbf16, #tpu.memory_space<vmem>>, %arg2: memref<1x8xf32, #tpu.memory_space<vmem>>, %arg3: memref<1x8xf32, #tpu.memory_space<vmem>>, %arg4: memref<512x8xf32, #tpu.memory_space<vmem>>) attributes {dimension_semantics = [#tpu.dimension_semantics<parallel>], iteration_bounds = array<i64: 1>, scalar_prefetch = 0 : i64, scratch_operands = 0 : i64, tpu.core_type = #tpu.core_type<tc>, window_params = [{transform_indices = @transform_0, window_bounds = array<i64: 512, 8>}, {pipeline_mode = #tpu.pipeline_mode<synchronous>, transform_indices = @transform_1, window_bounds = array<i64: 1, 8>}, {pipeline_mode = #tpu.pipeline_mode<synchronous>, transform_indices = @transform_2, window_bounds = array<i64: 1, 8>}, {transform_indices = @transform_3, window_bounds = array<i64: 512, 8>}]} {
    %c0 = arith.constant 0 : index
    %c0_0 = arith.constant 0 : index
    %0 = vector.load %arg1[%c0, %c0_0] : memref<512x8xbf16, #tpu.memory_space<vmem>>, vector<512x8xbf16>
    %1 = arith.extf %0 : vector<512x8xbf16> to vector<512x8xf32>
    %c0_1 = arith.constant 0 : index
    %c0_2 = arith.constant 0 : index
    %2 = vector.load %arg2[%c0_1, %c0_2] : memref<1x8xf32, #tpu.memory_space<vmem>>, vector<1x8xf32>
    %3 = vector.broadcast %2 : vector<1x8xf32> to vector<512x8xf32>
    %4 = arith.mulf %1, %3 : vector<512x8xf32>
    %c0_3 = arith.constant 0 : index
    %c0_4 = arith.constant 0 : index
    %5 = vector.load %arg3[%c0_3, %c0_4] : memref<1x8xf32, #tpu.memory_space<vmem>>, vector<1x8xf32>
    %6 = vector.broadcast %5 : vector<1x8xf32> to vector<512x8xf32>
    %7 = arith.addf %4, %6 : vector<512x8xf32>
    %cst = arith.constant 0.000000e+00 : f32
    %8 = vector.broadcast %cst : f32 to vector<512x8xf32>
    %9 = arith.maximumf %7, %8 : vector<512x8xf32>
    %c0_5 = arith.constant 0 : index
    %c0_6 = arith.constant 0 : index
    %10 = vector.load %arg4[%c0_5, %c0_6] : memref<512x8xf32, #tpu.memory_space<vmem>>, vector<512x8xf32>
    tpu.vector_store %arg4[%c0_5, %c0_6], %9 {strides = array<i32>} : memref<512x8xf32, #tpu.memory_space<vmem>>, vector<512x8xf32>,
    return
  }
  func.func @transform_0(%arg0: i32) -> (i32, i32) {
    %c0_i32 = arith.constant 0 : i32
    %c0_i32_0 = arith.constant 0 : i32
    return %arg0, %c0_i32 : i32, i32
  }
  func.func @transform_1(%arg0: i32) -> (i32, i32) {
    %c0_i32 = arith.constant 0 : i32
    %c0_i32_0 = arith.constant 0 : i32
    %c0_i32_1 = arith.constant 0 : i32
    return %c0_i32, %c0_i32_0 : i32, i32
  }
  func.func @transform_2(%arg0: i32) -> (i32, i32) {
    %c0_i32 = arith.constant 0 : i32
    %c0_i32_0 = arith.constant 0 : i32
    %c0_i32_1 = arith.constant 0 : i32
    return %c0_i32, %c0_i32_0 : i32, i32
  }
  func.func @transform_3(%arg0: i32) -> (i32, i32) {
    %c0_i32 = arith.constant 0 : i32
    %c0_i32_0 = arith.constant 0 : i32
    return %arg0, %c0_i32 : i32, i32
  }
}

</mosaic_0001>

<bundles_post_ra>
// kernel: up_forward.7
= control target key start
LH: loop header
LB: loop body
LE: loop exit
PB: predicated region body
PF: predicated region fallthrough
CT: control target
= control target key end

     0   :  { %s789_s15 = smov 0   ;;  %s791_s16 = smov 0   ;;  %s883_s0 = inlined_call_operand.vmem [shape: bf16[2,18,16,48], index: 0, kind: input, shape index: {}]   ;;  %s884_s1 = inlined_call_operand.vmem [shape: bf16[3,48,128], index: 1, kind: input, shape index: {}]   ;;  %s885_s2 = inlined_call_operand.vmem [shape: f32[1,128], index: 2, kind: input, shape index: {}]   ;;  %s886_s3 = inlined_call_operand.vmem [shape: f32[1,128], index: 3, kind: input, shape index: {}]   ;;  %s887_s4 = inlined_call_operand.vmem [shape: f32[2,16,16,128], index: 4, kind: output, shape index: {}]  }
   0x1   :  { %s793_s17 = smov 0   ;;  %s795_s18 = smov 0  }
   0x2   :  { %s797_s19 = smov 0   ;;  %s799_s20 = smov 0  }
   0x3   :  { %s801_s21 = smov 0  }
   0x4 LB: > { %s29_s22 = sadd.s32 1, %s746_s18  ;;  %s36_s23 = sadd.s32 1, %s750_s19  ;;  %s758_s21 = sphi %s801_s21, %s14_s21   ;;  %s754_s20 = sphi %s799_s20, %s897_s20   ;;  %s750_s19 = sphi %s797_s19, %s896_s19   ;;  %s746_s18 = sphi %s795_s18, %s895_s18   ;;  %s742_s17 = sphi %s793_s17, %s894_s17   ;;  %s738_s16 = sphi %s791_s16, %s893_s16   ;;  %s734_s15 = sphi %s789_s15, %s892_s15  }
   0x5   : > { %p30_p0 = scmp.ge.s32.totalorder %s29_s22, 3  ;;  %p605_p1 = scmp.ge.s32.totalorder %s758_s21, 1 }
   0x6   : > { %p233_p2 = scmp.lt.s32.totalorder %s758_s21, 97  ;;  %s40_s24 = sadd.s32 1, %s754_s20 }
   0x7   : > { %s899_s22 = smov (%p30_p0, %s29_s22), 0  ;;  %s901_s23 = smov (!%p30_p0, %s36_s23), %s750_s19 }
   0x8   : > { %p234_p3 = pnand %p605_p1, %p233_p2  ;;  %p38_p4 = scmp.ge.s32.totalorder %s901_s23, 16 }
   0x9   : > { %s285_s25 = sadd.s32 (!%p234_p3), %s734_s15, %s738_s16  ;;  %p286_p6 = scmp.lt.s32.totalorder (!%p234_p3), %s742_s17, 1 }
   0xa   : > { %s903_s23 = smov (%p38_p4, %s901_s23), 0  ;;  %s905_s24 = smov (!%p38_p4, %s40_s24), %s754_s20 }
   0xb   : > { %888 = sst [smem:[#allocation3_spill]] %s903_s23  ;;  %p42_p5 = scmp.ge.s32.totalorder %s905_s24, 2 }
   0xc   : > { %237 = sbr.rel (%p234_p3) target bundleno = 276 (0x114), region = 36  ;;  %p288_p7 = scmp.lt.s32.totalorder (!%p234_p3), %s285_s25, 17 }
   0xd   : > { %s907_s24 = smov (%p42_p5, %s905_s24), 0  ;;  %p296_p8 = scmp.lt.s32.totalorder (!%p234_p3), %s734_s15, 2 }
   0xe   : > { %889 = sst [smem:[#allocation4_spill]] %s907_s24  ;;  %p312_p9 = scmp.lt.s32.totalorder (!%p234_p3), %s738_s16, 15 }
   0xf   : > { %p612_p10 = scmp.ne.s32.totalorder (!%p234_p3), %s734_s15, 0 }
  0x13   : > { %s909_s17 = smov (!%p286_p6, %s742_s17), 1  ;;  %s911_s25 = smov (!%p288_p7, %s285_s25), 17 }
  0x14   : > { %s638_s26 = smul.u32 36, %s909_s17  ;;  %s606_s27 = sshll.u32 %s911_s25, 1  ;;  %v760_v0 = vmov (!%p612_p10), 0.0  }
  0x15   : > { %s610_s7 = sshll.u32 %s909_s17, 5  ;;  %s913_s16 = smov (!%p312_p9, %s738_s16), 15  ;;  %327 = vst [vmem:[#allocation2] sm:$0xff] (!%p612_p10), %v760_v0  ;;  %328 = vst [vmem:[#allocation2 + $0x8] sm:$0xff] (!%p612_p10), %v760_v0 }
  0x16   : > { %s292_s28 = sadd.s32 %s638_s26, %s606_s27  ;;  %s609_s10 = sshll.u32 %s913_s16, 1 }
  0x17   : > { %s607_s29 = sshll.u32 %s292_s28, 2  ;;  %s319_s14 = sadd.s32 %s610_s7, %s609_s10 }
  0x18   : > { %s294_s6 = scalar_lea.vmem %s883_s0, %s607_s29  ;;  %s611_s24 = sshll.u32 %s319_s14, 3 }
  0x19   : > { %s297_s8 = scalar_select %p296_p8, %s734_s15, 2 }
  0x1a   : > { %s850_s26 = scalar_lea.vmem %s887_s4, %s611_s24  ;;  %326 = sbr.rel (%p612_p10) target bundleno = 33 (0x21), region = 40 }
  0x1b   : > { %s639_s9 = smul.u32 24, %s297_s8 }
  0x1d   : > { %s303_s13 = scalar_lea.vmem %s884_s1, %s639_s9 }
  0x21 PF: > { %v700_v1 = vld [vmem:[%s303_s13] sm:$0xff]   ;;  %v761_v2 = vmov 0.0   ;;  %v701_v3 = vld [vmem:[%s303_s13 + $0x8] sm:$0xff]   ;;  %vm762_vm0 = vmmov 0   ;;  %v702_v4 = vld [vmem:[%s303_s13 + $0x10] sm:$0xff]   ;;  %vm362_vm1 = vcmask 392192  }
  0x22   : > { %628 = vmatprep.subr.bf16.mxu0 %v761_v2  ;;  %634 = vmatprep.mubr.msk.bf16.mxu0 %vm762_vm0, %v761_v2  ;;  %v703_v5 = vld [vmem:[%s294_s6] sm:$0xff]   ;;  %v330_v8 = vld [vmem:[#allocation2 + $0x8] sm:$0xff]  ;;  %p618_p11 = scmp.ne.s32.totalorder %s734_s15, 2 }
  0x23   : > { %629 = vmatpush3.bf16.msra.mxu0 %v700_v1  ;;  %v329_v6 = vld [vmem:[#allocation2] sm:$0xff]  ;;  %v433_v17 = vlaneseq (!%p618_p11)  ;;  %v763_v22 = vmov (!%p618_p11), 0  }
  0x24   : > { %630 = vmatprep.subr.bf16.mxu0 %v761_v2  ;;  %v619_v15 = vld [vmem:[%s885_s2] ss:$0 sm:$0xff] (!%p618_p11) }
  0x25   : > { %v426_v16 = vld [vmem:[%s886_s3] sm:$0x1] (!%p618_p11)  ;;  %v434_v20 = vshrl.u32 (!%p618_p11), %v433_v17, 7 }
  0x26   : > { %vm427_vm2 = vcmp.gt.f32.partialorder (!%p618_p11), %v426_v16, 0.0 }
  0x27   : > { %631 = vmatpush3.bf16.msra.mxu0 %v701_v3  ;;  %v432_v23 = vsel (!%p618_p11), %vm427_vm2, 1, %v763_v22  ;;  %v435_v24 = vsub.s32 (!%p618_p11), 0, %v434_v20 }
  0x28   : > { %632 = vmatprep.subr.bf16.mxu0 %v761_v2 }
  0x29   : > { %v436_v27 = vrot.slane (!%p618_p11), %v432_v23, %v435_v24 }
  0x2b   : > { %633 = vmatpush3.bf16.msra.mxu0 %v702_v4  ;;  %vm437_vm3 = vcmp.eq.s32.totalorder (!%p618_p11), %v436_v27, 1 }
  0x2e   : > { %635 = vmatmul.mubr.msk.bf16.vlgmr.msra.gmra.mrb[0].mxu0 %vm362_vm1, %v703_v5 }
 0x100   : > { %414 = sbr.rel (%p618_p11) target bundleno = 276 (0x114), region = 44 }
 0x101   : > { %v400_v7 = vpop.f32.mrb[0].mxu0 }
 0x102   : > { %v407_v9 = vadd.f32 %v400_v7, %v329_v6  ;;  %v636_v10 = vpop.f32.mrb[1].mxu0 }
 0x103   : > { %v403_v11 = vpop.f32.mrb[2].mxu0 }
 0x104   : > { %409 = vst [vmem:[#allocation2] sm:$0xff] %v407_v9  ;;  %v408_v12 = vadd.f32 %v403_v11, %v330_v8  ;;  %v637_v13 = vpop.f32.mrb[3].mxu0 }
 0x106   : > { %410 = vst [vmem:[#allocation2 + $0x8] sm:$0xff] %v408_v12 }
 0x10b   : > { %v415_v14 = vld [vmem:[#allocation2] sm:$0xff] }
 0x10c   : > { %v424_v18 = vadd.f32 %v619_v15, %v415_v14 }
 0x10d   : > { %v416_v19 = vld [vmem:[#allocation2 + $0x8] sm:$0xff] }
 0x10e   : > { %v425_v21 = vadd.f32 %v619_v15, %v416_v19  ;;  %v620_v25 = vclamps-f32 %v424_v18, 1.0 }
 0x110   : > { %v621_v26 = vclamps-f32 %v425_v21, 1.0  ;;  %v438_v28 = vsel %vm437_vm3, %v620_v25, %v424_v18 }
 0x111   : > { %440 = vst [vmem:[%s850_s26] sm:$0xff] %v438_v28 }
 0x112   : > { %v439_v29 = vsel %vm437_vm3, %v621_v26, %v425_v21 }
 0x113   : > { %441 = vst [vmem:[%s850_s26 + $0x8] sm:$0xff] %v439_v29 }
 0x114 PF: > { %s14_s21 = sadd.s32 1, %s758_s21   ;;  %s890_s27 = sld [smem:[#allocation3_spill]] }
 0x115   : > { %p11_p12 = scmp.ge.s32.totalorder %s14_s21, 98   ;;  %s891_s28 = sld [smem:[#allocation4_spill]] }
 0x116   : > { %s892_s15 = smov %s746_s18  ;;  %s893_s16 = smov %s750_s19 }
 0x117   : > { %s894_s17 = smov %s754_s20  ;;  %s895_s18 = smov %s899_s22 }
 0x118   :  { %13 = sbr.rel (!%p11_p12) target bundleno = 4 (0x4), region = 83 }
 0x11a   : > { %s896_s19 = smov %s890_s27 }
 0x11b   : > { %s897_s20 = smov %s891_s28 }

// kernel: up_forward.8
= control target key start
LH: loop header
LB: loop body
LE: loop exit
PB: predicated region body
PF: predicated region fallthrough
CT: control target
= control target key end

     0   :  { %s2188_s12 = smov 0   ;;  %s2190_s13 = smov 0   ;;  %s2442_s0 = inlined_call_operand.vmem [shape: bf16[2,512,144], index: 0, kind: input, shape index: {}]   ;;  %s2443_s1 = inlined_call_operand.vmem [shape: bf16[2,144,128], index: 1, kind: input, shape index: {}]   ;;  %s2444_s2 = inlined_call_operand.vmem [shape: f32[2,1,128], index: 2, kind: input, shape index: {}]   ;;  %s2445_s3 = inlined_call_operand.vmem [shape: bf16[2,512,128], index: 3, kind: output, shape index: {}]  }
   0x1   :  { %s2192_s14 = smov 0  }
   0x2 LB: > { %s32_s15 = sadd.s32 1, %s2161_s13  ;;  %p1559_p0 = scmp.ge.s32.totalorder %s2165_s14, 1  ;;  %s2165_s14 = sphi %s2192_s14, %s13_s14   ;;  %s2161_s13 = sphi %s2190_s13, %s2447_s13   ;;  %s2157_s12 = sphi %s2188_s12, %s2446_s12  }
   0x3   : > { %p34_p1 = scmp.ge.s32.totalorder %s32_s15, 2  ;;  %p196_p2 = scmp.lt.s32.totalorder %s2165_s14, 3 }
   0x5   : > { %s2449_s15 = smov (%p34_p1, %s32_s15), 0  ;;  %p197_p3 = pnand %p1559_p0, %p196_p2 }
   0x6   : > { %p247_p4 = scmp.lt.s32.totalorder (!%p197_p3), %s2157_s12, 1  ;;  %v2167_v0 = vmov (!%p197_p3), 0   ;;  %vm716_vm0 = vcmask (!%p197_p3), 130048  }
   0x7   : > { %200 = sbr.rel (%p197_p3) target bundleno = 393 (0x189), region = 32  ;;  %813 = vmatprep.subr.bf16.mxu0 (!%p197_p3), %v2167_v0  ;;  %1994 = vmatprep.subr.bf16.mxu1 (!%p197_p3), %v2167_v0 }
   0xe   : > { %s2451_s12 = smov (!%p247_p4, %s2157_s12), 1 }
   0xf   : > { %s2012_s16 = smul.u32 72, %s2451_s12  ;;  %s1737_s17 = sshll.u32 %s2451_s12, 9 }
  0x10   : > { %s2213_s20 = scalar_lea.vmem %s2442_s0, %s1737_s17  ;;  %s270_s26 = scalar_lea.vmem %s2444_s2, %s2451_s12 }
  0x11   : > { %s2218_s23 = scalar_lea.vmem %s2443_s1, %s2012_s16  ;;  %v2049_v4 = vld [vmem:[%s2213_s20 + $0x4] ss:$8 sps:$4 sm:$0xff]   ;;  %v2047_v12 = vld [vmem:[%s2213_s20] ss:$8 sps:$4 sm:$0xff]   ;;  %v2053_v14 = vld [vmem:[%s2213_s20 + $0x14] ss:$8 sps:$4 sm:$0xff]  }
  0x12   : > { %v2038_v1 = vld [vmem:[%s2218_s23] sm:$0xff]   ;;  %v2039_v2 = vld [vmem:[%s2218_s23 + $0x8] sm:$0xff]   ;;  %v2040_v3 = vld [vmem:[%s2218_s23 + $0x10] sm:$0xff]   ;;  %1639 = vmatprep.mubr.msk.bf16.mxu0 %vm716_vm0, %v2049_v4  ;;  %s1738_s27 = sshll.u32 %s2451_s12, 8 }
  0x13   : > { %814 = vmatpush1.bf16.msra.mxu0 %v2038_v1  ;;  %2003 = vmatpush1.bf16.msra.mxu1 %v2038_v1  ;;  %v2041_v5 = vld [vmem:[%s2218_s23 + $0x18] sm:$0xff]   ;;  %v2052_v6 = vld [vmem:[%s2213_s20 + $0x104] ss:$8 sps:$4 sm:$0xff]   ;;  %v2044_v9 = vld [vmem:[%s2218_s23 + $0x30] sm:$0xff]   ;;  %s2339_s30 = scalar_lea.vmem %s2445_s3, %s1738_s27 }
  0x14   : > { %815 = vmatprep.subr.bf16.mxu0 %v2167_v0  ;;  %1995 = vmatprep.subr.bf16.mxu1 %v2167_v0  ;;  %v2042_v7 = vld [vmem:[%s2218_s23 + $0x20] sm:$0xff]   ;;  %v2043_v8 = vld [vmem:[%s2218_s23 + $0x28] sm:$0xff]   ;;  %v2045_v10 = vld [vmem:[%s2218_s23 + $0x38] sm:$0xff]  }
  0x15   : > { %1655 = vmatprep.mubr.msk.bf16.mxu1 %vm716_vm0, %v2052_v6  ;;  %v2046_v11 = vld [vmem:[%s2218_s23 + $0x40] sm:$0xff]   ;;  %v2055_v15 = vld [vmem:[%s2213_s20 + $0x114] ss:$8 sps:$4 sm:$0xff]   ;;  %v2057_v16 = vld [vmem:[%s2213_s20 + $0x10] ss:$8 sps:$4 sm:$0xff]  }
  0x16   : > { %v2050_v13 = vld [vmem:[%s2213_s20 + $0x100] ss:$8 sps:$4 sm:$0xff]   ;;  %v2058_v17 = vld [vmem:[%s2213_s20 + $0x110] ss:$8 sps:$4 sm:$0xff]   ;;  %v2059_v18 = vld [vmem:[%s2213_s20 + $0x24] ss:$8 sps:$4 sm:$0xff]  }
  0x17   : > { %816 = vmatpush1.bf16.msra.mxu0 %v2039_v2  ;;  %2004 = vmatpush1.bf16.msra.mxu1 %v2039_v2  ;;  %v2061_v19 = vld [vmem:[%s2213_s20 + $0x124] ss:$8 sps:$4 sm:$0xff]   ;;  %v2063_v20 = vld [vmem:[%s2213_s20 + $0x20] ss:$8 sps:$4 sm:$0xff]   ;;  %v2065_v22 = vld [vmem:[%s2213_s20 + $0x34] ss:$8 sps:$4 sm:$0xff]  }
  0x18   : > { %817 = vmatprep.subr.bf16.mxu0 %v2167_v0  ;;  %1996 = vmatprep.subr.bf16.mxu1 %v2167_v0  ;;  %v2064_v21 = vld [vmem:[%s2213_s20 + $0x120] ss:$8 sps:$4 sm:$0xff]   ;;  %v2067_v23 = vld [vmem:[%s2213_s20 + $0x134] ss:$8 sps:$4 sm:$0xff]   ;;  %v2069_v24 = vld [vmem:[%s2213_s20 + $0x30] ss:$8 sps:$4 sm:$0xff]  }
  0x19   : > { %v2070_v25 = vld [vmem:[%s2213_s20 + $0x130] ss:$8 sps:$4 sm:$0xff]   ;;  %v2071_v26 = vld [vmem:[%s2213_s20 + $0x44] ss:$8 sps:$4 sm:$0xff]   ;;  %v2075_v28 = vld [vmem:[%s2213_s20 + $0x40] ss:$8 sps:$4 sm:$0xff]  }
  0x1a   : > { %v2073_v27 = vld [vmem:[%s2213_s20 + $0x144] ss:$8 sps:$4 sm:$0xff]   ;;  %v2076_v29 = vld [vmem:[%s2213_s20 + $0x140] ss:$8 sps:$4 sm:$0xff]   ;;  %v2077_v30 = vld [vmem:[%s2213_s20 + $0x54] ss:$8 sps:$4 sm:$0xff]  }
  0x1b   : > { %818 = vmatpush1.bf16.msra.mxu0 %v2040_v3  ;;  %2005 = vmatpush1.bf16.msra.mxu1 %v2040_v3  ;;  %v2079_v31 = vld [vmem:[%s2213_s20 + $0x154] ss:$8 sps:$4 sm:$0xff]   ;;  %v2081_v32 = vld [vmem:[%s2213_s20 + $0x50] ss:$8 sps:$4 sm:$0xff]   ;;  %v2083_v34 = vld [vmem:[%s2213_s20 + $0x64] ss:$8 sps:$4 sm:$0xff]  }
  0x1c   : > { %819 = vmatprep.subr.bf16.mxu0 %v2167_v0  ;;  %1997 = vmatprep.subr.bf16.mxu1 %v2167_v0  ;;  %v2082_v33 = vld [vmem:[%s2213_s20 + $0x150] ss:$8 sps:$4 sm:$0xff]   ;;  %v2085_v35 = vld [vmem:[%s2213_s20 + $0x164] ss:$8 sps:$4 sm:$0xff]   ;;  %v2087_v36 = vld [vmem:[%s2213_s20 + $0x60] ss:$8 sps:$4 sm:$0xff]  }
  0x1d   : > { %v2088_v37 = vld [vmem:[%s2213_s20 + $0x160] ss:$8 sps:$4 sm:$0xff]   ;;  %v2089_v38 = vld [vmem:[%s2213_s20 + $0x74] ss:$8 sps:$4 sm:$0xff]   ;;  %v2093_v40 = vld [vmem:[%s2213_s20 + $0x70] ss:$8 sps:$4 sm:$0xff]  }
  0x1e   : > { %v2091_v39 = vld [vmem:[%s2213_s20 + $0x174] ss:$8 sps:$4 sm:$0xff]   ;;  %v2094_v41 = vld [vmem:[%s2213_s20 + $0x170] ss:$8 sps:$4 sm:$0xff]   ;;  %v2095_v42 = vld [vmem:[%s2213_s20 + $0x84] ss:$8 sps:$4 sm:$0xff]  }
  0x1f   : > { %820 = vmatpush1.bf16.msra.mxu0 %v2041_v5  ;;  %2006 = vmatpush1.bf16.msra.mxu1 %v2041_v5  ;;  %v2097_v43 = vld [vmem:[%s2213_s20 + $0x184] ss:$8 sps:$4 sm:$0xff]   ;;  %v2099_v44 = vld [vmem:[%s2213_s20 + $0x80] ss:$8 sps:$4 sm:$0xff]   ;;  %v2101_v46 = vld [vmem:[%s2213_s20 + $0x94] ss:$8 sps:$4 sm:$0xff]  }
  0x20   : > { %821 = vmatprep.subr.bf16.mxu0 %v2167_v0  ;;  %1998 = vmatprep.subr.bf16.mxu1 %v2167_v0  ;;  %v2100_v45 = vld [vmem:[%s2213_s20 + $0x180] ss:$8 sps:$4 sm:$0xff]   ;;  %v2103_v47 = vld [vmem:[%s2213_s20 + $0x194] ss:$8 sps:$4 sm:$0xff]   ;;  %v2105_v48 = vld [vmem:[%s2213_s20 + $0x90] ss:$8 sps:$4 sm:$0xff]  }
  0x21   : > { %v2106_v49 = vld [vmem:[%s2213_s20 + $0x190] ss:$8 sps:$4 sm:$0xff]   ;;  %v2107_v50 = vld [vmem:[%s2213_s20 + $0xa4] ss:$8 sps:$4 sm:$0xff]   ;;  %v2111_v52 = vld [vmem:[%s2213_s20 + $0xa0] ss:$8 sps:$4 sm:$0xff]  }
  0x22   : > { %v2109_v51 = vld [vmem:[%s2213_s20 + $0x1a4] ss:$8 sps:$4 sm:$0xff]   ;;  %v2112_v53 = vld [vmem:[%s2213_s20 + $0x1a0] ss:$8 sps:$4 sm:$0xff]   ;;  %v2113_v54 = vld [vmem:[%s2213_s20 + $0xb4] ss:$8 sps:$4 sm:$0xff]  }
  0x23   : > { %822 = vmatpush1.bf16.msra.mxu0 %v2042_v7  ;;  %2007 = vmatpush1.bf16.msra.mxu1 %v2042_v7  ;;  %v2115_v55 = vld [vmem:[%s2213_s20 + $0x1b4] ss:$8 sps:$4 sm:$0xff]   ;;  %v2117_v56 = vld [vmem:[%s2213_s20 + $0xb0] ss:$8 sps:$4 sm:$0xff]   ;;  %v2119_v58 = vld [vmem:[%s2213_s20 + $0xc4] ss:$8 sps:$4 sm:$0xff]  }
  0x24   : > { %823 = vmatprep.subr.bf16.mxu0 %v2167_v0  ;;  %1999 = vmatprep.subr.bf16.mxu1 %v2167_v0  ;;  %v2118_v57 = vld [vmem:[%s2213_s20 + $0x1b0] ss:$8 sps:$4 sm:$0xff]   ;;  %v2121_v59 = vld [vmem:[%s2213_s20 + $0x1c4] ss:$8 sps:$4 sm:$0xff]   ;;  %v2123_v60 = vld [vmem:[%s2213_s20 + $0xc0] ss:$8 sps:$4 sm:$0xff]  }
  0x25   : > { %v2124_v61 = vld [vmem:[%s2213_s20 + $0x1c0] ss:$8 sps:$4 sm:$0xff]   ;;  %v2125_v62 = vld [vmem:[%s2213_s20 + $0xd4] ss:$8 sps:$4 sm:$0xff]   ;;  %v2130_v1 = vld [vmem:[%s2213_s20 + $0x1d0] ss:$8 sps:$4 sm:$0xff]  }
  0x26   : > { %v2127_v63 = vld [vmem:[%s2213_s20 + $0x1d4] ss:$8 sps:$4 sm:$0xff]   ;;  %v2131_v2 = vld [vmem:[%s2213_s20 + $0xe4] ss:$8 sps:$4 sm:$0xff]   ;;  %v2135_v4 = vld [vmem:[%s2213_s20 + $0xe0] ss:$8 sps:$4 sm:$0xff]  }
  0x27   : > { %824 = vmatpush1.bf16.msra.mxu0 %v2043_v8  ;;  %2008 = vmatpush1.bf16.msra.mxu1 %v2043_v8  ;;  %v2133_v3 = vld [vmem:[%s2213_s20 + $0x1e4] ss:$8 sps:$4 sm:$0xff]   ;;  %v2136_v5 = vld [vmem:[%s2213_s20 + $0x1e0] ss:$8 sps:$4 sm:$0xff]   ;;  %v2137_v6 = vld [vmem:[%s2213_s20 + $0xf4] ss:$8 sps:$4 sm:$0xff]  }
  0x28   : > { %825 = vmatprep.subr.bf16.mxu0 %v2167_v0  ;;  %2000 = vmatprep.subr.bf16.mxu1 %v2167_v0  ;;  %v2139_v7 = vld [vmem:[%s2213_s20 + $0x1f4] ss:$8 sps:$4 sm:$0xff]   ;;  %v2141_v8 = vld [vmem:[%s2213_s20 + $0xf0] ss:$8 sps:$4 sm:$0xff]  }
  0x2b   : > { %826 = vmatpush1.bf16.msra.mxu0 %v2044_v9  ;;  %2009 = vmatpush1.bf16.msra.mxu1 %v2044_v9  ;;  %v2142_v9 = vld [vmem:[%s2213_s20 + $0x1f0] ss:$8 sps:$4 sm:$0xff]  }
  0x2c   : > { %827 = vmatprep.subr.bf16.mxu0 %v2167_v0  ;;  %2001 = vmatprep.subr.bf16.mxu1 %v2167_v0 }
  0x2f   : > { %828 = vmatpush1.bf16.msra.mxu0 %v2045_v10  ;;  %2010 = vmatpush1.bf16.msra.mxu1 %v2045_v10  ;;  %v2329_v10 = vld [vmem:[%s270_s26] ss:$0 sm:$0xff] }
  0x30   : > { %829 = vmatprep.subr.bf16.mxu0 %v2167_v0  ;;  %2002 = vmatprep.subr.bf16.mxu1 %v2167_v0  ;;  %v2129_v0 = vld [vmem:[%s2213_s20 + $0xd0] ss:$8 sps:$4 sm:$0xff]  }
  0x33   : > { %830 = vmatpush1.bf16.msra.mxu0 %v2046_v11  ;;  %2011 = vmatpush1.bf16.msra.mxu1 %v2046_v11 }
  0x36   : > { %846 = vmatmul.mubr.bf16.vlgmr.msra.gmra.mrb[0].mxu0 %v2047_v12  ;;  %974 = vmatmul.mubr.bf16.vlgmr.msra.gmra.mrb[0].mxu1 %v2050_v13 }
  0x37   : > { %1640 = vmatprep.mubr.msk.bf16.mxu0 %vm716_vm0, %v2053_v14  ;;  %1656 = vmatprep.mubr.msk.bf16.mxu1 %vm716_vm0, %v2055_v15 }
  0x3e   : > { %854 = vmatmul.mubr.bf16.gmra.mrb[4].mxu0 %v2057_v16  ;;  %982 = vmatmul.mubr.bf16.gmra.mrb[4].mxu1 %v2058_v17 }
  0x3f   : > { %1641 = vmatprep.mubr.msk.bf16.mxu0 %vm716_vm0, %v2059_v18  ;;  %1657 = vmatprep.mubr.msk.bf16.mxu1 %vm716_vm0, %v2061_v19 }
  0x46   : > { %862 = vmatmul.mubr.bf16.gmra.mrb[8].mxu0 %v2063_v20  ;;  %990 = vmatmul.mubr.bf16.gmra.mrb[8].mxu1 %v2064_v21 }
  0x47   : > { %1642 = vmatprep.mubr.msk.bf16.mxu0 %vm716_vm0, %v2065_v22  ;;  %1658 = vmatprep.mubr.msk.bf16.mxu1 %vm716_vm0, %v2067_v23 }
  0x4e   : > { %870 = vmatmul.mubr.bf16.gmra.mrb[12].mxu0 %v2069_v24  ;;  %998 = vmatmul.mubr.bf16.gmra.mrb[12].mxu1 %v2070_v25 }
  0x4f   : > { %1643 = vmatprep.mubr.msk.bf16.mxu0 %vm716_vm0, %v2071_v26  ;;  %1659 = vmatprep.mubr.msk.bf16.mxu1 %vm716_vm0, %v2073_v27 }
  0x56   : > { %878 = vmatmul.mubr.bf16.gmra.mrb[16].mxu0 %v2075_v28  ;;  %1006 = vmatmul.mubr.bf16.gmra.mrb[16].mxu1 %v2076_v29 }
  0x57   : > { %1644 = vmatprep.mubr.msk.bf16.mxu0 %vm716_vm0, %v2077_v30  ;;  %1660 = vmatprep.mubr.msk.bf16.mxu1 %vm716_vm0, %v2079_v31 }
  0x5e   : > { %886 = vmatmul.mubr.bf16.gmra.mrb[20].mxu0 %v2081_v32  ;;  %1014 = vmatmul.mubr.bf16.gmra.mrb[20].mxu1 %v2082_v33 }
  0x5f   : > { %1645 = vmatprep.mubr.msk.bf16.mxu0 %vm716_vm0, %v2083_v34  ;;  %1661 = vmatprep.mubr.msk.bf16.mxu1 %vm716_vm0, %v2085_v35 }
  0x66   : > { %894 = vmatmul.mubr.bf16.gmra.mrb[24].mxu0 %v2087_v36  ;;  %1022 = vmatmul.mubr.bf16.gmra.mrb[24].mxu1 %v2088_v37 }
  0x67   : > { %1646 = vmatprep.mubr.msk.bf16.mxu0 %vm716_vm0, %v2089_v38  ;;  %1662 = vmatprep.mubr.msk.bf16.mxu1 %vm716_vm0, %v2091_v39 }
  0x6e   : > { %902 = vmatmul.mubr.bf16.gmra.mrb[28].mxu0 %v2093_v40  ;;  %1030 = vmatmul.mubr.bf16.gmra.mrb[28].mxu1 %v2094_v41 }
  0x6f   : > { %1647 = vmatprep.mubr.msk.bf16.mxu0 %vm716_vm0, %v2095_v42  ;;  %1663 = vmatprep.mubr.msk.bf16.mxu1 %vm716_vm0, %v2097_v43 }
  0x76   : > { %910 = vmatmul.mubr.bf16.gmra.mrb[32].mxu0 %v2099_v44  ;;  %1038 = vmatmul.mubr.bf16.gmra.mrb[32].mxu1 %v2100_v45 }
  0x77   : > { %1648 = vmatprep.mubr.msk.bf16.mxu0 %vm716_vm0, %v2101_v46  ;;  %1664 = vmatprep.mubr.msk.bf16.mxu1 %vm716_vm0, %v2103_v47 }
  0x7e   : > { %918 = vmatmul.mubr.bf16.gmra.mrb[36].mxu0 %v2105_v48  ;;  %1046 = vmatmul.mubr.bf16.gmra.mrb[36].mxu1 %v2106_v49 }
  0x7f   : > { %1649 = vmatprep.mubr.msk.bf16.mxu0 %vm716_vm0, %v2107_v50  ;;  %1665 = vmatprep.mubr.msk.bf16.mxu1 %vm716_vm0, %v2109_v51 }
  0x86   : > { %926 = vmatmul.mubr.bf16.gmra.mrb[40].mxu0 %v2111_v52  ;;  %1054 = vmatmul.mubr.bf16.gmra.mrb[40].mxu1 %v2112_v53 }
  0x87   : > { %1650 = vmatprep.mubr.msk.bf16.mxu0 %vm716_vm0, %v2113_v54  ;;  %1666 = vmatprep.mubr.msk.bf16.mxu1 %vm716_vm0, %v2115_v55 }
  0x8e   : > { %934 = vmatmul.mubr.bf16.gmra.mrb[44].mxu0 %v2117_v56  ;;  %1062 = vmatmul.mubr.bf16.gmra.mrb[44].mxu1 %v2118_v57 }
  0x8f   : > { %1651 = vmatprep.mubr.msk.bf16.mxu0 %vm716_vm0, %v2119_v58  ;;  %1667 = vmatprep.mubr.msk.bf16.mxu1 %vm716_vm0, %v2121_v59 }
  0x96   : > { %942 = vmatmul.mubr.bf16.gmra.mrb[48].mxu0 %v2123_v60  ;;  %1070 = vmatmul.mubr.bf16.gmra.mrb[48].mxu1 %v2124_v61 }
  0x97   : > { %1652 = vmatprep.mubr.msk.bf16.mxu0 %vm716_vm0, %v2125_v62  ;;  %1668 = vmatprep.mubr.msk.bf16.mxu1 %vm716_vm0, %v2127_v63 }
  0x9e   : > { %950 = vmatmul.mubr.bf16.gmra.mrb[52].mxu0 %v2129_v0  ;;  %1078 = vmatmul.mubr.bf16.gmra.mrb[52].mxu1 %v2130_v1 }
  0x9f   : > { %1653 = vmatprep.mubr.msk.bf16.mxu0 %vm716_vm0, %v2131_v2  ;;  %1669 = vmatprep.mubr.msk.bf16.mxu1 %vm716_vm0, %v2133_v3 }
  0xa6   : > { %958 = vmatmul.mubr.bf16.gmra.mrb[56].mxu0 %v2135_v4  ;;  %1086 = vmatmul.mubr.bf16.gmra.mrb[56].mxu1 %v2136_v5 }
  0xa7   : > { %1654 = vmatprep.mubr.msk.bf16.mxu0 %vm716_vm0, %v2137_v6  ;;  %1670 = vmatprep.mubr.msk.bf16.mxu1 %vm716_vm0, %v2139_v7 }
  0xae   : > { %966 = vmatmul.mubr.bf16.gmra.mrb[60].mxu0 %v2141_v8  ;;  %1094 = vmatmul.mubr.bf16.gmra.mrb[60].mxu1 %v2142_v9 }
 0x109   : > { %v847_v11 = vpop.f32.mrb[0].mxu0  ;;  %v975_v12 = vpop.f32.mrb[0].mxu1 }
 0x10a   : > { %v849_v13 = vpop.f32.mrb[1].mxu0  ;;  %v977_v14 = vpop.f32.mrb[1].mxu1  ;;  %v848_v17 = vadd.f32 %v2329_v10, %v847_v11  ;;  %v976_v18 = vadd.f32 %v2329_v10, %v975_v12 }
 0x10b   : > { %v850_v15 = vpop.f32.mrb[2].mxu0  ;;  %v978_v16 = vpop.f32.mrb[2].mxu1 }
 0x10c   : > { %v851_v19 = vadd.f32 %v2329_v10, %v850_v15  ;;  %v979_v20 = vadd.f32 %v2329_v10, %v978_v16  ;;  %v852_v21 = vpop.f32.mrb[3].mxu0  ;;  %v980_v22 = vpop.f32.mrb[3].mxu1 }
 0x10e   : > { %v1806_v23 = vpack.c.bf16 %v851_v19, %v848_v17  ;;  %v1886_v24 = vpack.c.bf16 %v979_v20, %v976_v18 }
 0x110   : > { %1807 = vst [vmem:[%s2339_s30] sm:$0xff] %v1806_v23   ;;  %1978 = vst [vmem:[%s2339_s30 + $0x80] sm:$0xff] %v1886_v24  }
 0x111   : > { %v855_v25 = vpop.f32.mrb[4].mxu0  ;;  %v983_v26 = vpop.f32.mrb[4].mxu1 }
 0x112   : > { %v857_v27 = vpop.f32.mrb[5].mxu0  ;;  %v985_v28 = vpop.f32.mrb[5].mxu1  ;;  %v856_v31 = vadd.f32 %v2329_v10, %v855_v25  ;;  %v984_v32 = vadd.f32 %v2329_v10, %v983_v26 }
 0x113   : > { %v858_v29 = vpop.f32.mrb[6].mxu0  ;;  %v986_v30 = vpop.f32.mrb[6].mxu1 }
 0x114   : > { %v859_v33 = vadd.f32 %v2329_v10, %v858_v29  ;;  %v987_v34 = vadd.f32 %v2329_v10, %v986_v30  ;;  %v860_v35 = vpop.f32.mrb[7].mxu0  ;;  %v988_v36 = vpop.f32.mrb[7].mxu1 }
 0x116   : > { %v1811_v37 = vpack.c.bf16 %v859_v33, %v856_v31  ;;  %v1891_v38 = vpack.c.bf16 %v987_v34, %v984_v32 }
 0x118   : > { %1963 = vst [vmem:[%s2339_s30 + $0x8] sm:$0xff] %v1811_v37   ;;  %1979 = vst [vmem:[%s2339_s30 + $0x88] sm:$0xff] %v1891_v38  }
 0x119   : > { %v863_v39 = vpop.f32.mrb[8].mxu0  ;;  %v991_v40 = vpop.f32.mrb[8].mxu1 }
 0x11a   : > { %v865_v41 = vpop.f32.mrb[9].mxu0  ;;  %v993_v42 = vpop.f32.mrb[9].mxu1  ;;  %v864_v45 = vadd.f32 %v2329_v10, %v863_v39  ;;  %v992_v46 = vadd.f32 %v2329_v10, %v991_v40 }
 0x11b   : > { %v866_v43 = vpop.f32.mrb[10].mxu0  ;;  %v994_v44 = vpop.f32.mrb[10].mxu1 }
 0x11c   : > { %v867_v47 = vadd.f32 %v2329_v10, %v866_v43  ;;  %v995_v48 = vadd.f32 %v2329_v10, %v994_v44  ;;  %v868_v49 = vpop.f32.mrb[11].mxu0  ;;  %v996_v50 = vpop.f32.mrb[11].mxu1 }
 0x11e   : > { %v1816_v51 = vpack.c.bf16 %v867_v47, %v864_v45  ;;  %v1896_v52 = vpack.c.bf16 %v995_v48, %v992_v46 }
 0x120   : > { %1964 = vst [vmem:[%s2339_s30 + $0x10] sm:$0xff] %v1816_v51   ;;  %1980 = vst [vmem:[%s2339_s30 + $0x90] sm:$0xff] %v1896_v52  }
 0x121   : > { %v871_v53 = vpop.f32.mrb[12].mxu0  ;;  %v999_v54 = vpop.f32.mrb[12].mxu1 }
 0x122   : > { %v873_v55 = vpop.f32.mrb[13].mxu0  ;;  %v1001_v56 = vpop.f32.mrb[13].mxu1  ;;  %v872_v59 = vadd.f32 %v2329_v10, %v871_v53  ;;  %v1000_v60 = vadd.f32 %v2329_v10, %v999_v54 }
 0x123   : > { %v874_v57 = vpop.f32.mrb[14].mxu0  ;;  %v1002_v58 = vpop.f32.mrb[14].mxu1 }
 0x124   : > { %v875_v61 = vadd.f32 %v2329_v10, %v874_v57  ;;  %v1003_v62 = vadd.f32 %v2329_v10, %v1002_v58  ;;  %v876_v63 = vpop.f32.mrb[15].mxu0  ;;  %v1004_v0 = vpop.f32.mrb[15].mxu1 }
 0x126   : > { %v1821_v1 = vpack.c.bf16 %v875_v61, %v872_v59  ;;  %v1901_v2 = vpack.c.bf16 %v1003_v62, %v1000_v60 }
 0x128   : > { %1965 = vst [vmem:[%s2339_s30 + $0x18] sm:$0xff] %v1821_v1   ;;  %1981 = vst [vmem:[%s2339_s30 + $0x98] sm:$0xff] %v1901_v2  }
 0x129   : > { %v879_v3 = vpop.f32.mrb[16].mxu0  ;;  %v1007_v4 = vpop.f32.mrb[16].mxu1 }
 0x12a   : > { %v881_v5 = vpop.f32.mrb[17].mxu0  ;;  %v1009_v6 = vpop.f32.mrb[17].mxu1  ;;  %v880_v9 = vadd.f32 %v2329_v10, %v879_v3  ;;  %v1008_v11 = vadd.f32 %v2329_v10, %v1007_v4 }
 0x12b   : > { %v882_v7 = vpop.f32.mrb[18].mxu0  ;;  %v1010_v8 = vpop.f32.mrb[18].mxu1 }
 0x12c   : > { %v883_v12 = vadd.f32 %v2329_v10, %v882_v7  ;;  %v1011_v13 = vadd.f32 %v2329_v10, %v1010_v8  ;;  %v884_v14 = vpop.f32.mrb[19].mxu0  ;;  %v1012_v15 = vpop.f32.mrb[19].mxu1 }
 0x12e   : > { %v1826_v16 = vpack.c.bf16 %v883_v12, %v880_v9  ;;  %v1906_v17 = vpack.c.bf16 %v1011_v13, %v1008_v11 }
 0x130   : > { %1966 = vst [vmem:[%s2339_s30 + $0x20] sm:$0xff] %v1826_v16   ;;  %1982 = vst [vmem:[%s2339_s30 + $0xa0] sm:$0xff] %v1906_v17  }
 0x131   : > { %v887_v18 = vpop.f32.mrb[20].mxu0  ;;  %v1015_v19 = vpop.f32.mrb[20].mxu1 }
 0x132   : > { %v889_v20 = vpop.f32.mrb[21].mxu0  ;;  %v1017_v21 = vpop.f32.mrb[21].mxu1  ;;  %v888_v24 = vadd.f32 %v2329_v10, %v887_v18  ;;  %v1016_v25 = vadd.f32 %v2329_v10, %v1015_v19 }
 0x133   : > { %v890_v22 = vpop.f32.mrb[22].mxu0  ;;  %v1018_v23 = vpop.f32.mrb[22].mxu1 }
 0x134   : > { %v891_v26 = vadd.f32 %v2329_v10, %v890_v22  ;;  %v1019_v27 = vadd.f32 %v2329_v10, %v1018_v23  ;;  %v892_v28 = vpop.f32.mrb[23].mxu0  ;;  %v1020_v29 = vpop.f32.mrb[23].mxu1 }
 0x136   : > { %v1831_v30 = vpack.c.bf16 %v891_v26, %v888_v24  ;;  %v1911_v31 = vpack.c.bf16 %v1019_v27, %v1016_v25 }
 0x138   : > { %1967 = vst [vmem:[%s2339_s30 + $0x28] sm:$0xff] %v1831_v30   ;;  %1983 = vst [vmem:[%s2339_s30 + $0xa8] sm:$0xff] %v1911_v31  }
 0x139   : > { %v895_v32 = vpop.f32.mrb[24].mxu0  ;;  %v1023_v33 = vpop.f32.mrb[24].mxu1 }
 0x13a   : > { %v897_v34 = vpop.f32.mrb[25].mxu0  ;;  %v1025_v35 = vpop.f32.mrb[25].mxu1  ;;  %v896_v38 = vadd.f32 %v2329_v10, %v895_v32  ;;  %v1024_v39 = vadd.f32 %v2329_v10, %v1023_v33 }
 0x13b   : > { %v898_v36 = vpop.f32.mrb[26].mxu0  ;;  %v1026_v37 = vpop.f32.mrb[26].mxu1 }
 0x13c   : > { %v899_v40 = vadd.f32 %v2329_v10, %v898_v36  ;;  %v1027_v41 = vadd.f32 %v2329_v10, %v1026_v37  ;;  %v900_v42 = vpop.f32.mrb[27].mxu0  ;;  %v1028_v43 = vpop.f32.mrb[27].mxu1 }
 0x13e   : > { %v1836_v44 = vpack.c.bf16 %v899_v40, %v896_v38  ;;  %v1916_v45 = vpack.c.bf16 %v1027_v41, %v1024_v39 }
 0x140   : > { %1968 = vst [vmem:[%s2339_s30 + $0x30] sm:$0xff] %v1836_v44   ;;  %1984 = vst [vmem:[%s2339_s30 + $0xb0] sm:$0xff] %v1916_v45  }
 0x141   : > { %v903_v46 = vpop.f32.mrb[28].mxu0  ;;  %v1031_v47 = vpop.f32.mrb[28].mxu1 }
 0x142   : > { %v905_v48 = vpop.f32.mrb[29].mxu0  ;;  %v1033_v49 = vpop.f32.mrb[29].mxu1  ;;  %v904_v52 = vadd.f32 %v2329_v10, %v903_v46  ;;  %v1032_v53 = vadd.f32 %v2329_v10, %v1031_v47 }
 0x143   : > { %v906_v50 = vpop.f32.mrb[30].mxu0  ;;  %v1034_v51 = vpop.f32.mrb[30].mxu1 }
 0x144   : > { %v907_v54 = vadd.f32 %v2329_v10, %v906_v50  ;;  %v1035_v55 = vadd.f32 %v2329_v10, %v1034_v51  ;;  %v908_v56 = vpop.f32.mrb[31].mxu0  ;;  %v1036_v57 = vpop.f32.mrb[31].mxu1 }
 0x146   : > { %v1841_v58 = vpack.c.bf16 %v907_v54, %v904_v52  ;;  %v1921_v59 = vpack.c.bf16 %v1035_v55, %v1032_v53 }
 0x148   : > { %1969 = vst [vmem:[%s2339_s30 + $0x38] sm:$0xff] %v1841_v58   ;;  %1985 = vst [vmem:[%s2339_s30 + $0xb8] sm:$0xff] %v1921_v59  }
 0x149   : > { %v911_v60 = vpop.f32.mrb[32].mxu0  ;;  %v1039_v61 = vpop.f32.mrb[32].mxu1 }
 0x14a   : > { %v913_v62 = vpop.f32.mrb[33].mxu0  ;;  %v1041_v63 = vpop.f32.mrb[33].mxu1  ;;  %v912_v2 = vadd.f32 %v2329_v10, %v911_v60  ;;  %v1040_v3 = vadd.f32 %v2329_v10, %v1039_v61 }
 0x14b   : > { %v914_v0 = vpop.f32.mrb[34].mxu0  ;;  %v1042_v1 = vpop.f32.mrb[34].mxu1 }
 0x14c   : > { %v915_v4 = vadd.f32 %v2329_v10, %v914_v0  ;;  %v1043_v5 = vadd.f32 %v2329_v10, %v1042_v1  ;;  %v916_v6 = vpop.f32.mrb[35].mxu0  ;;  %v1044_v7 = vpop.f32.mrb[35].mxu1 }
 0x14e   : > { %v1846_v8 = vpack.c.bf16 %v915_v4, %v912_v2  ;;  %v1926_v9 = vpack.c.bf16 %v1043_v5, %v1040_v3 }
 0x150   : > { %1970 = vst [vmem:[%s2339_s30 + $0x40] sm:$0xff] %v1846_v8   ;;  %1986 = vst [vmem:[%s2339_s30 + $0xc0] sm:$0xff] %v1926_v9  }
 0x151   : > { %v919_v11 = vpop.f32.mrb[36].mxu0  ;;  %v1047_v12 = vpop.f32.mrb[36].mxu1 }
 0x152   : > { %v921_v13 = vpop.f32.mrb[37].mxu0  ;;  %v1049_v14 = vpop.f32.mrb[37].mxu1  ;;  %v920_v17 = vadd.f32 %v2329_v10, %v919_v11  ;;  %v1048_v18 = vadd.f32 %v2329_v10, %v1047_v12 }
 0x153   : > { %v922_v15 = vpop.f32.mrb[38].mxu0  ;;  %v1050_v16 = vpop.f32.mrb[38].mxu1 }
 0x154   : > { %v923_v19 = vadd.f32 %v2329_v10, %v922_v15  ;;  %v1051_v20 = vadd.f32 %v2329_v10, %v1050_v16  ;;  %v924_v21 = vpop.f32.mrb[39].mxu0  ;;  %v1052_v22 = vpop.f32.mrb[39].mxu1 }
 0x156   : > { %v1851_v23 = vpack.c.bf16 %v923_v19, %v920_v17  ;;  %v1931_v24 = vpack.c.bf16 %v1051_v20, %v1048_v18 }
 0x158   : > { %1971 = vst [vmem:[%s2339_s30 + $0x48] sm:$0xff] %v1851_v23   ;;  %1987 = vst [vmem:[%s2339_s30 + $0xc8] sm:$0xff] %v1931_v24  }
 0x159   : > { %v927_v25 = vpop.f32.mrb[40].mxu0  ;;  %v1055_v26 = vpop.f32.mrb[40].mxu1 }
 0x15a   : > { %v929_v27 = vpop.f32.mrb[41].mxu0  ;;  %v1057_v28 = vpop.f32.mrb[41].mxu1  ;;  %v928_v31 = vadd.f32 %v2329_v10, %v927_v25  ;;  %v1056_v32 = vadd.f32 %v2329_v10, %v1055_v26 }
 0x15b   : > { %v930_v29 = vpop.f32.mrb[42].mxu0  ;;  %v1058_v30 = vpop.f32.mrb[42].mxu1 }
 0x15c   : > { %v931_v33 = vadd.f32 %v2329_v10, %v930_v29  ;;  %v1059_v34 = vadd.f32 %v2329_v10, %v1058_v30  ;;  %v932_v35 = vpop.f32.mrb[43].mxu0  ;;  %v1060_v36 = vpop.f32.mrb[43].mxu1 }
 0x15e   : > { %v1856_v37 = vpack.c.bf16 %v931_v33, %v928_v31  ;;  %v1936_v38 = vpack.c.bf16 %v1059_v34, %v1056_v32 }
 0x160   : > { %1972 = vst [vmem:[%s2339_s30 + $0x50] sm:$0xff] %v1856_v37   ;;  %1988 = vst [vmem:[%s2339_s30 + $0xd0] sm:$0xff] %v1936_v38  }
 0x161   : > { %v935_v39 = vpop.f32.mrb[44].mxu0  ;;  %v1063_v40 = vpop.f32.mrb[44].mxu1 }
 0x162   : > { %v937_v41 = vpop.f32.mrb[45].mxu0  ;;  %v1065_v42 = vpop.f32.mrb[45].mxu1  ;;  %v936_v45 = vadd.f32 %v2329_v10, %v935_v39  ;;  %v1064_v46 = vadd.f32 %v2329_v10, %v1063_v40 }
 0x163   : > { %v938_v43 = vpop.f32.mrb[46].mxu0  ;;  %v1066_v44 = vpop.f32.mrb[46].mxu1 }
 0x164   : > { %v939_v47 = vadd.f32 %v2329_v10, %v938_v43  ;;  %v1067_v48 = vadd.f32 %v2329_v10, %v1066_v44  ;;  %v940_v49 = vpop.f32.mrb[47].mxu0  ;;  %v1068_v50 = vpop.f32.mrb[47].mxu1 }
 0x166   : > { %v1861_v51 = vpack.c.bf16 %v939_v47, %v936_v45  ;;  %v1941_v52 = vpack.c.bf16 %v1067_v48, %v1064_v46 }
 0x168   : > { %1973 = vst [vmem:[%s2339_s30 + $0x58] sm:$0xff] %v1861_v51   ;;  %1989 = vst [vmem:[%s2339_s30 + $0xd8] sm:$0xff] %v1941_v52  }
 0x169   : > { %v943_v53 = vpop.f32.mrb[48].mxu0  ;;  %v1071_v54 = vpop.f32.mrb[48].mxu1 }
 0x16a   : > { %v945_v55 = vpop.f32.mrb[49].mxu0  ;;  %v1073_v56 = vpop.f32.mrb[49].mxu1  ;;  %v944_v59 = vadd.f32 %v2329_v10, %v943_v53  ;;  %v1072_v60 = vadd.f32 %v2329_v10, %v1071_v54 }
 0x16b   : > { %v946_v57 = vpop.f32.mrb[50].mxu0  ;;  %v1074_v58 = vpop.f32.mrb[50].mxu1 }
 0x16c   : > { %v947_v61 = vadd.f32 %v2329_v10, %v946_v57  ;;  %v1075_v62 = vadd.f32 %v2329_v10, %v1074_v58  ;;  %v948_v63 = vpop.f32.mrb[51].mxu0  ;;  %v1076_v0 = vpop.f32.mrb[51].mxu1 }
 0x16e   : > { %v1866_v1 = vpack.c.bf16 %v947_v61, %v944_v59  ;;  %v1946_v2 = vpack.c.bf16 %v1075_v62, %v1072_v60 }
 0x170   : > { %1974 = vst [vmem:[%s2339_s30 + $0x60] sm:$0xff] %v1866_v1   ;;  %1990 = vst [vmem:[%s2339_s30 + $0xe0] sm:$0xff] %v1946_v2  }
 0x171   : > { %v951_v3 = vpop.f32.mrb[52].mxu0  ;;  %v1079_v4 = vpop.f32.mrb[52].mxu1 }
 0x172   : > { %v953_v5 = vpop.f32.mrb[53].mxu0  ;;  %v1081_v6 = vpop.f32.mrb[53].mxu1  ;;  %v952_v9 = vadd.f32 %v2329_v10, %v951_v3  ;;  %v1080_v11 = vadd.f32 %v2329_v10, %v1079_v4 }
 0x173   : > { %v954_v7 = vpop.f32.mrb[54].mxu0  ;;  %v1082_v8 = vpop.f32.mrb[54].mxu1 }
 0x174   : > { %v955_v12 = vadd.f32 %v2329_v10, %v954_v7  ;;  %v1083_v13 = vadd.f32 %v2329_v10, %v1082_v8  ;;  %v956_v14 = vpop.f32.mrb[55].mxu0  ;;  %v1084_v15 = vpop.f32.mrb[55].mxu1 }
 0x176   : > { %v1871_v16 = vpack.c.bf16 %v955_v12, %v952_v9  ;;  %v1951_v17 = vpack.c.bf16 %v1083_v13, %v1080_v11 }
 0x178   : > { %1975 = vst [vmem:[%s2339_s30 + $0x68] sm:$0xff] %v1871_v16   ;;  %1991 = vst [vmem:[%s2339_s30 + $0xe8] sm:$0xff] %v1951_v17  }
 0x179   : > { %v959_v18 = vpop.f32.mrb[56].mxu0  ;;  %v1087_v19 = vpop.f32.mrb[56].mxu1 }
 0x17a   : > { %v961_v20 = vpop.f32.mrb[57].mxu0  ;;  %v1089_v21 = vpop.f32.mrb[57].mxu1  ;;  %v960_v24 = vadd.f32 %v2329_v10, %v959_v18  ;;  %v1088_v25 = vadd.f32 %v2329_v10, %v1087_v19 }
 0x17b   : > { %v962_v22 = vpop.f32.mrb[58].mxu0  ;;  %v1090_v23 = vpop.f32.mrb[58].mxu1 }
 0x17c   : > { %v963_v26 = vadd.f32 %v2329_v10, %v962_v22  ;;  %v1091_v27 = vadd.f32 %v2329_v10, %v1090_v23  ;;  %v964_v28 = vpop.f32.mrb[59].mxu0  ;;  %v1092_v29 = vpop.f32.mrb[59].mxu1 }
 0x17e   : > { %v1876_v30 = vpack.c.bf16 %v963_v26, %v960_v24  ;;  %v1956_v31 = vpack.c.bf16 %v1091_v27, %v1088_v25 }
 0x180   : > { %1976 = vst [vmem:[%s2339_s30 + $0x70] sm:$0xff] %v1876_v30   ;;  %1992 = vst [vmem:[%s2339_s30 + $0xf0] sm:$0xff] %v1956_v31  }
 0x181   : > { %v967_v32 = vpop.f32.mrb[60].mxu0  ;;  %v1095_v33 = vpop.f32.mrb[60].mxu1 }
 0x182   : > { %v969_v34 = vpop.f32.mrb[61].mxu0  ;;  %v1097_v35 = vpop.f32.mrb[61].mxu1  ;;  %v968_v38 = vadd.f32 %v2329_v10, %v967_v32  ;;  %v1096_v39 = vadd.f32 %v2329_v10, %v1095_v33 }
 0x183   : > { %v970_v36 = vpop.f32.mrb[62].mxu0  ;;  %v1098_v37 = vpop.f32.mrb[62].mxu1 }
 0x184   : > { %v971_v40 = vadd.f32 %v2329_v10, %v970_v36  ;;  %v1099_v41 = vadd.f32 %v2329_v10, %v1098_v37  ;;  %v972_v42 = vpop.f32.mrb[63].mxu0  ;;  %v1100_v43 = vpop.f32.mrb[63].mxu1 }
 0x186   : > { %v1881_v44 = vpack.c.bf16 %v971_v40, %v968_v38  ;;  %v1961_v45 = vpack.c.bf16 %v1099_v41, %v1096_v39 }
 0x188   : > { %1977 = vst [vmem:[%s2339_s30 + $0x78] sm:$0xff] %v1881_v44   ;;  %1993 = vst [vmem:[%s2339_s30 + $0xf8] sm:$0xff] %v1961_v45  }
 0x189 PF: > { %s13_s14 = sadd.s32 1, %s2165_s14   ;;  %s2446_s12 = smov %s2161_s13 }
 0x18a   : > { %p10_p5 = scmp.ge.s32.totalorder %s13_s14, 4   ;;  %s2447_s13 = smov %s2449_s15 }
 0x18c   :  { %12 = sbr.rel (!%p10_p5) target bundleno = 2 (0x2), region = 68 }

// kernel: up_forward.9
= control target key start
LH: loop header
LB: loop body
LE: loop exit
PB: predicated region body
PF: predicated region fallthrough
CT: control target
= control target key end

     0   :  { %s1181_s6 = smov 0   ;;  %s1183_s7 = smov 0   ;;  %s2698_s0 = inlined_call_operand.vmem [shape: bf16[512,8], index: 0, kind: input, shape index: {}]   ;;  %s2699_s1 = inlined_call_operand.vmem [shape: f32[2,2,8], index: 1, kind: output, shape index: {}]  }
   0x1   :  { %s1185_s8 = smov 0  }
   0x2 LB: > { %s23_s9 = sadd.s32 1, %s1164_s7  ;;  %p955_p0 = scmp.ge.s32.totalorder %s1168_s8, 1  ;;  %s1168_s8 = sphi %s1185_s8, %s11_s8   ;;  %s1164_s7 = sphi %s1183_s7, %s3276_s7   ;;  %s1160_s6 = sphi %s1181_s6, %s3275_s6  }
   0x3   : > { %p25_p1 = scmp.ge.s32.totalorder %s23_s9, 2  ;;  %p116_p2 = scmp.lt.s32.totalorder %s1168_s8, 3 }
   0x5   : > { %s3278_s9 = smov (%p25_p1, %s23_s9), 0  ;;  %p117_p3 = pnand %p955_p0, %p116_p2 }
   0x7   : > { %120 = sbr.rel (%p117_p3) target bundleno = 309 (0x135), region = 24 }
   0xe   : > { %p141_p4 = scmp.lt.s32.totalorder %s1160_s6, 0  ;;  %p153_p5 = scmp.lt.s32.totalorder %s1160_s6, 1  ;;  %vm161_vm0 = vcmask 58368   ;;  %v1170_v0 = vmov 0.0   ;;  %v294_v1 = vlaneseq }
   0xf   : > { %s959_s17 = sshll.u32 %s1160_s6, 9 }
  0x10   : > { %s142_s10 = scalar_select %p141_p4, %s1160_s6, 0  ;;  %v1205_v2 = vshrl.u32 %v294_v1, 7  ;;  %v1210_v4 = vstv %s959_s17 }
  0x11   : > { %s154_s11 = scalar_select %p153_p5, %s1160_s6, 1 }
  0x12   : > { %s956_s16 = sshll.u32 %s142_s10, 6  ;;  %v1208_v3 = vadd.s32 8, %v1205_v2  ;;  %v1213_v5 = vadd.s32 16, %v1205_v2  ;;  %v1216_v6 = vadd.s32 24, %v1205_v2  ;;  %v1219_v7 = vadd.s32 32, %v1205_v2 }
  0x13   : > { %s958_s12 = sshll.u32 %s154_s11, 1  ;;  %p144_p6 = scmp.lt.s32.totalorder %s956_s16, 63  ;;  %v1222_v8 = vadd.s32 40, %v1205_v2  ;;  %v1230_v9 = vadd.s32 48, %v1205_v2  ;;  %v1233_v10 = vadd.s32 56, %v1205_v2  ;;  %v1236_v11 = vadd.s32 64, %v1205_v2 }
  0x14   : > { %s1202_s15 = scalar_lea.vmem %s2699_s1, %s958_s12  ;;  %v1239_v12 = vadd.s32 72, %v1205_v2  ;;  %v1242_v13 = vadd.s32 80, %v1205_v2  ;;  %v1245_v14 = vadd.s32 88, %v1205_v2  ;;  %v1248_v15 = vadd.s32 96, %v1205_v2 }
  0x15   : > { %162 = vst.msk [vmem:[%s1202_s15] sm:$0x3] %vm161_vm0, %v1170_v0  ;;  %s3280_s16 = smov (!%p144_p6, %s956_s16), 63  ;;  %v1251_v16 = vadd.s32 104, %v1205_v2  ;;  %v1254_v17 = vadd.s32 112, %v1205_v2  ;;  %v1257_v18 = vadd.s32 120, %v1205_v2  ;;  %v1331_v43 = vadd.s32 %v1210_v4, %v1205_v2 }
  0x16   : > { %s957_s18 = sshll.u32 %s3280_s16, 2  ;;  %v1260_v19 = vadd.s32 128, %v1205_v2  ;;  %v1263_v20 = vadd.s32 136, %v1205_v2  ;;  %v1269_v22 = vadd.s32 144, %v1205_v2  ;;  %v1272_v23 = vadd.s32 152, %v1205_v2 }
  0x17   : > { %s1227_s21 = scalar_lea.vmem %s2698_s0, %s957_s18  ;;  %v1275_v24 = vadd.s32 160, %v1205_v2  ;;  %v1278_v25 = vadd.s32 168, %v1205_v2  ;;  %v1287_v28 = vadd.s32 176, %v1205_v2  ;;  %v1290_v29 = vadd.s32 184, %v1205_v2  ;;  %2823 = vst [vmem:[#allocation15_spill] sm:$0xff] %v1331_v43 }
  0x18   : > { %v1266_v21 = vld [vmem:[%s1227_s21] sm:$0xff]   ;;  %v1281_v26 = vld [vmem:[%s1227_s21 + $0x8] sm:$0xff]   ;;  %v1284_v27 = vld [vmem:[%s1227_s21 + $0x10] sm:$0xff]   ;;  %v1293_v30 = vadd.s32 192, %v1205_v2  ;;  %v1296_v31 = vadd.s32 200, %v1205_v2  ;;  %v1305_v34 = vadd.s32 208, %v1205_v2 }
  0x19   : > { %2810 = vst [vmem:[#allocation2_spill] sm:$0xff] %v1266_v21  ;;  %2811 = vst [vmem:[#allocation3_spill] sm:$0xff] %v1281_v26  ;;  %v1299_v32 = vld [vmem:[%s1227_s21 + $0x18] sm:$0xff]   ;;  %v1302_v33 = vld [vmem:[%s1227_s21 + $0x20] sm:$0xff]   ;;  %v1308_v35 = vadd.s32 216, %v1205_v2  ;;  %v1311_v36 = vadd.s32 224, %v1205_v2 }
  0x1a   : > { %2812 = vst [vmem:[#allocation4_spill] sm:$0xff] %v1284_v27  ;;  %2813 = vst [vmem:[#allocation5_spill] sm:$0xff] %v1299_v32  ;;  %v1314_v37 = vadd.s32 232, %v1205_v2  ;;  %v1318_v39 = vld [vmem:[%s1227_s21 + $0x28] sm:$0xff]   ;;  %v1321_v40 = vld [vmem:[%s1227_s21 + $0x30] sm:$0xff]   ;;  %v1324_v41 = vadd.s32 240, %v1205_v2 }
  0x1b   : > { %2814 = vst [vmem:[#allocation6_spill] sm:$0xff] %v1302_v33  ;;  %2815 = vst [vmem:[#allocation7_spill] sm:$0xff] %v1305_v34  ;;  %v1327_v42 = vadd.s32 248, %v1205_v2  ;;  %v1338_v48 = vld [vmem:[%s1227_s21 + $0x38] sm:$0xff]   ;;  %v1341_v49 = vld [vmem:[%s1227_s21 + $0x40] sm:$0xff]   ;;  %v328_v50 = vadd.s32 264, %v1205_v2 }
  0x1c   : > { %2816 = vst [vmem:[#allocation8_spill] sm:$0xff] %v1308_v35  ;;  %2817 = vst [vmem:[#allocation9_spill] sm:$0xff] %v1311_v36  ;;  %v1348_v54 = vld [vmem:[%s1227_s21 + $0x48] sm:$0xff]   ;;  %v1351_v55 = vld [vmem:[%s1227_s21 + $0x50] sm:$0xff]   ;;  %v329_v58 = vadd.s32 272, %v1205_v2  ;;  %v330_v59 = vadd.s32 280, %v1205_v2 }
  0x1d   : > { %2818 = vst [vmem:[#allocation10_spill] sm:$0xff] %v1314_v37  ;;  %2819 = vst [vmem:[#allocation11_spill] sm:$0xff] %v1318_v39  ;;  %v1358_v60 = vld [vmem:[%s1227_s21 + $0x58] sm:$0xff]   ;;  %v1361_v61 = vld [vmem:[%s1227_s21 + $0x60] sm:$0xff]   ;;  %v331_v53 = vadd.s32 288, %v1205_v2  ;;  %v332_v52 = vadd.s32 296, %v1205_v2 }
  0x1e   : > { %2820 = vst [vmem:[#allocation12_spill] sm:$0xff] %v1321_v40  ;;  %2821 = vst [vmem:[#allocation13_spill] sm:$0xff] %v1324_v41  ;;  %v1368_v56 = vld [vmem:[%s1227_s21 + $0x68] sm:$0xff]   ;;  %v1371_v57 = vld [vmem:[%s1227_s21 + $0x70] sm:$0xff]   ;;  %v333_v47 = vadd.s32 304, %v1205_v2  ;;  %v334_v46 = vadd.s32 312, %v1205_v2  ;;  %v1431_v41 = vadd.s32 %v1210_v4, %v329_v58  ;;  %v1434_v37 = vadd.s32 %v1210_v4, %v330_v59 }
  0x1f   : > { %2822 = vst [vmem:[#allocation14_spill] sm:$0xff] %v1327_v42  ;;  %2824 = vst [vmem:[#allocation16_spill] sm:$0xff] %v1338_v48  ;;  %v1378_v51 = vld [vmem:[%s1227_s21 + $0x78] sm:$0xff]   ;;  %v1381_v62 = vld [vmem:[%s1227_s21 + $0x80] sm:$0xff]   ;;  %v335_v0 = vadd.s32 320, %v1205_v2  ;;  %v336_v1 = vadd.s32 328, %v1205_v2  ;;  %v1428_v42 = vadd.s32 %v1210_v4, %v328_v50  ;;  %v1437_v36 = vadd.s32 %v1210_v4, %v331_v53 }
  0x20   : > { %2825 = vst [vmem:[#allocation17_spill] sm:$0xff] %v1341_v49  ;;  %2826 = vst [vmem:[#allocation18_spill] sm:$0xff] %v1348_v54  ;;  %v337_v63 = vadd.s32 336, %v1205_v2  ;;  %v338_v45 = vadd.s32 344, %v1205_v2  ;;  %v339_v44 = vadd.s32 352, %v1205_v2  ;;  %v340_v38 = vadd.s32 360, %v1205_v2 }
  0x21   : > { %2827 = vst [vmem:[#allocation19_spill] sm:$0xff] %v1351_v55  ;;  %2828 = vst [vmem:[#allocation20_spill] sm:$0xff] %v1358_v60  ;;  %v345_v60 = vadd.s32 400, %v1205_v2  ;;  %v346_v55 = vadd.s32 408, %v1205_v2  ;;  %v347_v54 = vadd.s32 416, %v1205_v2  ;;  %v348_v49 = vadd.s32 424, %v1205_v2 }
  0x22   : > { %2829 = vst [vmem:[#allocation21_spill] sm:$0xff] %v1361_v61  ;;  %2830 = vst [vmem:[#allocation22_spill] sm:$0xff] %v1368_v56  ;;  %v343_v56 = vadd.s32 384, %v1205_v2  ;;  %v344_v61 = vadd.s32 392, %v1205_v2  ;;  %v349_v48 = vadd.s32 432, %v1205_v2  ;;  %v351_v40 = vadd.s32 448, %v1205_v2 }
  0x23   : > { %2831 = vst [vmem:[#allocation23_spill] sm:$0xff] %v1371_v57  ;;  %2832 = vst [vmem:[#allocation24_spill] sm:$0xff] %v1378_v51  ;;  %v341_v51 = vadd.s32 368, %v1205_v2  ;;  %v342_v57 = vadd.s32 376, %v1205_v2  ;;  %v352_v39 = vadd.s32 456, %v1205_v2  ;;  %v353_v33 = vadd.s32 464, %v1205_v2 }
  0x24   : > { %2833 = vst [vmem:[#allocation25_spill] sm:$0xff] %v1381_v62  ;;  %v350_v62 = vadd.s32 440, %v1205_v2  ;;  %v354_v32 = vadd.s32 472, %v1205_v2  ;;  %v355_v27 = vadd.s32 480, %v1205_v2  ;;  %v356_v26 = vadd.s32 488, %v1205_v2  ;;  %2834 = vst [vmem:[#allocation26_spill] sm:$0xff] %v1428_v42 }
  0x25   : > { %v357_v21 = vadd.s32 496, %v1205_v2  ;;  %v358_v43 = vadd.s32 504, %v1205_v2  ;;  %v1440_v35 = vadd.s32 %v1210_v4, %v332_v52  ;;  %v1443_v34 = vadd.s32 %v1210_v4, %v333_v47  ;;  %v1476_v42 = vld [vmem:[%s1227_s21 + $0x88] sm:$0xff]  }
  0x26   : > { %v1446_v50 = vadd.s32 %v1210_v4, %v334_v46  ;;  %v1449_v58 = vadd.s32 %v1210_v4, %v335_v0  ;;  %v1452_v59 = vadd.s32 %v1210_v4, %v336_v1  ;;  %v1455_v53 = vadd.s32 %v1210_v4, %v337_v63  ;;  %2836 = vst [vmem:[#allocation28_spill] sm:$0xff] %v1476_v42 }
  0x27   : > { %v1458_v52 = vadd.s32 %v1210_v4, %v338_v45  ;;  %v1461_v47 = vadd.s32 %v1210_v4, %v339_v44  ;;  %v1464_v46 = vadd.s32 %v1210_v4, %v340_v38  ;;  %v1467_v0 = vadd.s32 %v1210_v4, %v341_v51 }
  0x28   : > { %v1470_v1 = vadd.s32 %v1210_v4, %v342_v57  ;;  %v1473_v63 = vadd.s32 %v1210_v4, %v343_v56  ;;  %v1479_v45 = vadd.s32 %v1210_v4, %v344_v61  ;;  %v1482_v44 = vadd.s32 %v1210_v4, %v345_v60  ;;  %v1491_v57 = vld [vmem:[%s1227_s21 + $0x90] sm:$0xff]   ;;  %v1494_v56 = vld [vmem:[%s1227_s21 + $0x98] sm:$0xff]  }
  0x29   : > { %v1485_v38 = vadd.s32 %v1210_v4, %v346_v55  ;;  %v1488_v51 = vadd.s32 %v1210_v4, %v347_v54  ;;  %2839 = vst [vmem:[#allocation31_spill] sm:$0xff] %v1491_v57  ;;  %2840 = vst [vmem:[#allocation32_spill] sm:$0xff] %v1494_v56  ;;  %v1500_v61 = vadd.s32 %v1210_v4, %v349_v48  ;;  %v1512_v54 = vld [vmem:[%s1227_s21 + $0xa8] sm:$0xff]   ;;  %v1567_v56 = vld [vmem:[%s1227_s21 + $0xe0] sm:$0xff]   ;;  %vm458_vm4 = vcmp.lt.s32.totalorder %v1431_v41, 512 }
  0x2a   : > { %2835 = vst [vmem:[#allocation27_spill] sm:$0xff] %v1473_v63  ;;  %v1497_v63 = vadd.s32 %v1210_v4, %v348_v49  ;;  %v1503_v60 = vadd.s32 %v1210_v4, %v350_v62  ;;  %v1506_v55 = vadd.s32 %v1210_v4, %v351_v40  ;;  %v1518_v49 = vadd.s32 %v1210_v4, %v353_v33  ;;  %v1557_v40 = vld [vmem:[%s1227_s21 + $0xd0] sm:$0xff]  }
  0x2b   : > { %2837 = vst [vmem:[#allocation29_spill] sm:$0xff] %v1485_v38  ;;  %2838 = vst [vmem:[#allocation30_spill] sm:$0xff] %v1488_v51  ;;  %v1509_v38 = vld [vmem:[%s1227_s21 + $0xa0] sm:$0xff]   ;;  %v1515_v51 = vadd.s32 %v1210_v4, %v352_v39  ;;  %v1521_v48 = vadd.s32 %v1210_v4, %v354_v32  ;;  %v1524_v62 = vadd.s32 %v1210_v4, %v355_v27  ;;  %v2868_v57 = vld [vmem:[#allocation8_spill] sm:$0xff]  ;;  %vm459_vm5 = vcmp.lt.s32.totalorder %v1434_v37, 512 }
  0x2c   : > { %2841 = vst [vmem:[#allocation33_spill] sm:$0xff] %v1503_v60  ;;  %2842 = vst [vmem:[#allocation34_spill] sm:$0xff] %v1506_v55  ;;  %v1528_v55 = vld [vmem:[%s1227_s21 + $0xb0] sm:$0xff]   ;;  %v1531_v60 = vld [vmem:[%s1227_s21 + $0xb8] sm:$0xff]   ;;  %v1534_v39 = vadd.s32 %v1210_v4, %v356_v26  ;;  %v1537_v33 = vadd.s32 %v1210_v4, %v357_v21  ;;  %v1540_v32 = vadd.s32 %v1210_v4, %v358_v43  ;;  %vm477_vm13 = vcmp.lt.s32.totalorder %v1497_v63, 512 }
  0x2d   : > { %2843 = vst [vmem:[#allocation35_spill] sm:$0xff] %v1509_v38  ;;  %2844 = vst [vmem:[#allocation36_spill] sm:$0xff] %v1518_v49  ;;  %v1547_v49 = vld [vmem:[%s1227_s21 + $0xc0] sm:$0xff]   ;;  %v1550_v26 = vld [vmem:[%s1227_s21 + $0xc8] sm:$0xff]   ;;  %v1600_v42 = vadd.s32 %v1210_v4, %v1208_v3  ;;  %v1612_v21 = vadd.s32 %v1210_v4, %v1219_v7  ;;  %v1620_v3 = vadd.s32 %v1210_v4, %v1230_v9  ;;  %vm481_vm7 = vcmp.lt.s32.totalorder %v1515_v51, 512 }
  0x2e   : > { %2845 = vst [vmem:[#allocation37_spill] sm:$0xff] %v1521_v48  ;;  %2846 = vst [vmem:[#allocation38_spill] sm:$0xff] %v1524_v62  ;;  %v1570_v43 = vld [vmem:[%s1227_s21 + $0xe8] sm:$0xff]   ;;  %v1580_v48 = vld [vmem:[%s1227_s21 + $0xf8] sm:$0xff]   ;;  %v1632_v7 = vadd.s32 %v1210_v4, %v1239_v12  ;;  %v1640_v9 = vadd.s32 %v1210_v4, %v1245_v14  ;;  %v1652_v12 = vadd.s32 %v1210_v4, %v1254_v17  ;;  %v2950_v63 = vunpack.c.h.bf16 %v1567_v56 }
  0x2f   : > { %2847 = vst [vmem:[#allocation39_spill] sm:$0xff] %v1528_v55  ;;  %2848 = vst [vmem:[#allocation40_spill] sm:$0xff] %v1531_v60  ;;  %v1596_v55 = vadd.s32 256, %v1205_v2  ;;  %v1608_v60 = vadd.s32 %v1210_v4, %v1216_v6  ;;  %v1616_v2 = vadd.s32 %v1210_v4, %v1222_v8  ;;  %v1628_v6 = vadd.s32 %v1210_v4, %v1236_v11  ;;  %v2866_v62 = vld [vmem:[#allocation7_spill] sm:$0xff]  ;;  %v2872_v38 = vld [vmem:[#allocation10_spill] sm:$0xff] }
  0x30   : > { %2849 = vst [vmem:[#allocation41_spill] sm:$0xff] %v1534_v39  ;;  %2850 = vst [vmem:[#allocation42_spill] sm:$0xff] %v1537_v33  ;;  %v1577_v39 = vld [vmem:[%s1227_s21 + $0xf0] sm:$0xff]   ;;  %v1604_v33 = vadd.s32 %v1210_v4, %v1213_v5  ;;  %v1624_v5 = vadd.s32 %v1210_v4, %v1233_v10  ;;  %v1636_v8 = vadd.s32 %v1210_v4, %v1242_v13  ;;  %v2874_v27 = vld [vmem:[#allocation13_spill] sm:$0xff]  ;;  %vm425_vm2 = vcmp.lt.s32.totalorder %v1600_v42, 512 }
  0x31   : > { %2851 = vst [vmem:[#allocation43_spill] sm:$0xff] %v1540_v32  ;;  %2852 = vst [vmem:[#allocation44_spill] sm:$0xff] %v1547_v49  ;;  %v1560_v32 = vld [vmem:[%s1227_s21 + $0xd8] sm:$0xff]   ;;  %v1644_v10 = vadd.s32 %v1210_v4, %v1248_v15  ;;  %v1648_v11 = vadd.s32 %v1210_v4, %v1251_v16  ;;  %v1656_v13 = vadd.s32 %v1210_v4, %v1257_v18  ;;  %vm427_vm8 = vcmp.lt.s32.totalorder %v1608_v60, 512  ;;  %v2900_v42 = vld [vmem:[#allocation31_spill] sm:$0xff] }
  0x32   : > { %2854 = vst [vmem:[#allocation46_spill] sm:$0xff] %v1652_v12  ;;  %v1660_v14 = vadd.s32 %v1210_v4, %v1260_v19  ;;  %v1664_v15 = vadd.s32 %v1210_v4, %v1263_v20  ;;  %v1668_v16 = vadd.s32 %v1210_v4, %v1269_v22  ;;  %v1672_v17 = vadd.s32 %v1210_v4, %v1272_v23  ;;  %v2870_v49 = vld [vmem:[#allocation9_spill] sm:$0xff]  ;;  %v2906_v41 = vld [vmem:[#allocation32_spill] sm:$0xff] }
  0x33   : > { %2853 = vst [vmem:[#allocation45_spill] sm:$0xff] %v1648_v11  ;;  %2855 = vst [vmem:[#allocation47_spill] sm:$0xff] %v1656_v13  ;;  %v1676_v18 = vadd.s32 %v1210_v4, %v1275_v24  ;;  %v1680_v19 = vadd.s32 %v1210_v4, %v1278_v25  ;;  %v1684_v20 = vadd.s32 %v1210_v4, %v1287_v28  ;;  %vm426_vm3 = vcmp.lt.s32.totalorder %v1604_v33, 512  ;;  %v2895_v13 = vld [vmem:[#allocation28_spill] sm:$0xff] }
  0x34   : > { %2856 = vst [vmem:[#allocation48_spill] sm:$0xff] %v1660_v14  ;;  %2857 = vst [vmem:[#allocation49_spill] sm:$0xff] %v1664_v15  ;;  %v1688_v22 = vadd.s32 %v1210_v4, %v1290_v29  ;;  %v1692_v23 = vadd.s32 %v1210_v4, %v1293_v30  ;;  %v1696_v24 = vadd.s32 %v1210_v4, %v1296_v31  ;;  %v2896_v12 = vunpack.c.l.bf16 %v2895_v13 }
  0x35   : > { %2858 = vst [vmem:[#allocation50_spill] sm:$0xff] %v1668_v16  ;;  %2859 = vst [vmem:[#allocation51_spill] sm:$0xff] %v1672_v17  ;;  %v1700_v25 = vadd.s32 %v1210_v4, %v2866_v62  ;;  %v1704_v28 = vadd.s32 %v1210_v4, %v2868_v57  ;;  %v1708_v29 = vadd.s32 %v1210_v4, %v2870_v49  ;;  %v2880_v57 = vld [vmem:[#allocation29_spill] sm:$0xff]  ;;  %v2881_v49 = vld [vmem:[#allocation30_spill] sm:$0xff]  ;;  %v2904_v33 = vunpack.c.h.bf16 %v2900_v42 }
  0x36   : > { %2860 = vst [vmem:[#allocation52_spill] sm:$0xff] %v1676_v18  ;;  %2861 = vst [vmem:[#allocation53_spill] sm:$0xff] %v1680_v19  ;;  %v1712_v30 = vadd.s32 %v1210_v4, %v2872_v38  ;;  %v1716_v31 = vadd.s32 %v1210_v4, %v2874_v27  ;;  %v2879_v38 = vld [vmem:[#allocation27_spill] sm:$0xff]  ;;  %v2882_v27 = vld [vmem:[#allocation33_spill] sm:$0xff]  ;;  %v1778_v11 = vsel %vm458_vm4, %v2896_v12, 0.0  ;;  %v2907_v12 = vunpack.c.l.bf16 %v2906_v41 }
  0x37   : > { %2862 = vst [vmem:[#allocation54_spill] sm:$0xff] %v1684_v20  ;;  %2863 = vst [vmem:[#allocation55_spill] sm:$0xff] %v1688_v22  ;;  %vm479_vm15 = vcmp.lt.s32.totalorder %v2882_v27, 512  ;;  %v2890_v22 = vld [vmem:[#allocation2_spill] sm:$0xff]  ;;  %v2893_v16 = vld [vmem:[#allocation3_spill] sm:$0xff]  ;;  %v2910_v37 = vunpack.c.h.bf16 %v2906_v41  ;;  %vm2911_vm4 = vcmp.lt.s32.totalorder %v1446_v50, 512  ;;  %v2922_v50 = vunpack.c.h.bf16 %v1512_v54 }
  0x38   : > { %2864 = vst [vmem:[#allocation56_spill] sm:$0xff] %v1692_v23  ;;  %2865 = vst [vmem:[#allocation57_spill] sm:$0xff] %v1696_v24  ;;  %v2876_v24 = vld [vmem:[#allocation14_spill] sm:$0xff]  ;;  %v2889_v23 = vld [vmem:[#allocation43_spill] sm:$0xff]  ;;  %v2891_v20 = vunpack.c.l.bf16 %v2890_v22  ;;  %v2892_v18 = vunpack.c.h.bf16 %v2890_v22  ;;  %v2894_v15 = vunpack.c.l.bf16 %v2893_v16  ;;  %v2952_v27 = vunpack.c.h.bf16 %v1570_v43 }
  0x39   : > { %2867 = vst [vmem:[#allocation7_spill] sm:$0xff] %v1700_v25  ;;  %2869 = vst [vmem:[#allocation8_spill] sm:$0xff] %v1704_v28  ;;  %v1720_v62 = vadd.s32 %v1210_v4, %v2876_v24  ;;  %v2878_v25 = vld [vmem:[#allocation15_spill] sm:$0xff]  ;;  %v2883_v24 = vld [vmem:[#allocation34_spill] sm:$0xff]  ;;  %vm487_vm14 = vcmp.lt.s32.totalorder %v2889_v23, 512  ;;  %v2954_v51 = vunpack.c.h.bf16 %v1577_v39 }
  0x3a   : > { %2871 = vst [vmem:[#allocation9_spill] sm:$0xff] %v1708_v29  ;;  %2873 = vst [vmem:[#allocation10_spill] sm:$0xff] %v1712_v30  ;;  %vm424_vm1 = vcmp.lt.s32.totalorder %v2878_v25, 512  ;;  %vm480_vm0 = vcmp.lt.s32.totalorder %v2883_v24, 512  ;;  %v2886_v30 = vld [vmem:[#allocation38_spill] sm:$0xff]  ;;  %v2887_v29 = vld [vmem:[#allocation41_spill] sm:$0xff]  ;;  %v2953_v24 = vunpack.c.l.bf16 %v1577_v39  ;;  %v1958_v39 = vadd.s32 %v1210_v4, %v1596_v55 }
  0x3b   : > { %2875 = vst [vmem:[#allocation13_spill] sm:$0xff] %v1716_v31  ;;  %2877 = vst [vmem:[#allocation14_spill] sm:$0xff] %v1720_v62  ;;  %v2884_v62 = vld [vmem:[#allocation36_spill] sm:$0xff]  ;;  %v2885_v31 = vld [vmem:[#allocation37_spill] sm:$0xff]  ;;  %vm484_vm11 = vcmp.lt.s32.totalorder %v2886_v30, 512  ;;  %vm485_vm12 = vcmp.lt.s32.totalorder %v2887_v29, 512 }
  0x3c   : > { %vm482_vm9 = vcmp.lt.s32.totalorder %v2884_v62, 512  ;;  %vm483_vm10 = vcmp.lt.s32.totalorder %v2885_v31, 512  ;;  %v2888_v28 = vld [vmem:[#allocation42_spill] sm:$0xff]  ;;  %v1760_v19 = vsel %vm424_vm1, %v2891_v20, 0.0  ;;  %v1766_v17 = vsel %vm425_vm2, %v2892_v18, 0.0  ;;  %2897 = vst [vmem:[#allocation15_spill] sm:$0xff] %v1778_v11 }
  0x3d   : > { %vm486_vm6 = vcmp.lt.s32.totalorder %v2888_v28, 512  ;;  %v1772_v14 = vsel %vm426_vm3, %v2894_v15, 0.0  ;;  %v2898_v20 = vunpack.c.h.bf16 %v2895_v13  ;;  %v2901_v18 = vunpack.c.l.bf16 %v2900_v42  ;;  %2960 = vst [vmem:[#allocation41_spill] sm:$0xff] %v1958_v39 }
  0x3e   : > { %vm2902_vm1 = vcmp.lt.s32.totalorder %v1437_v36, 512  ;;  %vm2905_vm2 = vcmp.lt.s32.totalorder %v1440_v35, 512  ;;  %vm2908_vm3 = vcmp.lt.s32.totalorder %v1443_v34, 512  ;;  %v2913_v36 = vld [vmem:[#allocation35_spill] sm:$0xff]  ;;  %v2919_v34 = vunpack.c.l.bf16 %v1512_v54 }
  0x3f   : > { %v1784_v22 = vsel %vm459_vm5, %v2898_v20, 0.0  ;;  %v1790_v25 = vsel %vm2902_vm1, %v2901_v18, 0.0  ;;  %v1796_v15 = vsel %vm2905_vm2, %v2904_v33, 0.0  ;;  %v1802_v13 = vsel %vm2908_vm3, %v2907_v12, 0.0 }
  0x40   : > { %2899 = vst [vmem:[#allocation27_spill] sm:$0xff] %v1784_v22  ;;  %2903 = vst [vmem:[#allocation29_spill] sm:$0xff] %v1790_v25  ;;  %v1808_v20 = vsel %vm2911_vm4, %v2910_v37, 0.0  ;;  %v2914_v18 = vunpack.c.l.bf16 %v2913_v36  ;;  %vm2915_vm5 = vcmp.lt.s32.totalorder %v1449_v58, 512  ;;  %v2916_v35 = vunpack.c.h.bf16 %v2913_v36  ;;  %v2924_v58 = vld [vmem:[#allocation39_spill] sm:$0xff] }
  0x41   : > { %2909 = vst [vmem:[#allocation30_spill] sm:$0xff] %v1802_v13  ;;  %2912 = vst [vmem:[#allocation33_spill] sm:$0xff] %v1808_v20  ;;  %vm2917_vm1 = vcmp.lt.s32.totalorder %v1452_v59, 512  ;;  %vm2920_vm2 = vcmp.lt.s32.totalorder %v1455_v53, 512  ;;  %vm2923_vm3 = vcmp.lt.s32.totalorder %v1458_v52, 512  ;;  %v2925_v37 = vunpack.c.l.bf16 %v2924_v58  ;;  %v2929_v53 = vld [vmem:[#allocation40_spill] sm:$0xff] }
  0x42   : > { %v1814_v42 = vsel %vm2915_vm5, %v2914_v18, 0.0  ;;  %v1820_v33 = vsel %vm2917_vm1, %v2916_v35, 0.0  ;;  %v1826_v41 = vsel %vm2920_vm2, %v2919_v34, 0.0  ;;  %v1832_v12 = vsel %vm2923_vm3, %v2922_v50, 0.0 }
  0x43   : > { %2918 = vst [vmem:[#allocation34_spill] sm:$0xff] %v1820_v33  ;;  %2921 = vst [vmem:[#allocation36_spill] sm:$0xff] %v1826_v41  ;;  %vm2926_vm4 = vcmp.lt.s32.totalorder %v1461_v47, 512  ;;  %v2927_v59 = vunpack.c.h.bf16 %v2924_v58  ;;  %vm2928_vm5 = vcmp.lt.s32.totalorder %v1464_v46, 512  ;;  %v2930_v35 = vunpack.c.l.bf16 %v2929_v53  ;;  %v2934_v47 = vld [vmem:[#allocation44_spill] sm:$0xff] }
  0x44   : > { %v1838_v36 = vsel %vm2926_vm4, %v2925_v37, 0.0  ;;  %vm2931_vm1 = vcmp.lt.s32.totalorder %v1467_v0, 512  ;;  %v2932_v52 = vunpack.c.h.bf16 %v2929_v53  ;;  %vm2933_vm2 = vcmp.lt.s32.totalorder %v1470_v1, 512 }
  0x45   : > { %v1844_v18 = vsel %vm2928_vm5, %v2927_v59, 0.0  ;;  %v1850_v54 = vsel %vm2931_vm1, %v2930_v35, 0.0  ;;  %v2935_v50 = vunpack.c.l.bf16 %v2934_v47  ;;  %vm2936_vm3 = vcmp.lt.s32.totalorder %v2879_v38, 512 }
  0x46   : > { %v1856_v34 = vsel %vm2933_vm2, %v2932_v52, 0.0  ;;  %v2937_v46 = vunpack.c.h.bf16 %v2934_v47  ;;  %vm2938_vm4 = vcmp.lt.s32.totalorder %v1479_v45, 512  ;;  %v2939_v0 = vunpack.c.l.bf16 %v1550_v26 }
  0x47   : > { %v1862_v58 = vsel %vm2936_vm3, %v2935_v50, 0.0  ;;  %vm2940_vm5 = vcmp.lt.s32.totalorder %v1482_v44, 512  ;;  %v2941_v1 = vunpack.c.h.bf16 %v1550_v26  ;;  %vm2942_vm1 = vcmp.lt.s32.totalorder %v2880_v57, 512 }
  0x48   : > { %v1868_v37 = vsel %vm2938_vm4, %v2937_v46, 0.0  ;;  %v1874_v59 = vsel %vm2940_vm5, %v2939_v0, 0.0  ;;  %v2943_v38 = vunpack.c.l.bf16 %v1557_v40  ;;  %vm2944_vm2 = vcmp.lt.s32.totalorder %v2881_v49, 512 }
  0x49   : > { %v1880_v53 = vsel %vm2942_vm1, %v2941_v1, 0.0  ;;  %v2945_v45 = vunpack.c.h.bf16 %v1557_v40  ;;  %v2946_v44 = vunpack.c.l.bf16 %v1560_v32  ;;  %vm2947_vm3 = vcmp.lt.s32.totalorder %v1500_v61, 512 }
  0x4a   : > { %v1886_v35 = vsel %vm2944_vm2, %v2943_v38, 0.0  ;;  %v2948_v57 = vunpack.c.h.bf16 %v1560_v32  ;;  %v2949_v49 = vunpack.c.l.bf16 %v1567_v56  ;;  %v1916_v50 = vsel %vm481_vm7, %v2950_v63, 0.0  ;;  %v2970_v38 = vld [vmem:[#allocation5_spill] sm:$0xff] }
  0x4b   : > { %v1892_v52 = vsel %vm477_vm13, %v2945_v45, 0.0  ;;  %v1898_v26 = vsel %vm2947_vm3, %v2946_v44, 0.0  ;;  %v2951_v61 = vunpack.c.l.bf16 %v1570_v43  ;;  %v1928_v46 = vsel %vm483_vm10, %v2952_v27, 0.0 }
  0x4c   : > { %v1904_v47 = vsel %vm479_vm15, %v2948_v57, 0.0  ;;  %v1910_v40 = vsel %vm480_vm0, %v2949_v49, 0.0  ;;  %v1934_v56 = vsel %vm484_vm11, %v2953_v24, 0.0  ;;  %v1940_v0 = vsel %vm485_vm12, %v2954_v51, 0.0  ;;  %v2974_v57 = vld [vmem:[#allocation6_spill] sm:$0xff]  ;;  %v2979_v24 = vld [vmem:[#allocation11_spill] sm:$0xff] }
  0x4d   : > { %v1922_v32 = vsel %vm482_vm9, %v2951_v61, 0.0  ;;  %v2955_v62 = vunpack.c.l.bf16 %v1580_v48  ;;  %v2957_v31 = vunpack.c.h.bf16 %v1580_v48  ;;  %vm2959_vm7 = vcmask 64512  }
  0x4e   : > { %v554_v30 = vsel %vm2959_vm7, %v1760_v19, 0.0  ;;  %vm428_vm9 = vcmp.lt.s32.totalorder %v1612_v21, 512  ;;  %vm2961_vm10 = vmmov %vm2959_vm7  ;;  %vm429_vm11 = vcmp.lt.s32.totalorder %v1616_v2, 512  ;;  %vm430_vm12 = vcmp.lt.s32.totalorder %v1620_v3, 512  ;;  %v2965_v21 = vld [vmem:[#allocation4_spill] sm:$0xff] }
  0x4f   : > { %v1946_v43 = vsel %vm486_vm6, %v2955_v62, 0.0  ;;  %v1952_v1 = vsel %vm487_vm14, %v2957_v31, 0.0  ;;  %v555_v28 = vsel %vm2961_vm10, %v1766_v17, 0.0  ;;  %vm2962_vm6 = vmmov %vm2959_vm7  ;;  %v2963_v48 = vunpack.c.h.bf16 %v2893_v16  ;;  %v2967_v16 = vld [vmem:[#allocation26_spill] sm:$0xff] }
  0x50   : > { %2956 = vst [vmem:[#allocation37_spill] sm:$0xff] %v1946_v43  ;;  %2958 = vst [vmem:[#allocation38_spill] sm:$0xff] %v1952_v1  ;;  %v557_v29 = vsel %vm2962_vm6, %v1772_v14, 0.0  ;;  %v556_v4 = vadd.f32 %v555_v28, %v554_v30  ;;  %vm431_vm13 = vcmp.lt.s32.totalorder %v1624_v5, 512  ;;  %vm432_vm14 = vcmp.lt.s32.totalorder %v1628_v6, 512 }
  0x51   : > { %v1971_v23 = vsel %vm427_vm8, %v2963_v48, 0.0  ;;  %vm433_vm15 = vcmp.lt.s32.totalorder %v1632_v7, 512  ;;  %vm2964_vm0 = vmmov %vm2962_vm6  ;;  %vm434_vm4 = vcmp.lt.s32.totalorder %v1636_v8, 512  ;;  %vm435_vm5 = vcmp.lt.s32.totalorder %v1640_v9, 512  ;;  %v2985_v48 = vld [vmem:[#allocation46_spill] sm:$0xff] }
  0x52   : > { %v559_v55 = vsel %vm2964_vm0, %v1971_v23, 0.0  ;;  %v2966_v2 = vunpack.c.l.bf16 %v2965_v21  ;;  %v558_v60 = vadd.f32 %v557_v29, %v556_v4  ;;  %vm436_vm8 = vcmp.lt.s32.totalorder %v1644_v10, 512  ;;  %vm2969_vm2 = vmmov %vm2964_vm0  ;;  %v2984_v29 = vld [vmem:[#allocation45_spill] sm:$0xff]  ;;  %v2986_v4 = vld [vmem:[#allocation47_spill] sm:$0xff] }
  0x53   : > { %vm457_vm1 = vcmp.lt.s32.totalorder %v2967_v16, 512  ;;  %v2968_v5 = vunpack.c.h.bf16 %v2965_v21  ;;  %v2971_v8 = vunpack.c.l.bf16 %v2970_v38  ;;  %v2972_v9 = vunpack.c.h.bf16 %v2970_v38  ;;  %vm2983_vm3 = vmmov %vm2964_vm0 }
  0x54   : > { %v1982_v3 = vsel %vm428_vm9, %v2966_v2, 0.0  ;;  %v2975_v49 = vunpack.c.l.bf16 %v2974_v57  ;;  %v560_v63 = vadd.f32 %v559_v55, %v558_v60  ;;  %v2977_v61 = vunpack.c.h.bf16 %v2974_v57  ;;  %v2987_v55 = vld [vmem:[#allocation12_spill] sm:$0xff]  ;;  %v2989_v60 = vld [vmem:[#allocation25_spill] sm:$0xff]  ;;  %vm2991_vm6 = vmmov %vm2964_vm0 }
  0x55   : > { %v1988_v6 = vsel %vm429_vm11, %v2968_v5, 0.0  ;;  %v561_v7 = vsel %vm2969_vm2, %v1982_v3, 0.0  ;;  %v1994_v45 = vsel %vm430_vm12, %v2971_v8, 0.0  ;;  %v1998_v44 = vsel %vm431_vm13, %v2972_v9, 0.0  ;;  %v2992_v9 = vld [vmem:[#allocation48_spill] sm:$0xff]  ;;  %v2993_v57 = vld [vmem:[#allocation49_spill] sm:$0xff]  ;;  %vm3001_vm2 = vmmov %vm2964_vm0 }
  0x56   : > { %2973 = vst [vmem:[#allocation42_spill] sm:$0xff] %v1998_v44  ;;  %v2002_v10 = vsel %vm432_vm14, %v2975_v49, 0.0  ;;  %v2006_v27 = vsel %vm433_vm15, %v2977_v61, 0.0  ;;  %v2980_v51 = vunpack.c.l.bf16 %v2979_v24  ;;  %v2982_v31 = vunpack.c.h.bf16 %v2979_v24  ;;  %v2994_v49 = vld [vmem:[#allocation50_spill] sm:$0xff]  ;;  %vm2995_vm14 = vmmov %vm2964_vm0 }
  0x57   : > { %2976 = vst [vmem:[#allocation43_spill] sm:$0xff] %v2002_v10  ;;  %2978 = vst [vmem:[#allocation2_spill] sm:$0xff] %v2006_v27  ;;  %v563_v28 = vsel %vm2983_vm3, %v1988_v6, 0.0  ;;  %vm437_vm7 = vcmp.lt.s32.totalorder %v2984_v29, 512  ;;  %vm438_vm9 = vcmp.lt.s32.totalorder %v2985_v48, 512  ;;  %vm439_vm10 = vcmp.lt.s32.totalorder %v2986_v4, 512 }
  0x58   : > { %v2010_v62 = vsel %vm434_vm4, %v2980_v51, 0.0  ;;  %v2014_v30 = vsel %vm435_vm5, %v2982_v31, 0.0  ;;  %v2988_v21 = vunpack.c.l.bf16 %v2987_v55  ;;  %v2990_v16 = vunpack.c.h.bf16 %v2989_v60  ;;  %vm2996_vm15 = vmmov %vm2964_vm0  ;;  %v2999_v31 = vld [vmem:[#allocation52_spill] sm:$0xff] }
  0x59   : > { %2981 = vst [vmem:[#allocation3_spill] sm:$0xff] %v2010_v62  ;;  %v562_v38 = vadd.f32 %v561_v7, %v560_v63  ;;  %v565_v8 = vsel %vm2991_vm6, %v1994_v45, 0.0  ;;  %vm440_vm11 = vcmp.lt.s32.totalorder %v2992_v9, 512  ;;  %vm441_vm12 = vcmp.lt.s32.totalorder %v2993_v57, 512  ;;  %vm2997_vm4 = vmmov %vm2964_vm0  ;;  %v2998_v63 = vld [vmem:[#allocation51_spill] sm:$0xff] }
  0x5a   : > { %v2023_v2 = vsel %vm436_vm8, %v2988_v21, 0.0  ;;  %v2027_v5 = vsel %vm457_vm1, %v2990_v16, 0.0  ;;  %vm442_vm13 = vcmp.lt.s32.totalorder %v2994_v49, 512  ;;  %v567_v61 = vsel %vm2995_vm14, %v1998_v44, 0.0  ;;  %v3000_v21 = vld [vmem:[#allocation53_spill] sm:$0xff]  ;;  %vm3003_vm3 = vmmov %vm2964_vm0  ;;  %v3009_v44 = vld [vmem:[#allocation56_spill] sm:$0xff] }
  0x5b   : > { %v569_v24 = vsel %vm2996_vm15, %v2002_v10, 0.0  ;;  %v571_v51 = vsel %vm2964_vm0, %v2006_v27, 0.0  ;;  %v573_v7 = vsel %vm2997_vm4, %v2010_v62, 0.0  ;;  %vm443_vm5 = vcmp.lt.s32.totalorder %v2998_v63, 512  ;;  %vm3005_vm6 = vmmov %vm2964_vm0  ;;  %v3007_v62 = vld [vmem:[#allocation54_spill] sm:$0xff]  ;;  %v3008_v10 = vld [vmem:[#allocation55_spill] sm:$0xff] }
  0x5c   : > { %vm444_vm8 = vcmp.lt.s32.totalorder %v2999_v31, 512  ;;  %vm445_vm1 = vcmp.lt.s32.totalorder %v3000_v21, 512  ;;  %v564_v16 = vadd.f32 %v563_v28, %v562_v38  ;;  %v2047_v60 = vsel %vm3001_vm2, %v2027_v5, 0.0  ;;  %vm3010_vm4 = vmmov %vm2964_vm0  ;;  %v3099_v31 = vld [vmem:[#allocation21_spill] sm:$0xff] }
  0x5d   : > { %3002 = vst [vmem:[#allocation28_spill] sm:$0xff] %v2047_v60  ;;  %v2051_v39 = vsel %vm3003_vm3, %v1778_v11, 0.0  ;;  %v2055_v27 = vsel %vm3005_vm6, %v1784_v22, 0.0  ;;  %v2062_v28 = vsel %vm3010_vm4, %v1790_v25, 0.0  ;;  %vm3012_vm2 = vmmov %vm2964_vm0  ;;  %v3018_v60 = vld [vmem:[#allocation57_spill] sm:$0xff]  ;;  %v3019_v22 = vld [vmem:[#allocation7_spill] sm:$0xff] }
  0x5e   : > { %3004 = vst [vmem:[#allocation31_spill] sm:$0xff] %v2051_v39  ;;  %3006 = vst [vmem:[#allocation32_spill] sm:$0xff] %v2055_v27  ;;  %v2066_v38 = vsel %vm3012_vm2, %v1796_v15, 0.0  ;;  %v3020_v11 = vld [vmem:[#allocation8_spill] sm:$0xff]  ;;  %v566_v25 = vadd.f32 %v565_v8, %v564_v16 }
  0x5f   : > { %3011 = vst [vmem:[#allocation35_spill] sm:$0xff] %v2062_v28  ;;  %3013 = vst [vmem:[#allocation39_spill] sm:$0xff] %v2066_v38 }
  0x60   : > { %vm3014_vm3 = vmmov %vm2964_vm0 }
  0x61   : > { %v2070_v39 = vsel %vm3014_vm3, %v1802_v13, 0.0  ;;  %vm3016_vm6 = vmmov %vm2964_vm0  ;;  %v3029_v13 = vld [vmem:[#allocation13_spill] sm:$0xff] }
  0x62   : > { %3015 = vst [vmem:[#allocation40_spill] sm:$0xff] %v2070_v39  ;;  %v2074_v27 = vsel %vm3016_vm6, %v1808_v20, 0.0  ;;  %vm3021_vm4 = vmmov %vm2964_vm0  ;;  %v3028_v20 = vld [vmem:[#allocation10_spill] sm:$0xff] }
  0x63   : > { %3017 = vst [vmem:[#allocation44_spill] sm:$0xff] %v2074_v27  ;;  %v2081_v28 = vsel %vm3021_vm4, %v1814_v42, 0.0  ;;  %vm3023_vm2 = vmmov %vm2964_vm0  ;;  %v3027_v27 = vld [vmem:[#allocation9_spill] sm:$0xff] }
  0x64   : > { %3022 = vst [vmem:[#allocation4_spill] sm:$0xff] %v2081_v28  ;;  %v2085_v38 = vsel %vm3023_vm2, %v1820_v33, 0.0  ;;  %vm3025_vm3 = vmmov %vm2964_vm0  ;;  %vm452_vm6 = vcmp.lt.s32.totalorder %v3027_v27, 512  ;;  %v3038_v28 = vld [vmem:[#allocation14_spill] sm:$0xff]  ;;  %v2113_v33 = vsel %vm2964_vm0, %v1856_v34, 0.0 }
  0x65   : > { %3024 = vst [vmem:[#allocation26_spill] sm:$0xff] %v2085_v38  ;;  %v2089_v39 = vsel %vm3025_vm3, %v1826_v41, 0.0  ;;  %vm3030_vm14 = vmmov %vm2964_vm0  ;;  %v568_v41 = vadd.f32 %v567_v61, %v566_v25  ;;  %v2137_v61 = vsel %vm2964_vm0, %v1892_v52, 0.0 }
  0x66   : > { %3026 = vst [vmem:[#allocation5_spill] sm:$0xff] %v2089_v39  ;;  %v2096_v8 = vsel %vm3030_vm14, %v1832_v12, 0.0  ;;  %vm3032_vm4 = vmmov %vm2964_vm0 }
  0x67   : > { %3031 = vst [vmem:[#allocation6_spill] sm:$0xff] %v2096_v8  ;;  %v2100_v16 = vsel %vm3032_vm4, %v1838_v36, 0.0  ;;  %vm3034_vm2 = vmmov %vm2964_vm0 }
  0x68   : > { %3033 = vst [vmem:[#allocation11_spill] sm:$0xff] %v2100_v16  ;;  %v2104_v38 = vsel %vm3034_vm2, %v1844_v18, 0.0  ;;  %vm3036_vm3 = vmmov %vm2964_vm0 }
  0x69   : > { %3035 = vst [vmem:[#allocation45_spill] sm:$0xff] %v2104_v38  ;;  %v2108_v39 = vsel %vm3036_vm3, %v1850_v54, 0.0  ;;  %3039 = vst [vmem:[#allocation47_spill] sm:$0xff] %v2113_v33  ;;  %v3071_v33 = vld [vmem:[#allocation16_spill] sm:$0xff] }
  0x6a   : > { %3037 = vst [vmem:[#allocation46_spill] sm:$0xff] %v2108_v39  ;;  %vm3040_vm14 = vmmov %vm2964_vm0 }
  0x6b   : > { %v2117_v8 = vsel %vm3040_vm14, %v1862_v58, 0.0  ;;  %vm3042_vm4 = vmmov %vm2964_vm0  ;;  %3050 = vst [vmem:[#allocation52_spill] sm:$0xff] %v2137_v61 }
  0x6c   : > { %3041 = vst [vmem:[#allocation12_spill] sm:$0xff] %v2117_v8  ;;  %v2121_v16 = vsel %vm3042_vm4, %v1868_v37, 0.0  ;;  %vm3044_vm2 = vmmov %vm2964_vm0  ;;  %v570_v8 = vadd.f32 %v569_v24, %v568_v41  ;;  %v2161_v41 = vsel %vm2964_vm0, %v1928_v46, 0.0 }
  0x6d   : > { %3043 = vst [vmem:[#allocation48_spill] sm:$0xff] %v2121_v16  ;;  %v2125_v38 = vsel %vm3044_vm2, %v1874_v59, 0.0  ;;  %vm3046_vm3 = vmmov %vm2964_vm0 }
  0x6e   : > { %3045 = vst [vmem:[#allocation49_spill] sm:$0xff] %v2125_v38  ;;  %v2129_v39 = vsel %vm3046_vm3, %v1880_v53, 0.0  ;;  %vm3048_vm15 = vmmov %vm2964_vm0 }
  0x6f   : > { %3047 = vst [vmem:[#allocation50_spill] sm:$0xff] %v2129_v39  ;;  %v2133_v25 = vsel %vm3048_vm15, %v1886_v35, 0.0  ;;  %vm3051_vm14 = vmmov %vm2964_vm0 }
  0x70   : > { %3049 = vst [vmem:[#allocation51_spill] sm:$0xff] %v2133_v25  ;;  %v2141_v16 = vsel %vm3051_vm14, %v1898_v26, 0.0  ;;  %vm3053_vm4 = vmmov %vm2964_vm0 }
  0x71   : > { %3052 = vst [vmem:[#allocation53_spill] sm:$0xff] %v2141_v16  ;;  %v2145_v38 = vsel %vm3053_vm4, %v1904_v47, 0.0  ;;  %vm3055_vm2 = vmmov %vm2964_vm0  ;;  %v3070_v16 = vunpack.c.h.bf16 %v2987_v55 }
  0x72   : > { %3054 = vst [vmem:[#allocation54_spill] sm:$0xff] %v2145_v38  ;;  %v2149_v39 = vsel %vm3055_vm2, %v1910_v40, 0.0  ;;  %vm3057_vm15 = vmmov %vm2964_vm0  ;;  %v572_v38 = vadd.f32 %v571_v51, %v570_v8  ;;  %v3073_v8 = vunpack.c.h.bf16 %v3071_v33 }
  0x73   : > { %3056 = vst [vmem:[#allocation55_spill] sm:$0xff] %v2149_v39  ;;  %v2153_v25 = vsel %vm3057_vm15, %v1916_v50, 0.0  ;;  %vm3059_vm3 = vmmov %vm2964_vm0 }
  0x74   : > { %3058 = vst [vmem:[#allocation56_spill] sm:$0xff] %v2153_v25  ;;  %v2157_v61 = vsel %vm3059_vm3, %v1922_v32, 0.0  ;;  %3061 = vst [vmem:[#allocation7_spill] sm:$0xff] %v2161_v41  ;;  %v501_v41 = vsel %vm437_vm7, %v3070_v16, 0.0 }
  0x75   : > { %3060 = vst [vmem:[#allocation57_spill] sm:$0xff] %v2157_v61  ;;  %vm3062_vm14 = vmmov %vm2964_vm0 }
  0x76   : > { %v2165_v24 = vsel %vm3062_vm14, %v1934_v56, 0.0  ;;  %vm3064_vm4 = vmmov %vm2964_vm0  ;;  %vm3125_vm14 = vcmp.lt.s32.totalorder %v3038_v28, 512 }
  0x77   : > { %3063 = vst [vmem:[#allocation8_spill] sm:$0xff] %v2165_v24  ;;  %v2169_v39 = vsel %vm3064_vm4, %v1940_v0, 0.0  ;;  %vm3066_vm2 = vmmov %vm2964_vm0  ;;  %v3072_v24 = vunpack.c.l.bf16 %v3071_v33  ;;  %v3081_v33 = vld [vmem:[#allocation18_spill] sm:$0xff] }
  0x78   : > { %3065 = vst [vmem:[#allocation9_spill] sm:$0xff] %v2169_v39  ;;  %v2173_v25 = vsel %vm3066_vm2, %v1946_v43, 0.0  ;;  %vm3068_vm15 = vmmov %vm2964_vm0  ;;  %v2191_v39 = vsel %vm439_vm10, %v3073_v8, 0.0  ;;  %v3082_v16 = vunpack.c.l.bf16 %v3081_v33  ;;  %v3084_v8 = vunpack.c.h.bf16 %v3081_v33 }
  0x79   : > { %3067 = vst [vmem:[#allocation10_spill] sm:$0xff] %v2173_v25  ;;  %v2177_v61 = vsel %vm3068_vm15, %v1952_v1, 0.0  ;;  %v502_v51 = vsel %vm438_vm9, %v3072_v24, 0.0  ;;  %3074 = vst [vmem:[#allocation14_spill] sm:$0xff] %v2191_v39  ;;  %v574_v24 = vadd.f32 %v573_v7, %v572_v38  ;;  %v3092_v38 = vld [vmem:[#allocation20_spill] sm:$0xff]  ;;  %vm3094_vm9 = vcmp.lt.s32.totalorder %v3007_v62, 512 }
  0x7a   : > { %3069 = vst [vmem:[#allocation13_spill] sm:$0xff] %v2177_v61  ;;  %vm3075_vm3 = vmmov %vm2964_vm0  ;;  %v3076_v61 = vld [vmem:[#allocation17_spill] sm:$0xff]  ;;  %v2211_v4 = vsel %vm442_vm13, %v3082_v16, 0.0  ;;  %v2217_v9 = vsel %vm443_vm5, %v3084_v8, 0.0  ;;  %v3096_v33 = vunpack.c.h.bf16 %v3092_v38  ;;  %vm3097_vm10 = vcmp.lt.s32.totalorder %v3008_v10, 512 }
  0x7b   : > { %v575_v25 = vsel %vm3075_vm3, %v2014_v30, 0.0  ;;  %v3077_v1 = vunpack.c.l.bf16 %v3076_v61  ;;  %v3079_v55 = vunpack.c.h.bf16 %v3076_v61  ;;  %3083 = vst [vmem:[#allocation18_spill] sm:$0xff] %v2211_v4  ;;  %3085 = vst [vmem:[#allocation58_spill] sm:$0xff] %v2217_v9  ;;  %v3100_v16 = vunpack.c.l.bf16 %v3099_v31 }
  0x7c   : > { %vm3091_vm7 = vmmov %vm2964_vm0  ;;  %v576_v8 = vadd.f32 %v575_v25, %v574_v24  ;;  %vm3108_vm13 = vcmp.lt.s32.totalorder %v3019_v22, 512  ;;  %vm3111_vm5 = vcmp.lt.s32.totalorder %v3020_v11, 512  ;;  %v3114_v24 = vld [vmem:[#allocation23_spill] sm:$0xff] }
  0x7d   : > { %v2199_v29 = vsel %vm440_vm11, %v3077_v1, 0.0  ;;  %v2205_v48 = vsel %vm441_vm12, %v3079_v55, 0.0  ;;  %v3086_v1 = vld [vmem:[#allocation19_spill] sm:$0xff]  ;;  %v577_v7 = vsel %vm3091_vm7, %v2023_v2, 0.0  ;;  %v3093_v55 = vunpack.c.l.bf16 %v3092_v38  ;;  %vm3128_vm4 = vmmov %vm3066_vm2 }
  0x7e   : > { %3078 = vst [vmem:[#allocation16_spill] sm:$0xff] %v2199_v29  ;;  %3080 = vst [vmem:[#allocation17_spill] sm:$0xff] %v2205_v48  ;;  %v3087_v43 = vunpack.c.l.bf16 %v3086_v1  ;;  %v3089_v61 = vunpack.c.h.bf16 %v3086_v1  ;;  %vm3101_vm11 = vcmp.lt.s32.totalorder %v3009_v44, 512  ;;  %v3103_v1 = vunpack.c.h.bf16 %v3099_v31 }
  0x7f   : > { %v2237_v63 = vsel %vm3094_vm9, %v3093_v55, 0.0  ;;  %v2249_v21 = vsel %vm3101_vm11, %v3100_v16, 0.0  ;;  %vm3104_vm12 = vcmp.lt.s32.totalorder %v3018_v60, 512  ;;  %v3117_v31 = vunpack.c.h.bf16 %v3114_v24  ;;  %v3120_v16 = vld [vmem:[#allocation24_spill] sm:$0xff]  ;;  %vm3129_vm15 = vmmov %vm3066_vm2 }
  0x80   : > { %v2223_v57 = vsel %vm444_vm8, %v3087_v43, 0.0  ;;  %v2229_v49 = vsel %vm445_vm1, %v3089_v61, 0.0  ;;  %3095 = vst [vmem:[#allocation20_spill] sm:$0xff] %v2237_v63  ;;  %v2243_v43 = vsel %vm3097_vm10, %v3096_v33, 0.0  ;;  %3102 = vst [vmem:[#allocation21_spill] sm:$0xff] %v2249_v21  ;;  %v2255_v62 = vsel %vm3104_vm12, %v3103_v1, 0.0 }
  0x81   : > { %3088 = vst [vmem:[#allocation19_spill] sm:$0xff] %v2223_v57  ;;  %3090 = vst [vmem:[#allocation59_spill] sm:$0xff] %v2229_v49  ;;  %v3106_v61 = vld [vmem:[#allocation22_spill] sm:$0xff]  ;;  %v3115_v33 = vunpack.c.l.bf16 %v3114_v24  ;;  %vm3118_vm1 = vcmp.lt.s32.totalorder %v3028_v20, 512  ;;  %v3121_v1 = vunpack.c.l.bf16 %v3120_v16  ;;  %v583_v20 = vsel %vm3128_vm4, %v2191_v39, 0.0 }
  0x82   : > { %3098 = vst [vmem:[#allocation60_spill] sm:$0xff] %v2243_v43  ;;  %3105 = vst [vmem:[#allocation61_spill] sm:$0xff] %v2255_v62  ;;  %v3107_v55 = vunpack.c.l.bf16 %v3106_v61  ;;  %v3110_v38 = vunpack.c.h.bf16 %v3106_v61  ;;  %v2280_v22 = vsel %vm3118_vm1, %v3117_v31, 0.0  ;;  %v578_v61 = vadd.f32 %v577_v7, %v576_v8 }
  0x83   : > { %vm3113_vm8 = vmmov %vm2964_vm0  ;;  %v2274_v60 = vsel %vm452_vm6, %v3115_v33, 0.0  ;;  %3119 = vst [vmem:[#allocation63_spill] sm:$0xff] %v2280_v22  ;;  %vm3122_vm0 = vcmp.lt.s32.totalorder %v3029_v13, 512  ;;  %v585_v24 = vsel %vm3066_vm2, %v2199_v29, 0.0  ;;  %v587_v13 = vsel %vm3129_vm15, %v2205_v48, 0.0  ;;  %v3151_v29 = vld [vmem:[#allocation27_spill] sm:$0xff] }
  0x84   : > { %v2261_v10 = vsel %vm3108_vm13, %v3107_v55, 0.0  ;;  %v2267_v44 = vsel %vm3111_vm5, %v3110_v38, 0.0  ;;  %v579_v25 = vsel %vm3113_vm8, %v501_v41, 0.0  ;;  %3116 = vst [vmem:[#allocation23_spill] sm:$0xff] %v2274_v60  ;;  %v2286_v11 = vsel %vm3122_vm0, %v3121_v1, 0.0  ;;  %vm3127_vm6 = vmmov %vm3066_vm2 }
  0x85   : > { %3109 = vst [vmem:[#allocation22_spill] sm:$0xff] %v2261_v10  ;;  %3112 = vst [vmem:[#allocation62_spill] sm:$0xff] %v2267_v44  ;;  %v3124_v55 = vunpack.c.h.bf16 %v3120_v16  ;;  %v581_v38 = vsel %vm3127_vm6, %v502_v51, 0.0  ;;  %v580_v33 = vadd.f32 %v579_v25, %v578_v61 }
  0x86   : > { %3123 = vst [vmem:[#allocation24_spill] sm:$0xff] %v2286_v11  ;;  %vm3130_vm3 = vmmov %vm3066_vm2 }
  0x87   : > { %v2292_v27 = vsel %vm3125_vm14, %v3124_v55, 0.0  ;;  %v589_v7 = vsel %vm3130_vm3, %v2211_v4, 0.0  ;;  %vm3131_vm7 = vmmov %vm3066_vm2  ;;  %v582_v1 = vadd.f32 %v581_v38, %v580_v33 }
  0x88   : > { %3126 = vst [vmem:[#allocation64_spill] sm:$0xff] %v2292_v27  ;;  %v591_v28 = vsel %vm3131_vm7, %v2217_v9, 0.0  ;;  %vm3132_vm9 = vmmov %vm3066_vm2 }
  0x89   : > { %v593_v8 = vsel %vm3132_vm9, %v2223_v57, 0.0  ;;  %vm3133_vm10 = vmmov %vm3066_vm2 }
  0x8a   : > { %v595_v31 = vsel %vm3133_vm10, %v2229_v49, 0.0  ;;  %vm3134_vm11 = vmmov %vm3066_vm2 }
  0x8b   : > { %v2311_v16 = vsel %vm3134_vm11, %v2237_v63, 0.0  ;;  %vm3135_vm12 = vmmov %vm3066_vm2 }
  0x8c   : > { %v2315_v25 = vsel %vm3135_vm12, %v2243_v43, 0.0  ;;  %vm3136_vm13 = vmmov %vm3066_vm2 }
  0x8d   : > { %v2319_v61 = vsel %vm3136_vm13, %v2249_v21, 0.0  ;;  %vm3137_vm5 = vmmov %vm3066_vm2  ;;  %v693_v21 = vmul.f32 %v1772_v14, %v1772_v14  ;;  %v3146_v14 = vld [vmem:[#allocation2_spill] sm:$0xff] }
  0x8e   : > { %v2323_v55 = vsel %vm3137_vm5, %v2255_v62, 0.0  ;;  %vm3138_vm8 = vmmov %vm3066_vm2  ;;  %v584_v62 = vadd.f32 %v583_v20, %v582_v1  ;;  %v697_v20 = vmul.f32 %v1994_v45, %v1994_v45  ;;  %v700_v4 = vmul.f32 %v3146_v14, %v3146_v14 }
  0x8f   : > { %v2327_v49 = vsel %vm3138_vm8, %v2261_v10, 0.0  ;;  %vm3139_vm1 = vmmov %vm3066_vm2  ;;  %v691_v10 = vmul.f32 %v1760_v19, %v1760_v19  ;;  %v3144_v19 = vld [vmem:[#allocation42_spill] sm:$0xff]  ;;  %v2371_v45 = vmul.f32 %v501_v41, %v501_v41 }
  0x90   : > { %v2331_v63 = vsel %vm3139_vm1, %v2267_v44, 0.0  ;;  %vm3140_vm0 = vmmov %vm3139_vm1  ;;  %v692_v44 = vmul.f32 %v1766_v17, %v1766_v17  ;;  %v586_v1 = vadd.f32 %v585_v24, %v584_v62  ;;  %v698_v57 = vmul.f32 %v3144_v19, %v3144_v19  ;;  %v3145_v17 = vld [vmem:[#allocation43_spill] sm:$0xff]  ;;  %v3153_v41 = vld [vmem:[#allocation30_spill] sm:$0xff] }
  0x91   : > { %v2335_v43 = vsel %vm3140_vm0, %v2274_v60, 0.0  ;;  %vm3141_vm14 = vmmov %vm3140_vm0  ;;  %v694_v60 = vmul.f32 %v1971_v23, %v1971_v23  ;;  %v699_v9 = vmul.f32 %v3145_v17, %v3145_v17  ;;  %v3147_v23 = vld [vmem:[#allocation3_spill] sm:$0xff]  ;;  %3148 = vst [vmem:[#allocation42_spill] sm:$0xff] %v2371_v45  ;;  %v2373_v24 = vmul.f32 %v502_v51, %v502_v51 }
  0x92   : > { %v2339_v38 = vsel %vm3141_vm14, %v2280_v22, 0.0  ;;  %vm3142_vm6 = vmmov %vm3140_vm0  ;;  %v695_v22 = vmul.f32 %v1982_v3, %v1982_v3  ;;  %v701_v48 = vmul.f32 %v3147_v23, %v3147_v23  ;;  %v702_v3 = vmul.f32 %v2014_v30, %v2014_v30  ;;  %v3150_v17 = vld [vmem:[#allocation15_spill] sm:$0xff] }
  0x93   : > { %v2343_v33 = vsel %vm3142_vm6, %v2286_v11, 0.0  ;;  %v696_v11 = vmul.f32 %v1988_v6, %v1988_v6  ;;  %v703_v6 = vmul.f32 %v2023_v2, %v2023_v2  ;;  %v588_v62 = vadd.f32 %v587_v13, %v586_v1  ;;  %3149 = vst [vmem:[#allocation43_spill] sm:$0xff] %v2373_v24  ;;  %v3154_v1 = vld [vmem:[#allocation33_spill] sm:$0xff]  ;;  %vm3157_vm4 = vmmov %vm3140_vm0 }
  0x94   : > { %3143 = vst [vmem:[#allocation65_spill] sm:$0xff] %v2343_v33  ;;  %v724_v19 = vmul.f32 %v2027_v5, %v2027_v5  ;;  %v725_v14 = vmul.f32 %v3150_v17, %v3150_v17  ;;  %v726_v23 = vmul.f32 %v3151_v29, %v3151_v29  ;;  %v3152_v33 = vld [vmem:[#allocation29_spill] sm:$0xff]  ;;  %v728_v2 = vmul.f32 %v1796_v15, %v1796_v15  ;;  %v3155_v17 = vld [vmem:[#allocation34_spill] sm:$0xff]  ;;  %v3156_v29 = vld [vmem:[#allocation36_spill] sm:$0xff] }
  0x95   : > { %v727_v30 = vmul.f32 %v3152_v33, %v3152_v33  ;;  %v729_v13 = vmul.f32 %v3153_v41, %v3153_v41  ;;  %v590_v51 = vadd.f32 %v589_v7, %v588_v62  ;;  %v730_v24 = vmul.f32 %v3154_v1, %v3154_v1  ;;  %vm3158_vm2 = vmmov %vm3140_vm0 }
  0x96   : > { %v731_v5 = vmul.f32 %v1814_v42, %v1814_v42  ;;  %v732_v45 = vmul.f32 %v3155_v17, %v3155_v17  ;;  %v733_v39 = vmul.f32 %v3156_v29, %v3156_v29  ;;  %v734_v33 = vmul.f32 %v1832_v12, %v1832_v12  ;;  %vm3159_vm15 = vmmov %vm3140_vm0 }
  0x97   : > { %v755_v15 = vsel %vm3157_vm4, %v691_v10, 0.0  ;;  %v756_v41 = vsel %vm3158_vm2, %v692_v44, 0.0  ;;  %v592_v7 = vadd.f32 %v591_v28, %v590_v51  ;;  %v735_v62 = vmul.f32 %v1838_v36, %v1838_v36  ;;  %vm3160_vm3 = vmmov %vm3140_vm0 }
  0x98   : > { %v757_v1 = vadd.f32 %v756_v41, %v755_v15  ;;  %v758_v42 = vsel %vm3159_vm15, %v693_v21, 0.0  ;;  %v736_v17 = vmul.f32 %v1844_v18, %v1844_v18  ;;  %v737_v29 = vmul.f32 %v1850_v54, %v1850_v54  ;;  %vm3161_vm7 = vmmov %vm3140_vm0  ;;  %v3165_v15 = vld [vmem:[#allocation38_spill] sm:$0xff] }
  0x99   : > { %v738_v12 = vmul.f32 %v1856_v34, %v1856_v34  ;;  %v760_v10 = vsel %vm3160_vm3, %v694_v60, 0.0  ;;  %v594_v27 = vadd.f32 %v593_v8, %v592_v7  ;;  %v739_v44 = vmul.f32 %v1862_v58, %v1862_v58  ;;  %vm3162_vm9 = vmmov %vm3140_vm0 }
  0x9a   : > { %v740_v36 = vmul.f32 %v1868_v37, %v1868_v37  ;;  %v759_v28 = vadd.f32 %v758_v42, %v757_v1  ;;  %v741_v21 = vmul.f32 %v1874_v59, %v1874_v59  ;;  %v742_v18 = vmul.f32 %v1880_v53, %v1880_v53  ;;  %vm3164_vm10 = vmmov %vm3140_vm0 }
  0x9b   : > { %v743_v54 = vmul.f32 %v1886_v35, %v1886_v35  ;;  %v762_v34 = vsel %vm3161_vm7, %v695_v22, 0.0  ;;  %v596_v60 = vadd.f32 %v595_v31, %v594_v27  ;;  %v744_v8 = vmul.f32 %v1892_v52, %v1892_v52  ;;  %v3163_v31 = vld [vmem:[#allocation37_spill] sm:$0xff]  ;;  %vm3166_vm11 = vmmov %vm3140_vm0 }
  0x9c   : > { %v745_v58 = vmul.f32 %v1898_v26, %v1898_v26  ;;  %v761_v37 = vadd.f32 %v760_v10, %v759_v28  ;;  %v746_v51 = vmul.f32 %v1904_v47, %v1904_v47  ;;  %v747_v59 = vmul.f32 %v1910_v40, %v1910_v40  ;;  %vm3167_vm12 = vmmov %vm3140_vm0  ;;  %v3172_v28 = vld [vmem:[#allocation41_spill] sm:$0xff] }
  0x9d   : > { %v748_v53 = vmul.f32 %v1916_v50, %v1916_v50  ;;  %v764_v35 = vsel %vm3162_vm9, %v696_v11, 0.0  ;;  %v598_v22 = vadd.f32 %v2311_v16, %v596_v60  ;;  %v749_v52 = vmul.f32 %v1922_v32, %v1922_v32  ;;  %vm3168_vm13 = vmmov %vm3140_vm0 }
  0x9e   : > { %v750_v26 = vmul.f32 %v1928_v46, %v1928_v46  ;;  %v763_v27 = vadd.f32 %v762_v34, %v761_v37  ;;  %v751_v47 = vmul.f32 %v1934_v56, %v1934_v56  ;;  %v752_v40 = vmul.f32 %v1940_v0, %v1940_v0  ;;  %vm3169_vm5 = vmmov %vm3140_vm0 }
  0x9f   : > { %v753_v50 = vmul.f32 %v3163_v31, %v3163_v31  ;;  %v766_v11 = vsel %vm3164_vm10, %v697_v20, 0.0  ;;  %v600_v16 = vadd.f32 %v2315_v25, %v598_v22  ;;  %v754_v32 = vmul.f32 %v3165_v15, %v3165_v15  ;;  %vm3170_vm8 = vmmov %vm3140_vm0  ;;  %v3201_v22 = vld [vmem:[#allocation64_spill] sm:$0xff] }
  0xa0   : > { %v765_v41 = vadd.f32 %v764_v35, %v763_v27  ;;  %v768_v46 = vsel %vm3166_vm11, %v698_v57, 0.0  ;;  %v770_v7 = vsel %vm3167_vm12, %v699_v9, 0.0  ;;  %v772_v56 = vsel %vm3168_vm13, %v700_v4, 0.0  ;;  %vm3171_vm1 = vmmov %vm3140_vm0 }
  0xa1   : > { %v774_v1 = vsel %vm3169_vm5, %v701_v48, 0.0  ;;  %v776_v0 = vsel %vm3170_vm8, %v702_v3, 0.0  ;;  %v602_v42 = vadd.f32 %v2319_v61, %v600_v16  ;;  %v778_v20 = vsel %vm3171_vm1, %v703_v6, 0.0  ;;  %vm3173_vm6 = vmmov %vm3140_vm0 }
  0xa2   : > { %v767_v10 = vadd.f32 %v766_v11, %v765_v41  ;;  %v2454_v25 = vsel %vm3140_vm0, %v724_v19, 0.0  ;;  %vm456_vm14 = vcmp.lt.s32.totalorder %v3172_v28, 512  ;;  %v2458_v57 = vsel %vm3173_vm6, %v725_v14, 0.0  ;;  %vm3174_vm4 = vmmov %vm3140_vm0  ;;  %v3210_v41 = vld [vmem:[#allocation16_spill] sm:$0xff] }
  0xa3   : > { %v2461_v9 = vsel %vm3174_vm4, %v726_v23, 0.0  ;;  %vm3175_vm2 = vmmov %vm3140_vm0  ;;  %v604_v61 = vadd.f32 %v2323_v55, %v602_v42  ;;  %v3213_v42 = vld [vmem:[#allocation17_spill] sm:$0xff] }
  0xa4   : > { %v2464_v48 = vsel %vm3175_vm2, %v727_v30, 0.0  ;;  %vm3176_vm15 = vmmov %vm3140_vm0  ;;  %v769_v3 = vadd.f32 %v768_v46, %v767_v10  ;;  %v707_v46 = vmul.f32 %v3210_v41, %v3210_v41  ;;  %v708_v10 = vmul.f32 %v3213_v42, %v3213_v42 }
  0xa5   : > { %v2467_v4 = vsel %vm3176_vm15, %v728_v2, 0.0  ;;  %vm3177_vm3 = vmmov %vm3140_vm0  ;;  %v606_v55 = vadd.f32 %v2327_v49, %v604_v61 }
  0xa6   : > { %v2471_v6 = vsel %vm3177_vm3, %v729_v13, 0.0  ;;  %vm3178_vm7 = vmmov %vm3140_vm0  ;;  %v771_v34 = vadd.f32 %v770_v7, %v769_v3  ;;  %v3211_v7 = vld [vmem:[#allocation43_spill] sm:$0xff] }
  0xa7   : > { %v2474_v19 = vsel %vm3178_vm7, %v730_v24, 0.0  ;;  %vm3179_vm9 = vmmov %vm3140_vm0  ;;  %v608_v49 = vadd.f32 %v2331_v63, %v606_v55  ;;  %v3215_v55 = vld [vmem:[#allocation18_spill] sm:$0xff] }
  0xa8   : > { %v2477_v14 = vsel %vm3179_vm9, %v731_v5, 0.0  ;;  %vm3180_vm10 = vmmov %vm3140_vm0  ;;  %v773_v60 = vadd.f32 %v772_v56, %v771_v34 }
  0xa9   : > { %v2480_v23 = vsel %vm3180_vm10, %v732_v45, 0.0  ;;  %vm3181_vm11 = vmmov %vm3140_vm0  ;;  %v610_v63 = vadd.f32 %v2335_v43, %v608_v49  ;;  %v3217_v49 = vld [vmem:[#allocation28_spill] sm:$0xff] }
  0xaa   : > { %v2483_v30 = vsel %vm3181_vm11, %v733_v39, 0.0  ;;  %vm3182_vm12 = vmmov %vm3140_vm0  ;;  %v2502_v39 = vsel %vm3140_vm0, %v739_v44, 0.0  ;;  %v775_v37 = vadd.f32 %v774_v1, %v773_v60 }
  0xab   : > { %v2486_v2 = vsel %vm3182_vm12, %v734_v33, 0.0  ;;  %vm3183_vm13 = vmmov %vm3140_vm0  ;;  %v612_v43 = vadd.f32 %v2339_v38, %v610_v63 }
  0xac   : > { %v2490_v13 = vsel %vm3183_vm13, %v735_v62, 0.0  ;;  %vm3184_vm5 = vmmov %vm3140_vm0  ;;  %v777_v35 = vadd.f32 %v776_v0, %v775_v37  ;;  %v3218_v37 = vld [vmem:[#allocation58_spill] sm:$0xff] }
  0xad   : > { %v2493_v24 = vsel %vm3184_vm5, %v736_v17, 0.0  ;;  %vm3185_vm8 = vmmov %vm3140_vm0 }
  0xae   : > { %v2496_v5 = vsel %vm3185_vm8, %v737_v29, 0.0  ;;  %vm3186_vm1 = vmmov %vm3140_vm0  ;;  %v779_v15 = vadd.f32 %v778_v20, %v777_v35  ;;  %v709_v20 = vmul.f32 %v3215_v55, %v3215_v55 }
  0xaf   : > { %v2499_v45 = vsel %vm3186_vm1, %v738_v12, 0.0  ;;  %vm3187_vm6 = vmmov %vm3140_vm0 }
  0xb0   : > { %v2505_v33 = vsel %vm3187_vm6, %v740_v36, 0.0  ;;  %vm3188_vm4 = vmmov %vm3140_vm0 }
  0xb1   : > { %v2509_v62 = vsel %vm3188_vm4, %v741_v21, 0.0  ;;  %vm3189_vm2 = vmmov %vm3140_vm0 }
  0xb2   : > { %v2512_v17 = vsel %vm3189_vm2, %v742_v18, 0.0  ;;  %vm3190_vm15 = vmmov %vm3140_vm0 }
  0xb3   : > { %v2515_v29 = vsel %vm3190_vm15, %v743_v54, 0.0  ;;  %vm3191_vm3 = vmmov %vm3140_vm0 }
  0xb4   : > { %v2518_v12 = vsel %vm3191_vm3, %v744_v8, 0.0  ;;  %vm3192_vm7 = vmmov %vm3140_vm0 }
  0xb5   : > { %v2521_v44 = vsel %vm3192_vm7, %v745_v58, 0.0  ;;  %vm3193_vm9 = vmmov %vm3140_vm0 }
  0xb6   : > { %v2524_v36 = vsel %vm3193_vm9, %v746_v51, 0.0  ;;  %vm3194_vm10 = vmmov %vm3140_vm0 }
  0xb7   : > { %v2528_v21 = vsel %vm3194_vm10, %v747_v59, 0.0  ;;  %vm3195_vm11 = vmmov %vm3140_vm0 }
  0xb8   : > { %v2531_v18 = vsel %vm3195_vm11, %v748_v53, 0.0  ;;  %vm3196_vm12 = vmmov %vm3140_vm0  ;;  %v2550_v53 = vsel %vm3140_vm0, %v754_v32, 0.0 }
  0xb9   : > { %v2534_v54 = vsel %vm3196_vm12, %v749_v52, 0.0  ;;  %vm3197_vm13 = vmmov %vm3140_vm0 }
  0xba   : > { %v2537_v8 = vsel %vm3197_vm13, %v750_v26, 0.0  ;;  %vm3198_vm5 = vmmov %vm3140_vm0  ;;  %v3203_v26 = vld [vmem:[#allocation14_spill] sm:$0xff] }
  0xbb   : > { %v2540_v58 = vsel %vm3198_vm5, %v751_v47, 0.0  ;;  %vm3199_vm8 = vmmov %vm3140_vm0  ;;  %v706_v27 = vmul.f32 %v3203_v26, %v3203_v26  ;;  %v3204_v47 = vld [vmem:[#allocation42_spill] sm:$0xff] }
  0xbc   : > { %v2543_v51 = vsel %vm3199_vm8, %v752_v40, 0.0  ;;  %vm3200_vm1 = vmmov %vm3140_vm0  ;;  %v3206_v40 = vld [vmem:[#allocation25_spill] sm:$0xff] }
  0xbd   : > { %v2547_v59 = vsel %vm3200_vm1, %v753_v50, 0.0  ;;  %vm3202_vm6 = vmmov %vm3140_vm0  ;;  %v3207_v11 = vunpack.c.l.bf16 %v3206_v40  ;;  %v3208_v50 = vld [vmem:[#allocation65_spill] sm:$0xff] }
  0xbe   : > { %v615_v52 = vsel %vm3202_vm6, %v3201_v22, 0.0  ;;  %vm3205_vm4 = vmmov %vm3140_vm0  ;;  %v614_v16 = vadd.f32 %v3208_v50, %v612_v43  ;;  %v710_v43 = vmul.f32 %v3218_v37, %v3218_v37 }
  0xbf   : > { %v780_v31 = vsel %vm3205_vm4, %v3204_v47, 0.0  ;;  %v2562_v38 = vsel %vm456_vm14, %v3207_v11, 0.0  ;;  %vm3209_vm2 = vmmov %vm3140_vm0  ;;  %v3223_v11 = vld [vmem:[#allocation32_spill] sm:$0xff] }
  0xc0   : > { %v617_v32 = vsel %vm3209_vm2, %v2562_v38, 0.0  ;;  %vm3212_vm15 = vmmov %vm3140_vm0  ;;  %v616_v1 = vadd.f32 %v615_v52, %v614_v16  ;;  %v781_v0 = vadd.f32 %v780_v31, %v779_v15  ;;  %v3220_v52 = vld [vmem:[#allocation31_spill] sm:$0xff] }
  0xc1   : > { %v782_v56 = vsel %vm3212_vm15, %v3211_v7, 0.0  ;;  %vm3214_vm3 = vmmov %vm3140_vm0  ;;  %v3221_v31 = vld [vmem:[#allocation19_spill] sm:$0xff] }
  0xc2   : > { %v784_v28 = vsel %vm3214_vm3, %v706_v27, 0.0  ;;  %v618_v61 = vadd.f32 %v617_v32, %v616_v1  ;;  %v783_v3 = vadd.f32 %v782_v56, %v781_v0  ;;  %vm3216_vm14 = vmmov %vm3140_vm0  ;;  %v711_v27 = vmul.f32 %v3221_v31, %v3221_v31  ;;  %v3224_v15 = vld [vmem:[#allocation59_spill] sm:$0xff]  ;;  %v3227_v1 = vld [vmem:[#allocation20_spill] sm:$0xff] }
  0xc3   : > { %v786_v34 = vsel %vm3216_vm14, %v707_v46, 0.0  ;;  %vm3219_vm7 = vmmov %vm3140_vm0  ;;  %v712_v32 = vmul.f32 %v3224_v15, %v3224_v15  ;;  %v3226_v46 = vld [vmem:[#allocation35_spill] sm:$0xff]  ;;  %v713_v0 = vmul.f32 %v3227_v1, %v3227_v1 }
  0xc4   : > { %v620_v60 = vadd.f32 %v3217_v49, %v618_v61  ;;  %v785_v63 = vadd.f32 %v784_v28, %v783_v3  ;;  %v788_v35 = vsel %vm3219_vm7, %v708_v10, 0.0  ;;  %vm3222_vm9 = vmmov %vm3140_vm0  ;;  %v3229_v10 = vld [vmem:[#allocation39_spill] sm:$0xff]  ;;  %v3230_v3 = vld [vmem:[#allocation60_spill] sm:$0xff]  ;;  %vm688_vm7 = vcmask 57344  }
  0xc5   : > { %v790_v40 = vsel %vm3222_vm9, %v709_v20, 0.0  ;;  %vm3225_vm10 = vmmov %vm3140_vm0  ;;  %v714_v55 = vmul.f32 %v3230_v3, %v3230_v3 }
  0xc6   : > { %v622_v26 = vadd.f32 %v3220_v52, %v620_v60  ;;  %v787_v47 = vadd.f32 %v786_v34, %v785_v63  ;;  %v792_v41 = vsel %vm3225_vm10, %v710_v43, 0.0  ;;  %vm3228_vm11 = vmmov %vm3140_vm0  ;;  %v3232_v34 = vld [vmem:[#allocation40_spill] sm:$0xff]  ;;  %v3233_v63 = vld [vmem:[#allocation21_spill] sm:$0xff] }
  0xc7   : > { %v794_v42 = vsel %vm3228_vm11, %v711_v27, 0.0  ;;  %vm3231_vm12 = vmmov %vm3140_vm0  ;;  %v715_v37 = vmul.f32 %v3233_v63, %v3233_v63 }
  0xc8   : > { %v624_v50 = vadd.f32 %v3223_v11, %v622_v26  ;;  %v789_v16 = vadd.f32 %v788_v35, %v787_v47  ;;  %v796_v20 = vsel %vm3231_vm12, %v712_v32, 0.0  ;;  %vm3234_vm13 = vmmov %vm3140_vm0  ;;  %v3235_v35 = vld [vmem:[#allocation44_spill] sm:$0xff]  ;;  %v3236_v47 = vld [vmem:[#allocation61_spill] sm:$0xff] }
  0xc9   : > { %v798_v43 = vsel %vm3234_vm13, %v713_v0, 0.0  ;;  %v716_v31 = vmul.f32 %v3236_v47, %v3236_v47  ;;  %vm3237_vm5 = vmmov %vm3140_vm0 }
  0xca   : > { %v626_v7 = vadd.f32 %v3226_v46, %v624_v50  ;;  %v791_v56 = vadd.f32 %v790_v40, %v789_v16  ;;  %v800_v27 = vsel %vm3237_vm5, %v714_v55, 0.0  ;;  %v3238_v40 = vld [vmem:[#allocation4_spill] sm:$0xff]  ;;  %v3239_v16 = vld [vmem:[#allocation22_spill] sm:$0xff]  ;;  %vm3240_vm8 = vmmov %vm3140_vm0 }
  0xcb   : > { %v717_v15 = vmul.f32 %v3239_v16, %v3239_v16  ;;  %v802_v32 = vsel %vm3240_vm8, %v715_v37, 0.0  ;;  %vm3243_vm1 = vmmov %vm3140_vm0 }
  0xcc   : > { %v628_v28 = vadd.f32 %v3229_v10, %v626_v7  ;;  %v793_v61 = vadd.f32 %v792_v41, %v791_v56  ;;  %v3241_v41 = vld [vmem:[#allocation26_spill] sm:$0xff]  ;;  %v804_v0 = vsel %vm3243_vm1, %v716_v31, 0.0  ;;  %vm3248_vm6 = vmmov %vm3140_vm0 }
  0xcd   : > { %v3242_v56 = vld [vmem:[#allocation62_spill] sm:$0xff]  ;;  %v806_v55 = vsel %vm3140_vm0, %v717_v15, 0.0  ;;  %vm3251_vm4 = vmmov %vm3140_vm0 }
  0xce   : > { %v630_v49 = vadd.f32 %v3232_v34, %v628_v28  ;;  %v795_v60 = vadd.f32 %v794_v42, %v793_v61  ;;  %v718_v1 = vmul.f32 %v3242_v56, %v3242_v56  ;;  %v3244_v42 = vld [vmem:[#allocation5_spill] sm:$0xff]  ;;  %v3245_v61 = vld [vmem:[#allocation23_spill] sm:$0xff]  ;;  %vm3253_vm2 = vmmov %vm3140_vm0 }
  0xcf   : > { %v719_v3 = vmul.f32 %v3245_v61, %v3245_v61  ;;  %v3254_v15 = vld [vmem:[#allocation46_spill] sm:$0xff]  ;;  %vm3255_vm15 = vmmov %vm3140_vm0  ;;  %v3256_v56 = vld [vmem:[#allocation47_spill] sm:$0xff] }
  0xd0   : > { %v632_v52 = vadd.f32 %v3235_v35, %v630_v49  ;;  %v797_v26 = vadd.f32 %v796_v20, %v795_v60  ;;  %v3246_v20 = vld [vmem:[#allocation6_spill] sm:$0xff]  ;;  %v3247_v60 = vld [vmem:[#allocation63_spill] sm:$0xff]  ;;  %v808_v37 = vsel %vm3248_vm6, %v718_v1, 0.0  ;;  %vm3257_vm3 = vmmov %vm3140_vm0 }
  0xd1   : > { %v720_v63 = vmul.f32 %v3247_v60, %v3247_v60  ;;  %v810_v31 = vsel %vm3251_vm4, %v719_v3, 0.0  ;;  %vm3259_vm14 = vmmov %vm3140_vm0  ;;  %v3260_v3 = vld [vmem:[#allocation48_spill] sm:$0xff] }
  0xd2   : > { %v634_v11 = vadd.f32 %v3238_v40, %v632_v52  ;;  %v799_v50 = vadd.f32 %v798_v43, %v797_v26  ;;  %v3249_v43 = vld [vmem:[#allocation11_spill] sm:$0xff]  ;;  %v3250_v26 = vld [vmem:[#allocation24_spill] sm:$0xff] }
  0xd3   : > { %v721_v47 = vmul.f32 %v3250_v26, %v3250_v26  ;;  %v812_v16 = vsel %vm3253_vm2, %v720_v63, 0.0  ;;  %v3262_v63 = vld [vmem:[#allocation50_spill] sm:$0xff]  ;;  %v3264_v26 = vld [vmem:[#allocation52_spill] sm:$0xff] }
  0xd4   : > { %v636_v46 = vadd.f32 %v3241_v41, %v634_v11  ;;  %v801_v7 = vadd.f32 %v800_v27, %v799_v50  ;;  %v3252_v27 = vld [vmem:[#allocation45_spill] sm:$0xff]  ;;  %v722_v50 = vmul.f32 %v3201_v22, %v3201_v22 }
  0xd6   : > { %v638_v10 = vadd.f32 %v3244_v42, %v636_v46  ;;  %v803_v28 = vadd.f32 %v802_v32, %v801_v7  ;;  %v723_v46 = vmul.f32 %v2562_v38, %v2562_v38  ;;  %v814_v7 = vsel %vm3255_vm15, %v721_v47, 0.0 }
  0xd7   : > { %v816_v42 = vsel %vm3257_vm3, %v722_v50, 0.0  ;;  %v3266_v50 = vld [vmem:[#allocation54_spill] sm:$0xff] }
  0xd8   : > { %v640_v34 = vadd.f32 %v3246_v20, %v638_v10  ;;  %v805_v49 = vadd.f32 %v804_v0, %v803_v28  ;;  %v3258_v10 = vld [vmem:[#allocation12_spill] sm:$0xff]  ;;  %v818_v22 = vsel %vm3259_vm14, %v723_v46, 0.0 }
  0xd9   : > { %v3268_v46 = vld [vmem:[#allocation56_spill] sm:$0xff] }
  0xda   : > { %v642_v35 = vadd.f32 %v3249_v43, %v640_v34  ;;  %v807_v52 = vadd.f32 %v806_v55, %v805_v49  ;;  %v3261_v34 = vld [vmem:[#allocation49_spill] sm:$0xff]  ;;  %v3263_v43 = vld [vmem:[#allocation51_spill] sm:$0xff] }
  0xdc   : > { %v644_v40 = vadd.f32 %v3252_v27, %v642_v35  ;;  %v809_v11 = vadd.f32 %v808_v37, %v807_v52  ;;  %v3265_v27 = vld [vmem:[#allocation53_spill] sm:$0xff] }
  0xde   : > { %v646_v32 = vadd.f32 %v3254_v15, %v644_v40  ;;  %v811_v41 = vadd.f32 %v810_v31, %v809_v11 }
  0xe0   : > { %v648_v1 = vadd.f32 %v3256_v56, %v646_v32  ;;  %v813_v0 = vadd.f32 %v812_v16, %v811_v41  ;;  %v3267_v32 = vld [vmem:[#allocation55_spill] sm:$0xff]  ;;  %v3269_v56 = vld [vmem:[#allocation57_spill] sm:$0xff] }
  0xe2   : > { %v650_v28 = vadd.f32 %v3258_v10, %v648_v1  ;;  %v815_v61 = vadd.f32 %v814_v7, %v813_v0  ;;  %v3270_v0 = vld [vmem:[#allocation7_spill] sm:$0xff]  ;;  %v3271_v10 = vld [vmem:[#allocation8_spill] sm:$0xff] }
  0xe4   : > { %v652_v55 = vadd.f32 %v3260_v3, %v650_v28  ;;  %v817_v20 = vadd.f32 %v816_v42, %v815_v61  ;;  %v3272_v61 = vld [vmem:[#allocation9_spill] sm:$0xff]  ;;  %v3273_v3 = vld [vmem:[#allocation10_spill] sm:$0xff] }
  0xe6   : > { %v654_v49 = vadd.f32 %v3261_v34, %v652_v55  ;;  %v819_v60 = vadd.f32 %v818_v22, %v817_v20  ;;  %v3274_v20 = vld [vmem:[#allocation13_spill] sm:$0xff] }
  0xe8   : > { %v656_v38 = vadd.f32 %v3262_v63, %v654_v49  ;;  %v821_v37 = vadd.f32 %v2454_v25, %v819_v60 }
  0xea   : > { %v658_v35 = vadd.f32 %v3263_v43, %v656_v38  ;;  %v823_v52 = vadd.f32 %v2458_v57, %v821_v37 }
  0xec   : > { %v660_v47 = vadd.f32 %v3264_v26, %v658_v35  ;;  %v825_v31 = vadd.f32 %v2461_v9, %v823_v52  ;;  %v552_v35 = vld [vmem:[%s1202_s15] sm:$0x1] }
  0xee   : > { %v662_v40 = vadd.f32 %v3265_v27, %v660_v47  ;;  %v827_v11 = vadd.f32 %v2464_v48, %v825_v31 }
  0xf0   : > { %v664_v16 = vadd.f32 %v3266_v50, %v662_v40  ;;  %v829_v15 = vadd.f32 %v2467_v4, %v827_v11 }
  0xf2   : > { %v666_v41 = vadd.f32 %v3267_v32, %v664_v16  ;;  %v831_v25 = vadd.f32 %v2471_v6, %v829_v15  ;;  %v690_v16 = vld [vmem:[%s1202_s15 + $0x1] sm:$0x1] }
  0xf4   : > { %v668_v7 = vadd.f32 %v3268_v46, %v666_v41  ;;  %v833_v57 = vadd.f32 %v2474_v19, %v831_v25 }
  0xf6   : > { %v670_v1 = vadd.f32 %v3269_v56, %v668_v7  ;;  %v835_v9 = vadd.f32 %v2477_v14, %v833_v57 }
  0xf8   : > { %v672_v42 = vadd.f32 %v3270_v0, %v670_v1  ;;  %v837_v48 = vadd.f32 %v2480_v23, %v835_v9 }
  0xfa   : > { %v674_v28 = vadd.f32 %v3271_v10, %v672_v42  ;;  %v839_v4 = vadd.f32 %v2483_v30, %v837_v48 }
  0xfc   : > { %v676_v22 = vadd.f32 %v3272_v61, %v674_v28  ;;  %v841_v6 = vadd.f32 %v2486_v2, %v839_v4 }
  0xfe   : > { %v678_v55 = vadd.f32 %v3273_v3, %v676_v22  ;;  %v843_v19 = vadd.f32 %v2490_v13, %v841_v6 }
 0x100   : > { %v680_v34 = vadd.f32 %v3274_v20, %v678_v55  ;;  %v845_v14 = vadd.f32 %v2493_v24, %v843_v19 }
 0x102   : > { %v681_v49 = vrot.slane %v680_v34, 4  ;;  %v847_v23 = vadd.f32 %v2496_v5, %v845_v14 }
 0x104   : > { %v682_v60 = vadd.f32 %v681_v49, %v680_v34  ;;  %v849_v30 = vadd.f32 %v2499_v45, %v847_v23 }
 0x106   : > { %v683_v63 = vrot.slane %v682_v60, 2  ;;  %v851_v38 = vadd.f32 %v2502_v39, %v849_v30 }
 0x108   : > { %v684_v37 = vadd.f32 %v683_v63, %v682_v60  ;;  %v853_v2 = vadd.f32 %v2505_v33, %v851_v38 }
 0x10a   : > { %v685_v43 = vrot.slane %v684_v37, 1  ;;  %v855_v13 = vadd.f32 %v2509_v62, %v853_v2 }
 0x10c   : > { %v686_v52 = vadd.f32 %v685_v43, %v684_v37  ;;  %v857_v24 = vadd.f32 %v2512_v17, %v855_v13 }
 0x10e   : > { %v687_v26 = vadd.f32 %v686_v52, %v552_v35  ;;  %v859_v5 = vadd.f32 %v2515_v29, %v857_v24 }
 0x110   : > { %689 = vst.msk [vmem:[%s1202_s15] sm:$0x1] %vm688_vm7, %v687_v26  ;;  %v861_v45 = vadd.f32 %v2518_v12, %v859_v5 }
 0x112   : > { %v863_v39 = vadd.f32 %v2521_v44, %v861_v45 }
 0x114   : > { %v865_v33 = vadd.f32 %v2524_v36, %v863_v39 }
 0x116   : > { %v867_v47 = vadd.f32 %v2528_v21, %v865_v33 }
 0x118   : > { %v869_v62 = vadd.f32 %v2531_v18, %v867_v47 }
 0x11a   : > { %v871_v17 = vadd.f32 %v2534_v54, %v869_v62 }
 0x11c   : > { %v873_v31 = vadd.f32 %v2537_v8, %v871_v17 }
 0x11e   : > { %v875_v29 = vadd.f32 %v2540_v58, %v873_v31 }
 0x120   : > { %v877_v27 = vadd.f32 %v2543_v51, %v875_v29 }
 0x122   : > { %v879_v12 = vadd.f32 %v2547_v59, %v877_v27 }
 0x124   : > { %v881_v40 = vadd.f32 %v2550_v53, %v879_v12 }
 0x126   : > { %v882_v44 = vrot.slane %v881_v40, 4 }
 0x128   : > { %v883_v11 = vadd.f32 %v882_v44, %v881_v40 }
 0x12a   : > { %v884_v36 = vrot.slane %v883_v11, 2 }
 0x12c   : > { %v885_v50 = vadd.f32 %v884_v36, %v883_v11 }
 0x12e   : > { %v886_v21 = vrot.slane %v885_v50, 1 }
 0x130   : > { %v887_v15 = vadd.f32 %v886_v21, %v885_v50 }
 0x132   : > { %v888_v18 = vadd.f32 %v887_v15, %v690_v16 }
 0x134   : > { %889 = vst.msk [vmem:[%s1202_s15 + $0x1] sm:$0x1] %vm688_vm7, %v888_v18 }
 0x135 PF: > { %s11_s8 = sadd.s32 1, %s1168_s8   ;;  %s3275_s6 = smov %s1164_s7 }
 0x136   : > { %p8_p7 = scmp.ge.s32.totalorder %s11_s8, 4   ;;  %s3276_s7 = smov %s3278_s9 }
 0x138   :  { %10 = sbr.rel (!%p8_p7) target bundleno = 2 (0x2), region = 58 }

// kernel: up_forward.10
= control target key start
LH: loop header
LB: loop body
LE: loop exit
PB: predicated region body
PF: predicated region fallthrough
CT: control target
= control target key end

     0   :  { %vm604_vm0 = vcmask 60416   ;;  %s1472_s0 = inlined_call_operand.vmem [shape: bf16[512,8], index: 0, kind: input, shape index: {}]   ;;  %s1473_s1 = inlined_call_operand.vmem [shape: f32[1,8], index: 1, kind: input, shape index: {}]   ;;  %s1474_s2 = inlined_call_operand.vmem [shape: f32[1,8], index: 2, kind: input, shape index: {}]   ;;  %s1475_s3 = inlined_call_operand.vmem [shape: bf16[512,8], index: 3, kind: output, shape index: {}]  }
   0x1   :  { %v804_v0 = vld [vmem:[%s1472_s0] sm:$0xff]   ;;  %v931_v4 = vld [vmem:[%s1472_s0 + $0x8] sm:$0xff]   ;;  %v932_v5 = vld [vmem:[%s1472_s0 + $0x10] sm:$0xff]  }
   0x2   :  { %v988_v1 = vld [vmem:[%s1473_s1] ss:$0 sm:$0xff]  ;;  %v805_v2 = vunpack.c.l.bf16 %v804_v0  ;;  %v806_v3 = vunpack.c.h.bf16 %v804_v0  ;;  %v933_v6 = vld [vmem:[%s1472_s0 + $0x18] sm:$0xff]   ;;  %v809_v8 = vunpack.c.l.bf16 %v931_v4  ;;  %v810_v9 = vunpack.c.h.bf16 %v931_v4  ;;  %v935_v41 = vld [vmem:[%s1472_s0 + $0x28] sm:$0xff]  }
   0x3   :  { %v1002_v7 = vld [vmem:[%s1474_s2] ss:$0 sm:$0xff]  ;;  %v813_v10 = vunpack.c.l.bf16 %v932_v5  ;;  %v814_v11 = vunpack.c.h.bf16 %v932_v5  ;;  %v817_v14 = vunpack.c.l.bf16 %v933_v6  ;;  %v818_v15 = vunpack.c.h.bf16 %v933_v6  ;;  %v936_v42 = vld [vmem:[%s1472_s0 + $0x30] sm:$0xff]   ;;  %v937_v47 = vld [vmem:[%s1472_s0 + $0x38] sm:$0xff]  }
   0x4   :  { %v149_v12 = vmul.f32 %v805_v2, %v988_v1  ;;  %v150_v13 = vmul.f32 %v806_v3, %v988_v1  ;;  %v151_v16 = vmul.f32 %v809_v8, %v988_v1  ;;  %v152_v17 = vmul.f32 %v810_v9, %v988_v1  ;;  %v934_v36 = vld [vmem:[%s1472_s0 + $0x20] sm:$0xff]  }
   0x5   :  { %v153_v18 = vmul.f32 %v813_v10, %v988_v1  ;;  %v154_v19 = vmul.f32 %v814_v11, %v988_v1  ;;  %v155_v22 = vmul.f32 %v817_v14, %v988_v1  ;;  %v156_v23 = vmul.f32 %v818_v15, %v988_v1 }
   0x6   :  { %v220_v20 = vadd.f32 %v1002_v7, %v149_v12  ;;  %v221_v21 = vadd.f32 %v1002_v7, %v150_v13  ;;  %v222_v24 = vadd.f32 %v1002_v7, %v151_v16  ;;  %v223_v25 = vadd.f32 %v1002_v7, %v152_v17 }
   0x7   :  { %v224_v26 = vadd.f32 %v1002_v7, %v153_v18  ;;  %v225_v27 = vadd.f32 %v1002_v7, %v154_v19  ;;  %v226_v30 = vadd.f32 %v1002_v7, %v155_v22  ;;  %v227_v31 = vadd.f32 %v1002_v7, %v156_v23  ;;  %v938_v18 = vld [vmem:[%s1472_s0 + $0x40] sm:$0xff]   ;;  %v939_v23 = vld [vmem:[%s1472_s0 + $0x48] sm:$0xff]  }
   0x8   :  { %v284_v28 = vmax.f32 %v220_v20, 0.0  ;;  %v285_v29 = vmax.f32 %v221_v21, 0.0  ;;  %v286_v32 = vmax.f32 %v222_v24, 0.0  ;;  %v287_v33 = vmax.f32 %v223_v25, 0.0  ;;  %v940_v24 = vld [vmem:[%s1472_s0 + $0x50] sm:$0xff]  }
   0x9   :  { %v288_v34 = vmax.f32 %v224_v26, 0.0  ;;  %v289_v35 = vmax.f32 %v225_v27, 0.0  ;;  %v290_v39 = vmax.f32 %v226_v30, 0.0  ;;  %v291_v40 = vmax.f32 %v227_v31, 0.0 }
   0xa   :  { %v739_v37 = vpack.c.bf16 %v284_v28, %v284_v28  ;;  %v740_v38 = vpack.c.bf16 %v285_v29, %v285_v29  ;;  %v741_v43 = vpack.c.bf16 %v286_v32, %v286_v32  ;;  %v742_v44 = vpack.c.bf16 %v287_v33, %v287_v33  ;;  %v941_v29 = vld [vmem:[%s1472_s0 + $0x58] sm:$0xff]  }
   0xb   :  { %v743_v45 = vpack.c.bf16 %v288_v34, %v288_v34  ;;  %v744_v46 = vpack.c.bf16 %v289_v35, %v289_v35  ;;  %v745_v48 = vpack.c.bf16 %v290_v39, %v290_v39  ;;  %v746_v49 = vpack.c.bf16 %v291_v40, %v291_v40 }
   0xc   :  { %605 = vst.msk [vmem:[%s1475_s3] sm:$0xf] %vm604_vm0, %v739_v37  ;;  %606 = vst.msk [vmem:[%s1475_s3 + $0x4] sm:$0xf] %vm604_vm0, %v740_v38  ;;  %v821_v50 = vunpack.c.l.bf16 %v934_v36  ;;  %v822_v51 = vunpack.c.h.bf16 %v934_v36  ;;  %v825_v52 = vunpack.c.l.bf16 %v935_v41  ;;  %v826_v53 = vunpack.c.h.bf16 %v935_v41 }
   0xd   :  { %607 = vst.msk [vmem:[%s1475_s3 + $0x8] sm:$0xf] %vm604_vm0, %v741_v43  ;;  %608 = vst.msk [vmem:[%s1475_s3 + $0xc] sm:$0xf] %vm604_vm0, %v742_v44  ;;  %v829_v54 = vunpack.c.l.bf16 %v936_v42  ;;  %v830_v55 = vunpack.c.h.bf16 %v936_v42  ;;  %v833_v58 = vunpack.c.l.bf16 %v937_v47  ;;  %v834_v59 = vunpack.c.h.bf16 %v937_v47 }
   0xe   :  { %609 = vst.msk [vmem:[%s1475_s3 + $0x10] sm:$0xf] %vm604_vm0, %v743_v45  ;;  %610 = vst.msk [vmem:[%s1475_s3 + $0x14] sm:$0xf] %vm604_vm0, %v744_v46  ;;  %v157_v56 = vmul.f32 %v821_v50, %v988_v1  ;;  %v158_v57 = vmul.f32 %v822_v51, %v988_v1  ;;  %v159_v60 = vmul.f32 %v825_v52, %v988_v1  ;;  %v837_v32 = vunpack.c.l.bf16 %v938_v18 }
   0xf   :  { %611 = vst.msk [vmem:[%s1475_s3 + $0x18] sm:$0xf] %vm604_vm0, %v745_v48  ;;  %612 = vst.msk [vmem:[%s1475_s3 + $0x1c] sm:$0xf] %vm604_vm0, %v746_v49  ;;  %v160_v61 = vmul.f32 %v826_v53, %v988_v1  ;;  %v161_v62 = vmul.f32 %v829_v54, %v988_v1  ;;  %v162_v63 = vmul.f32 %v830_v55, %v988_v1  ;;  %v838_v33 = vunpack.c.h.bf16 %v938_v18 }
  0x10   :  { %v228_v0 = vadd.f32 %v1002_v7, %v157_v56  ;;  %v229_v2 = vadd.f32 %v1002_v7, %v158_v57  ;;  %v163_v3 = vmul.f32 %v833_v58, %v988_v1  ;;  %v164_v4 = vmul.f32 %v834_v59, %v988_v1 }
  0x11   :  { %v230_v5 = vadd.f32 %v1002_v7, %v159_v60  ;;  %v231_v6 = vadd.f32 %v1002_v7, %v160_v61  ;;  %v232_v8 = vadd.f32 %v1002_v7, %v161_v62  ;;  %v233_v9 = vadd.f32 %v1002_v7, %v162_v63  ;;  %v942_v62 = vld [vmem:[%s1472_s0 + $0x60] sm:$0xff]  }
  0x12   :  { %v292_v10 = vmax.f32 %v228_v0, 0.0  ;;  %v293_v11 = vmax.f32 %v229_v2, 0.0  ;;  %v234_v12 = vadd.f32 %v1002_v7, %v163_v3  ;;  %v235_v13 = vadd.f32 %v1002_v7, %v164_v4  ;;  %v943_v4 = vld [vmem:[%s1472_s0 + $0x68] sm:$0xff]  }
  0x13   :  { %v294_v14 = vmax.f32 %v230_v5, 0.0  ;;  %v295_v15 = vmax.f32 %v231_v6, 0.0  ;;  %v296_v16 = vmax.f32 %v232_v8, 0.0  ;;  %v297_v17 = vmax.f32 %v233_v9, 0.0  ;;  %v944_v5 = vld [vmem:[%s1472_s0 + $0x70] sm:$0xff]  }
  0x14   :  { %v747_v19 = vpack.c.bf16 %v292_v10, %v292_v10  ;;  %v748_v20 = vpack.c.bf16 %v293_v11, %v293_v11  ;;  %v298_v21 = vmax.f32 %v234_v12, 0.0  ;;  %v299_v22 = vmax.f32 %v235_v13, 0.0  ;;  %v945_v11 = vld [vmem:[%s1472_s0 + $0x78] sm:$0xff]  }
  0x15   :  { %v749_v25 = vpack.c.bf16 %v294_v14, %v294_v14  ;;  %v750_v26 = vpack.c.bf16 %v295_v15, %v295_v15  ;;  %v751_v27 = vpack.c.bf16 %v296_v16, %v296_v16  ;;  %v752_v28 = vpack.c.bf16 %v297_v17, %v297_v17 }
  0x16   :  { %613 = vst.msk [vmem:[%s1475_s3 + $0x20] sm:$0xf] %vm604_vm0, %v747_v19  ;;  %614 = vst.msk [vmem:[%s1475_s3 + $0x24] sm:$0xf] %vm604_vm0, %v748_v20  ;;  %v753_v30 = vpack.c.bf16 %v298_v21, %v298_v21  ;;  %v754_v31 = vpack.c.bf16 %v299_v22, %v299_v22  ;;  %v841_v34 = vunpack.c.l.bf16 %v939_v23  ;;  %v842_v35 = vunpack.c.h.bf16 %v939_v23 }
  0x17   :  { %615 = vst.msk [vmem:[%s1475_s3 + $0x28] sm:$0xf] %vm604_vm0, %v749_v25  ;;  %616 = vst.msk [vmem:[%s1475_s3 + $0x2c] sm:$0xf] %vm604_vm0, %v750_v26  ;;  %v845_v36 = vunpack.c.l.bf16 %v940_v24  ;;  %v846_v37 = vunpack.c.h.bf16 %v940_v24  ;;  %v165_v38 = vmul.f32 %v837_v32, %v988_v1  ;;  %v166_v39 = vmul.f32 %v838_v33, %v988_v1 }
  0x18   :  { %617 = vst.msk [vmem:[%s1475_s3 + $0x30] sm:$0xf] %vm604_vm0, %v751_v27  ;;  %618 = vst.msk [vmem:[%s1475_s3 + $0x34] sm:$0xf] %vm604_vm0, %v752_v28  ;;  %v849_v40 = vunpack.c.l.bf16 %v941_v29  ;;  %v850_v41 = vunpack.c.h.bf16 %v941_v29  ;;  %v167_v42 = vmul.f32 %v841_v34, %v988_v1  ;;  %v168_v43 = vmul.f32 %v842_v35, %v988_v1 }
  0x19   :  { %619 = vst.msk [vmem:[%s1475_s3 + $0x38] sm:$0xf] %vm604_vm0, %v753_v30  ;;  %620 = vst.msk [vmem:[%s1475_s3 + $0x3c] sm:$0xf] %vm604_vm0, %v754_v31  ;;  %v169_v44 = vmul.f32 %v845_v36, %v988_v1  ;;  %v170_v45 = vmul.f32 %v846_v37, %v988_v1  ;;  %v236_v46 = vadd.f32 %v1002_v7, %v165_v38  ;;  %v853_v14 = vunpack.c.l.bf16 %v942_v62 }
  0x1a   :  { %v237_v47 = vadd.f32 %v1002_v7, %v166_v39  ;;  %v171_v48 = vmul.f32 %v849_v40, %v988_v1  ;;  %v172_v49 = vmul.f32 %v850_v41, %v988_v1  ;;  %v238_v50 = vadd.f32 %v1002_v7, %v167_v42 }
  0x1b   :  { %v239_v51 = vadd.f32 %v1002_v7, %v168_v43  ;;  %v240_v52 = vadd.f32 %v1002_v7, %v169_v44  ;;  %v241_v53 = vadd.f32 %v1002_v7, %v170_v45  ;;  %v300_v54 = vmax.f32 %v236_v46, 0.0  ;;  %v946_v44 = vld [vmem:[%s1472_s0 + $0x80] sm:$0xff]  }
  0x1c   :  { %v301_v55 = vmax.f32 %v237_v47, 0.0  ;;  %v242_v56 = vadd.f32 %v1002_v7, %v171_v48  ;;  %v243_v57 = vadd.f32 %v1002_v7, %v172_v49  ;;  %v302_v58 = vmax.f32 %v238_v50, 0.0  ;;  %v947_v49 = vld [vmem:[%s1472_s0 + $0x88] sm:$0xff]   ;;  %v948_v50 = vld [vmem:[%s1472_s0 + $0x90] sm:$0xff]  }
  0x1d   :  { %v303_v59 = vmax.f32 %v239_v51, 0.0  ;;  %v304_v60 = vmax.f32 %v240_v52, 0.0  ;;  %v305_v61 = vmax.f32 %v241_v53, 0.0  ;;  %v755_v63 = vpack.c.bf16 %v300_v54, %v300_v54 }
  0x1e   :  { %v756_v0 = vpack.c.bf16 %v301_v55, %v301_v55  ;;  %v306_v2 = vmax.f32 %v242_v56, 0.0  ;;  %v307_v3 = vmax.f32 %v243_v57, 0.0  ;;  %v757_v6 = vpack.c.bf16 %v302_v58, %v302_v58  ;;  %v949_v55 = vld [vmem:[%s1472_s0 + $0x98] sm:$0xff]  }
  0x1f   :  { %v758_v8 = vpack.c.bf16 %v303_v59, %v303_v59  ;;  %v759_v9 = vpack.c.bf16 %v304_v60, %v304_v60  ;;  %v760_v10 = vpack.c.bf16 %v305_v61, %v305_v61  ;;  %621 = vst.msk [vmem:[%s1475_s3 + $0x40] sm:$0xf] %vm604_vm0, %v755_v63  ;;  %v854_v15 = vunpack.c.h.bf16 %v942_v62 }
  0x20   :  { %622 = vst.msk [vmem:[%s1475_s3 + $0x44] sm:$0xf] %vm604_vm0, %v756_v0  ;;  %v761_v12 = vpack.c.bf16 %v306_v2, %v306_v2  ;;  %v762_v13 = vpack.c.bf16 %v307_v3, %v307_v3  ;;  %623 = vst.msk [vmem:[%s1475_s3 + $0x48] sm:$0xf] %vm604_vm0, %v757_v6  ;;  %v857_v16 = vunpack.c.l.bf16 %v943_v4  ;;  %v858_v17 = vunpack.c.h.bf16 %v943_v4 }
  0x21   :  { %624 = vst.msk [vmem:[%s1475_s3 + $0x4c] sm:$0xf] %vm604_vm0, %v758_v8  ;;  %625 = vst.msk [vmem:[%s1475_s3 + $0x50] sm:$0xf] %vm604_vm0, %v759_v9  ;;  %v861_v18 = vunpack.c.l.bf16 %v944_v5  ;;  %v862_v19 = vunpack.c.h.bf16 %v944_v5  ;;  %v173_v20 = vmul.f32 %v853_v14, %v988_v1  ;;  %v174_v21 = vmul.f32 %v854_v15, %v988_v1 }
  0x22   :  { %626 = vst.msk [vmem:[%s1475_s3 + $0x54] sm:$0xf] %vm604_vm0, %v760_v10  ;;  %627 = vst.msk [vmem:[%s1475_s3 + $0x58] sm:$0xf] %vm604_vm0, %v761_v12  ;;  %v865_v22 = vunpack.c.l.bf16 %v945_v11  ;;  %v866_v23 = vunpack.c.h.bf16 %v945_v11  ;;  %v175_v24 = vmul.f32 %v857_v16, %v988_v1  ;;  %v176_v25 = vmul.f32 %v858_v17, %v988_v1 }
  0x23   :  { %628 = vst.msk [vmem:[%s1475_s3 + $0x5c] sm:$0xf] %vm604_vm0, %v762_v13  ;;  %v177_v26 = vmul.f32 %v861_v18, %v988_v1  ;;  %v178_v27 = vmul.f32 %v862_v19, %v988_v1  ;;  %v244_v28 = vadd.f32 %v1002_v7, %v173_v20  ;;  %v245_v29 = vadd.f32 %v1002_v7, %v174_v21 }
  0x24   :  { %v179_v30 = vmul.f32 %v865_v22, %v988_v1  ;;  %v180_v31 = vmul.f32 %v866_v23, %v988_v1  ;;  %v246_v32 = vadd.f32 %v1002_v7, %v175_v24  ;;  %v247_v33 = vadd.f32 %v1002_v7, %v176_v25 }
  0x25   :  { %v248_v34 = vadd.f32 %v1002_v7, %v177_v26  ;;  %v249_v35 = vadd.f32 %v1002_v7, %v178_v27  ;;  %v308_v36 = vmax.f32 %v244_v28, 0.0  ;;  %v309_v37 = vmax.f32 %v245_v29, 0.0  ;;  %v950_v26 = vld [vmem:[%s1472_s0 + $0xa0] sm:$0xff]  }
  0x26   :  { %v250_v38 = vadd.f32 %v1002_v7, %v179_v30  ;;  %v251_v39 = vadd.f32 %v1002_v7, %v180_v31  ;;  %v310_v40 = vmax.f32 %v246_v32, 0.0  ;;  %v311_v41 = vmax.f32 %v247_v33, 0.0  ;;  %v951_v31 = vld [vmem:[%s1472_s0 + $0xa8] sm:$0xff]   ;;  %v952_v32 = vld [vmem:[%s1472_s0 + $0xb0] sm:$0xff]  }
  0x27   :  { %v312_v42 = vmax.f32 %v248_v34, 0.0  ;;  %v313_v43 = vmax.f32 %v249_v35, 0.0  ;;  %v763_v45 = vpack.c.bf16 %v308_v36, %v308_v36  ;;  %v764_v46 = vpack.c.bf16 %v309_v37, %v309_v37  ;;  %v953_v37 = vld [vmem:[%s1472_s0 + $0xb8] sm:$0xff]  }
  0x28   :  { %v314_v47 = vmax.f32 %v250_v38, 0.0  ;;  %v315_v48 = vmax.f32 %v251_v39, 0.0  ;;  %v765_v51 = vpack.c.bf16 %v310_v40, %v310_v40  ;;  %v766_v52 = vpack.c.bf16 %v311_v41, %v311_v41 }
  0x29   :  { %v767_v53 = vpack.c.bf16 %v312_v42, %v312_v42  ;;  %v768_v54 = vpack.c.bf16 %v313_v43, %v313_v43  ;;  %629 = vst.msk [vmem:[%s1475_s3 + $0x60] sm:$0xf] %vm604_vm0, %v763_v45  ;;  %630 = vst.msk [vmem:[%s1475_s3 + $0x64] sm:$0xf] %vm604_vm0, %v764_v46  ;;  %v869_v58 = vunpack.c.l.bf16 %v946_v44  ;;  %v870_v59 = vunpack.c.h.bf16 %v946_v44 }
  0x2a   :  { %v769_v56 = vpack.c.bf16 %v314_v47, %v314_v47  ;;  %v770_v57 = vpack.c.bf16 %v315_v48, %v315_v48  ;;  %631 = vst.msk [vmem:[%s1475_s3 + $0x68] sm:$0xf] %vm604_vm0, %v765_v51  ;;  %632 = vst.msk [vmem:[%s1475_s3 + $0x6c] sm:$0xf] %vm604_vm0, %v766_v52  ;;  %v873_v60 = vunpack.c.l.bf16 %v947_v49  ;;  %v874_v61 = vunpack.c.h.bf16 %v947_v49 }
  0x2b   :  { %633 = vst.msk [vmem:[%s1475_s3 + $0x70] sm:$0xf] %vm604_vm0, %v767_v53  ;;  %634 = vst.msk [vmem:[%s1475_s3 + $0x74] sm:$0xf] %vm604_vm0, %v768_v54  ;;  %v877_v62 = vunpack.c.l.bf16 %v948_v50  ;;  %v878_v63 = vunpack.c.h.bf16 %v948_v50  ;;  %v181_v0 = vmul.f32 %v869_v58, %v988_v1  ;;  %v182_v2 = vmul.f32 %v870_v59, %v988_v1 }
  0x2c   :  { %635 = vst.msk [vmem:[%s1475_s3 + $0x78] sm:$0xf] %vm604_vm0, %v769_v56  ;;  %636 = vst.msk [vmem:[%s1475_s3 + $0x7c] sm:$0xf] %vm604_vm0, %v770_v57  ;;  %v881_v3 = vunpack.c.l.bf16 %v949_v55  ;;  %v882_v4 = vunpack.c.h.bf16 %v949_v55  ;;  %v183_v5 = vmul.f32 %v873_v60, %v988_v1  ;;  %v184_v6 = vmul.f32 %v874_v61, %v988_v1 }
  0x2d   :  { %v185_v8 = vmul.f32 %v877_v62, %v988_v1  ;;  %v186_v9 = vmul.f32 %v878_v63, %v988_v1  ;;  %v252_v10 = vadd.f32 %v1002_v7, %v181_v0  ;;  %v253_v11 = vadd.f32 %v1002_v7, %v182_v2 }
  0x2e   :  { %v187_v12 = vmul.f32 %v881_v3, %v988_v1  ;;  %v188_v13 = vmul.f32 %v882_v4, %v988_v1  ;;  %v254_v14 = vadd.f32 %v1002_v7, %v183_v5  ;;  %v255_v15 = vadd.f32 %v1002_v7, %v184_v6 }
  0x2f   :  { %v256_v16 = vadd.f32 %v1002_v7, %v185_v8  ;;  %v257_v17 = vadd.f32 %v1002_v7, %v186_v9  ;;  %v316_v18 = vmax.f32 %v252_v10, 0.0  ;;  %v317_v19 = vmax.f32 %v253_v11, 0.0  ;;  %v954_v8 = vld [vmem:[%s1472_s0 + $0xc0] sm:$0xff]  }
  0x30   :  { %v258_v20 = vadd.f32 %v1002_v7, %v187_v12  ;;  %v259_v21 = vadd.f32 %v1002_v7, %v188_v13  ;;  %v318_v22 = vmax.f32 %v254_v14, 0.0  ;;  %v319_v23 = vmax.f32 %v255_v15, 0.0  ;;  %v955_v13 = vld [vmem:[%s1472_s0 + $0xc8] sm:$0xff]   ;;  %v956_v14 = vld [vmem:[%s1472_s0 + $0xd0] sm:$0xff]  }
  0x31   :  { %v320_v24 = vmax.f32 %v256_v16, 0.0  ;;  %v321_v25 = vmax.f32 %v257_v17, 0.0  ;;  %v771_v27 = vpack.c.bf16 %v316_v18, %v316_v18  ;;  %v772_v28 = vpack.c.bf16 %v317_v19, %v317_v19  ;;  %v957_v19 = vld [vmem:[%s1472_s0 + $0xd8] sm:$0xff]  }
  0x32   :  { %v322_v29 = vmax.f32 %v258_v20, 0.0  ;;  %v323_v30 = vmax.f32 %v259_v21, 0.0  ;;  %v773_v33 = vpack.c.bf16 %v318_v22, %v318_v22  ;;  %v774_v34 = vpack.c.bf16 %v319_v23, %v319_v23 }
  0x33   :  { %v775_v35 = vpack.c.bf16 %v320_v24, %v320_v24  ;;  %v776_v36 = vpack.c.bf16 %v321_v25, %v321_v25  ;;  %637 = vst.msk [vmem:[%s1475_s3 + $0x80] sm:$0xf] %vm604_vm0, %v771_v27  ;;  %638 = vst.msk [vmem:[%s1475_s3 + $0x84] sm:$0xf] %vm604_vm0, %v772_v28  ;;  %v885_v40 = vunpack.c.l.bf16 %v950_v26  ;;  %v886_v41 = vunpack.c.h.bf16 %v950_v26 }
  0x34   :  { %v777_v38 = vpack.c.bf16 %v322_v29, %v322_v29  ;;  %v778_v39 = vpack.c.bf16 %v323_v30, %v323_v30  ;;  %639 = vst.msk [vmem:[%s1475_s3 + $0x88] sm:$0xf] %vm604_vm0, %v773_v33  ;;  %640 = vst.msk [vmem:[%s1475_s3 + $0x8c] sm:$0xf] %vm604_vm0, %v774_v34  ;;  %v889_v42 = vunpack.c.l.bf16 %v951_v31  ;;  %v890_v43 = vunpack.c.h.bf16 %v951_v31 }
  0x35   :  { %641 = vst.msk [vmem:[%s1475_s3 + $0x90] sm:$0xf] %vm604_vm0, %v775_v35  ;;  %642 = vst.msk [vmem:[%s1475_s3 + $0x94] sm:$0xf] %vm604_vm0, %v776_v36  ;;  %v893_v44 = vunpack.c.l.bf16 %v952_v32  ;;  %v894_v45 = vunpack.c.h.bf16 %v952_v32  ;;  %v189_v46 = vmul.f32 %v885_v40, %v988_v1  ;;  %v190_v47 = vmul.f32 %v886_v41, %v988_v1 }
  0x36   :  { %643 = vst.msk [vmem:[%s1475_s3 + $0x98] sm:$0xf] %vm604_vm0, %v777_v38  ;;  %644 = vst.msk [vmem:[%s1475_s3 + $0x9c] sm:$0xf] %vm604_vm0, %v778_v39  ;;  %v897_v48 = vunpack.c.l.bf16 %v953_v37  ;;  %v898_v49 = vunpack.c.h.bf16 %v953_v37  ;;  %v191_v50 = vmul.f32 %v889_v42, %v988_v1  ;;  %v192_v51 = vmul.f32 %v890_v43, %v988_v1 }
  0x37   :  { %v193_v52 = vmul.f32 %v893_v44, %v988_v1  ;;  %v194_v53 = vmul.f32 %v894_v45, %v988_v1  ;;  %v260_v54 = vadd.f32 %v1002_v7, %v189_v46  ;;  %v261_v55 = vadd.f32 %v1002_v7, %v190_v47 }
  0x38   :  { %v195_v56 = vmul.f32 %v897_v48, %v988_v1  ;;  %v196_v57 = vmul.f32 %v898_v49, %v988_v1  ;;  %v262_v58 = vadd.f32 %v1002_v7, %v191_v50  ;;  %v263_v59 = vadd.f32 %v1002_v7, %v192_v51 }
  0x39   :  { %v264_v60 = vadd.f32 %v1002_v7, %v193_v52  ;;  %v265_v61 = vadd.f32 %v1002_v7, %v194_v53  ;;  %v324_v62 = vmax.f32 %v260_v54, 0.0  ;;  %v325_v63 = vmax.f32 %v261_v55, 0.0  ;;  %v958_v52 = vld [vmem:[%s1472_s0 + $0xe0] sm:$0xff]  }
  0x3a   :  { %v266_v0 = vadd.f32 %v1002_v7, %v195_v56  ;;  %v267_v2 = vadd.f32 %v1002_v7, %v196_v57  ;;  %v326_v3 = vmax.f32 %v262_v58, 0.0  ;;  %v327_v4 = vmax.f32 %v263_v59, 0.0  ;;  %v959_v57 = vld [vmem:[%s1472_s0 + $0xe8] sm:$0xff]   ;;  %v960_v58 = vld [vmem:[%s1472_s0 + $0xf0] sm:$0xff]  }
  0x3b   :  { %v328_v5 = vmax.f32 %v264_v60, 0.0  ;;  %v329_v6 = vmax.f32 %v265_v61, 0.0  ;;  %v779_v9 = vpack.c.bf16 %v324_v62, %v324_v62  ;;  %v780_v10 = vpack.c.bf16 %v325_v63, %v325_v63  ;;  %v961_v63 = vld [vmem:[%s1472_s0 + $0xf8] sm:$0xff]  }
  0x3c   :  { %v330_v11 = vmax.f32 %v266_v0, 0.0  ;;  %v331_v12 = vmax.f32 %v267_v2, 0.0  ;;  %v781_v15 = vpack.c.bf16 %v326_v3, %v326_v3  ;;  %v782_v16 = vpack.c.bf16 %v327_v4, %v327_v4 }
  0x3d   :  { %v783_v17 = vpack.c.bf16 %v328_v5, %v328_v5  ;;  %v784_v18 = vpack.c.bf16 %v329_v6, %v329_v6  ;;  %645 = vst.msk [vmem:[%s1475_s3 + $0xa0] sm:$0xf] %vm604_vm0, %v779_v9  ;;  %646 = vst.msk [vmem:[%s1475_s3 + $0xa4] sm:$0xf] %vm604_vm0, %v780_v10  ;;  %v901_v22 = vunpack.c.l.bf16 %v954_v8  ;;  %v902_v23 = vunpack.c.h.bf16 %v954_v8 }
  0x3e   :  { %v785_v20 = vpack.c.bf16 %v330_v11, %v330_v11  ;;  %v786_v21 = vpack.c.bf16 %v331_v12, %v331_v12  ;;  %647 = vst.msk [vmem:[%s1475_s3 + $0xa8] sm:$0xf] %vm604_vm0, %v781_v15  ;;  %648 = vst.msk [vmem:[%s1475_s3 + $0xac] sm:$0xf] %vm604_vm0, %v782_v16  ;;  %v905_v24 = vunpack.c.l.bf16 %v955_v13  ;;  %v906_v25 = vunpack.c.h.bf16 %v955_v13 }
  0x3f   :  { %649 = vst.msk [vmem:[%s1475_s3 + $0xb0] sm:$0xf] %vm604_vm0, %v783_v17  ;;  %650 = vst.msk [vmem:[%s1475_s3 + $0xb4] sm:$0xf] %vm604_vm0, %v784_v18  ;;  %v909_v26 = vunpack.c.l.bf16 %v956_v14  ;;  %v910_v27 = vunpack.c.h.bf16 %v956_v14  ;;  %v197_v28 = vmul.f32 %v901_v22, %v988_v1  ;;  %v198_v29 = vmul.f32 %v902_v23, %v988_v1 }
  0x40   :  { %651 = vst.msk [vmem:[%s1475_s3 + $0xb8] sm:$0xf] %vm604_vm0, %v785_v20  ;;  %652 = vst.msk [vmem:[%s1475_s3 + $0xbc] sm:$0xf] %vm604_vm0, %v786_v21  ;;  %v913_v30 = vunpack.c.l.bf16 %v957_v19  ;;  %v914_v31 = vunpack.c.h.bf16 %v957_v19  ;;  %v199_v32 = vmul.f32 %v905_v24, %v988_v1  ;;  %v200_v33 = vmul.f32 %v906_v25, %v988_v1 }
  0x41   :  { %v201_v34 = vmul.f32 %v909_v26, %v988_v1  ;;  %v202_v35 = vmul.f32 %v910_v27, %v988_v1  ;;  %v268_v36 = vadd.f32 %v1002_v7, %v197_v28  ;;  %v269_v37 = vadd.f32 %v1002_v7, %v198_v29 }
  0x42   :  { %v203_v38 = vmul.f32 %v913_v30, %v988_v1  ;;  %v204_v39 = vmul.f32 %v914_v31, %v988_v1  ;;  %v270_v40 = vadd.f32 %v1002_v7, %v199_v32  ;;  %v271_v41 = vadd.f32 %v1002_v7, %v200_v33 }
  0x43   :  { %v272_v42 = vadd.f32 %v1002_v7, %v201_v34  ;;  %v273_v43 = vadd.f32 %v1002_v7, %v202_v35  ;;  %v332_v44 = vmax.f32 %v268_v36, 0.0  ;;  %v333_v45 = vmax.f32 %v269_v37, 0.0 }
  0x44   :  { %v274_v46 = vadd.f32 %v1002_v7, %v203_v38  ;;  %v275_v47 = vadd.f32 %v1002_v7, %v204_v39  ;;  %v334_v48 = vmax.f32 %v270_v40, 0.0  ;;  %v335_v49 = vmax.f32 %v271_v41, 0.0 }
  0x45   :  { %v336_v50 = vmax.f32 %v272_v42, 0.0  ;;  %v337_v51 = vmax.f32 %v273_v43, 0.0  ;;  %v787_v53 = vpack.c.bf16 %v332_v44, %v332_v44  ;;  %v788_v54 = vpack.c.bf16 %v333_v45, %v333_v45 }
  0x46   :  { %v338_v55 = vmax.f32 %v274_v46, 0.0  ;;  %v339_v56 = vmax.f32 %v275_v47, 0.0  ;;  %v789_v59 = vpack.c.bf16 %v334_v48, %v334_v48  ;;  %v790_v60 = vpack.c.bf16 %v335_v49, %v335_v49 }
  0x47   :  { %v791_v61 = vpack.c.bf16 %v336_v50, %v336_v50  ;;  %v792_v62 = vpack.c.bf16 %v337_v51, %v337_v51  ;;  %653 = vst.msk [vmem:[%s1475_s3 + $0xc0] sm:$0xf] %vm604_vm0, %v787_v53  ;;  %654 = vst.msk [vmem:[%s1475_s3 + $0xc4] sm:$0xf] %vm604_vm0, %v788_v54  ;;  %v917_v3 = vunpack.c.l.bf16 %v958_v52  ;;  %v918_v4 = vunpack.c.h.bf16 %v958_v52 }
  0x48   :  { %v793_v0 = vpack.c.bf16 %v338_v55, %v338_v55  ;;  %v794_v2 = vpack.c.bf16 %v339_v56, %v339_v56  ;;  %655 = vst.msk [vmem:[%s1475_s3 + $0xc8] sm:$0xf] %vm604_vm0, %v789_v59  ;;  %656 = vst.msk [vmem:[%s1475_s3 + $0xcc] sm:$0xf] %vm604_vm0, %v790_v60  ;;  %v921_v5 = vunpack.c.l.bf16 %v959_v57  ;;  %v922_v6 = vunpack.c.h.bf16 %v959_v57 }
  0x49   :  { %657 = vst.msk [vmem:[%s1475_s3 + $0xd0] sm:$0xf] %vm604_vm0, %v791_v61  ;;  %658 = vst.msk [vmem:[%s1475_s3 + $0xd4] sm:$0xf] %vm604_vm0, %v792_v62  ;;  %v925_v8 = vunpack.c.l.bf16 %v960_v58  ;;  %v926_v9 = vunpack.c.h.bf16 %v960_v58  ;;  %v205_v10 = vmul.f32 %v917_v3, %v988_v1  ;;  %v206_v11 = vmul.f32 %v918_v4, %v988_v1 }
  0x4a   :  { %659 = vst.msk [vmem:[%s1475_s3 + $0xd8] sm:$0xf] %vm604_vm0, %v793_v0  ;;  %660 = vst.msk [vmem:[%s1475_s3 + $0xdc] sm:$0xf] %vm604_vm0, %v794_v2  ;;  %v929_v12 = vunpack.c.l.bf16 %v961_v63  ;;  %v930_v13 = vunpack.c.h.bf16 %v961_v63  ;;  %v207_v14 = vmul.f32 %v921_v5, %v988_v1  ;;  %v208_v15 = vmul.f32 %v922_v6, %v988_v1 }
  0x4b   :  { %v209_v16 = vmul.f32 %v925_v8, %v988_v1  ;;  %v210_v17 = vmul.f32 %v926_v9, %v988_v1  ;;  %v276_v18 = vadd.f32 %v1002_v7, %v205_v10  ;;  %v277_v19 = vadd.f32 %v1002_v7, %v206_v11 }
  0x4c   :  { %v211_v20 = vmul.f32 %v929_v12, %v988_v1  ;;  %v212_v21 = vmul.f32 %v930_v13, %v988_v1  ;;  %v278_v22 = vadd.f32 %v1002_v7, %v207_v14  ;;  %v279_v23 = vadd.f32 %v1002_v7, %v208_v15 }
  0x4d   :  { %v280_v24 = vadd.f32 %v1002_v7, %v209_v16  ;;  %v281_v25 = vadd.f32 %v1002_v7, %v210_v17  ;;  %v340_v26 = vmax.f32 %v276_v18, 0.0  ;;  %v341_v27 = vmax.f32 %v277_v19, 0.0 }
  0x4e   :  { %v282_v28 = vadd.f32 %v1002_v7, %v211_v20  ;;  %v283_v29 = vadd.f32 %v1002_v7, %v212_v21  ;;  %v342_v30 = vmax.f32 %v278_v22, 0.0  ;;  %v343_v31 = vmax.f32 %v279_v23, 0.0 }
  0x4f   :  { %v344_v32 = vmax.f32 %v280_v24, 0.0  ;;  %v345_v33 = vmax.f32 %v281_v25, 0.0  ;;  %v795_v34 = vpack.c.bf16 %v340_v26, %v340_v26  ;;  %v796_v1 = vpack.c.bf16 %v341_v27, %v341_v27 }
  0x50   :  { %v346_v35 = vmax.f32 %v282_v28, 0.0  ;;  %v347_v36 = vmax.f32 %v283_v29, 0.0  ;;  %v797_v37 = vpack.c.bf16 %v342_v30, %v342_v30  ;;  %v798_v38 = vpack.c.bf16 %v343_v31, %v343_v31 }
  0x51   :  { %v799_v39 = vpack.c.bf16 %v344_v32, %v344_v32  ;;  %v800_v40 = vpack.c.bf16 %v345_v33, %v345_v33  ;;  %661 = vst.msk [vmem:[%s1475_s3 + $0xe0] sm:$0xf] %vm604_vm0, %v795_v34  ;;  %662 = vst.msk [vmem:[%s1475_s3 + $0xe4] sm:$0xf] %vm604_vm0, %v796_v1 }
  0x52   :  { %v801_v7 = vpack.c.bf16 %v346_v35, %v346_v35  ;;  %v802_v41 = vpack.c.bf16 %v347_v36, %v347_v36  ;;  %663 = vst.msk [vmem:[%s1475_s3 + $0xe8] sm:$0xf] %vm604_vm0, %v797_v37  ;;  %664 = vst.msk [vmem:[%s1475_s3 + $0xec] sm:$0xf] %vm604_vm0, %v798_v38 }
  0x53   :  { %665 = vst.msk [vmem:[%s1475_s3 + $0xf0] sm:$0xf] %vm604_vm0, %v799_v39  ;;  %666 = vst.msk [vmem:[%s1475_s3 + $0xf4] sm:$0xf] %vm604_vm0, %v800_v40 }
  0x54   :  { %667 = vst.msk [vmem:[%s1475_s3 + $0xf8] sm:$0xf] %vm604_vm0, %v801_v7  ;;  %668 = vst.msk [vmem:[%s1475_s3 + $0xfc] sm:$0xf] %vm604_vm0, %v802_v41 }

// kernel: up_forward.11
= control target key start
LH: loop header
LB: loop body
LE: loop exit
PB: predicated region body
PF: predicated region fallthrough
CT: control target
= control target key end

     0   :  { %s775_s15 = smov 0   ;;  %s777_s16 = smov 0   ;;  %s865_s0 = inlined_call_operand.vmem [shape: bf16[2,18,16,24], index: 0, kind: input, shape index: {}]   ;;  %s866_s1 = inlined_call_operand.vmem [shape: bf16[3,24,128], index: 1, kind: input, shape index: {}]   ;;  %s867_s2 = inlined_call_operand.vmem [shape: f32[1,128], index: 2, kind: input, shape index: {}]   ;;  %s868_s3 = inlined_call_operand.vmem [shape: f32[1,128], index: 3, kind: input, shape index: {}]   ;;  %s869_s4 = inlined_call_operand.vmem [shape: bf16[2,16,16,128], index: 4, kind: output, shape index: {}]  }
   0x1   :  { %s779_s17 = smov 0   ;;  %s781_s18 = smov 0  }
   0x2   :  { %s783_s19 = smov 0   ;;  %s785_s20 = smov 0  }
   0x3   :  { %s787_s21 = smov 0  }
   0x4 LB: > { %s29_s3 = sadd.s32 1, %s733_s18  ;;  %s36_s22 = sadd.s32 1, %s737_s19  ;;  %s745_s21 = sphi %s787_s21, %s14_s21   ;;  %s741_s20 = sphi %s785_s20, %s877_s20   ;;  %s737_s19 = sphi %s783_s19, %s876_s19   ;;  %s733_s18 = sphi %s781_s18, %s875_s18   ;;  %s729_s17 = sphi %s779_s17, %s874_s17   ;;  %s725_s16 = sphi %s777_s16, %s873_s16   ;;  %s721_s15 = sphi %s775_s15, %s872_s15  }
   0x5   : > { %p30_p0 = scmp.ge.s32.totalorder %s29_s3, 3  ;;  %p591_p1 = scmp.ge.s32.totalorder %s745_s21, 1 }
   0x6   : > { %p233_p2 = scmp.lt.s32.totalorder %s745_s21, 97  ;;  %s40_s23 = sadd.s32 1, %s741_s20 }
   0x7   : > { %s879_s3 = smov (%p30_p0, %s29_s3), 0  ;;  %s881_s22 = smov (!%p30_p0, %s36_s22), %s737_s19 }
   0x8   : > { %p234_p3 = pnand %p591_p1, %p233_p2  ;;  %p38_p4 = scmp.ge.s32.totalorder %s881_s22, 16 }
   0x9   : > { %s285_s24 = sadd.s32 (!%p234_p3), %s721_s15, %s725_s16  ;;  %p286_p6 = scmp.lt.s32.totalorder (!%p234_p3), %s729_s17, 1 }
   0xa   : > { %s883_s22 = smov (%p38_p4, %s881_s22), 0  ;;  %s885_s23 = smov (!%p38_p4, %s40_s23), %s741_s20 }
   0xb   : > { %p42_p5 = scmp.ge.s32.totalorder %s885_s23, 2  ;;  %237 = sbr.rel (%p234_p3) target bundleno = 270 (0x10e), region = 36 }
   0xc   : > { %p288_p7 = scmp.lt.s32.totalorder (!%p234_p3), %s285_s24, 17  ;;  %p296_p8 = scmp.lt.s32.totalorder (!%p234_p3), %s721_s15, 2 }
   0xd   : > { %s887_s23 = smov (%p42_p5, %s885_s23), 0  ;;  %p312_p9 = scmp.lt.s32.totalorder (!%p234_p3), %s725_s16, 15 }
   0xe   : > { %870 = sst [smem:[#allocation3_spill]] %s887_s23  ;;  %p598_p10 = scmp.ne.s32.totalorder (!%p234_p3), %s721_s15, 0 }
  0x12   : > { %s889_s17 = smov (!%p286_p6, %s729_s17), 1  ;;  %s891_s24 = smov (!%p288_p7, %s285_s24), 17 }
  0x13   : > { %s627_s25 = smul.u32 36, %s889_s17  ;;  %s592_s26 = sshll.u32 %s891_s24, 1  ;;  %v747_v0 = vmov (!%p598_p10), 0.0  }
  0x14   : > { %s596_s6 = sshll.u32 %s889_s17, 5  ;;  %s893_s16 = smov (!%p312_p9, %s725_s16), 15  ;;  %327 = vst [vmem:[#allocation2] sm:$0xff] (!%p598_p10), %v747_v0  ;;  %328 = vst [vmem:[#allocation2 + $0x8] sm:$0xff] (!%p598_p10), %v747_v0 }
  0x15   : > { %s292_s27 = sadd.s32 %s627_s25, %s592_s26  ;;  %s595_s9 = sshll.u32 %s893_s16, 1 }
  0x16   : > { %s593_s28 = sshll.u32 %s292_s27, 2  ;;  %s319_s13 = sadd.s32 %s596_s6, %s595_s9 }
  0x17   : > { %s294_s5 = scalar_lea.vmem %s865_s0, %s593_s28  ;;  %s597_s14 = sshll.u32 %s319_s13, 2 }
  0x18   : > { %s297_s7 = scalar_select %p296_p8, %s721_s15, 2 }
  0x19   : > { %s836_s25 = scalar_lea.vmem %s869_s4, %s597_s14  ;;  %326 = sbr.rel (%p598_p10) target bundleno = 32 (0x20), region = 40 }
  0x1a   : > { %s628_s8 = smul.u32 12, %s297_s7 }
  0x1c   : > { %s303_s12 = scalar_lea.vmem %s866_s1, %s628_s8 }
  0x20 PF: > { %v688_v1 = vld [vmem:[%s303_s12] sm:$0xff]   ;;  %v748_v2 = vmov 0.0   ;;  %v689_v3 = vld [vmem:[%s303_s12 + $0x8] ss:$0 sps:$4 sm:$0xff]   ;;  %vm354_vm0 = vcmask 1043456   ;;  %vm749_vm1 = vmmov 0  }
  0x21   : > { %619 = vmatprep.subr.bf16.mxu0 %v748_v2  ;;  %623 = vmatprep.mubr.msk.bf16.mxu0 %vm749_vm1, %v748_v2  ;;  %v356_v4 = vsel %vm354_vm0, %v689_v3, 0  ;;  %v690_v5 = vld [vmem:[%s294_s5] sm:$0xff]   ;;  %vm350_vm2 = vcmask 195584   ;;  %v330_v8 = vld [vmem:[#allocation2 + $0x8] sm:$0xff]  ;;  %p603_p11 = scmp.ne.s32.totalorder %s721_s15, 2 }
  0x22   : > { %620 = vmatpush3.bf16.msra.mxu0 %v688_v1  ;;  %v329_v6 = vld [vmem:[#allocation2] sm:$0xff] }
  0x23   : > { %621 = vmatprep.subr.bf16.mxu0 %v748_v2  ;;  %v604_v16 = vld [vmem:[%s867_s2] ss:$0 sm:$0xff] (!%p603_p11) }
  0x26   : > { %622 = vmatpush3.bf16.msra.mxu0 %v356_v4 }
  0x29   : > { %624 = vmatmul.mubr.msk.bf16.vlgmr.msra.gmra.mrb[0].mxu0 %vm350_vm2, %v690_v5 }
  0xfb   : > { %406 = sbr.rel (%p603_p11) target bundleno = 270 (0x10e), region = 44 }
  0xfc   : > { %v392_v7 = vpop.f32.mrb[0].mxu0 }
  0xfd   : > { %v399_v9 = vadd.f32 %v392_v7, %v329_v6  ;;  %v625_v10 = vpop.f32.mrb[1].mxu0 }
  0xfe   : > { %v395_v11 = vpop.f32.mrb[2].mxu0 }
  0xff   : > { %401 = vst [vmem:[#allocation2] sm:$0xff] %v399_v9  ;;  %v400_v12 = vadd.f32 %v395_v11, %v330_v8  ;;  %v626_v13 = vpop.f32.mrb[3].mxu0 }
 0x101   : > { %402 = vst [vmem:[#allocation2 + $0x8] sm:$0xff] %v400_v12 }
 0x106   : > { %v407_v14 = vld [vmem:[#allocation2] sm:$0xff] }
 0x107   : > { %v416_v17 = vadd.f32 %v604_v16, %v407_v14 }
 0x108   : > { %v408_v15 = vld [vmem:[#allocation2 + $0x8] sm:$0xff] }
 0x109   : > { %v417_v18 = vadd.f32 %v604_v16, %v408_v15 }
 0x10b   : > { %v614_v19 = vpack.c.bf16 %v417_v18, %v416_v17 }
 0x10d   : > { %615 = vst [vmem:[%s836_s25] sm:$0xff] %v614_v19  }
 0x10e PF: > { %s14_s21 = sadd.s32 1, %s745_s21   ;;  %s871_s23 = sld [smem:[#allocation3_spill]] }
 0x10f   : > { %p11_p12 = scmp.ge.s32.totalorder %s14_s21, 98   ;;  %s872_s15 = smov %s733_s18 }
 0x110   : > { %s873_s16 = smov %s737_s19  ;;  %s874_s17 = smov %s741_s20 }
 0x111   : > { %s875_s18 = smov %s879_s3  ;;  %s876_s19 = smov %s883_s22 }
 0x112   :  { %13 = sbr.rel (!%p11_p12) target bundleno = 4 (0x4), region = 83 }
 0x114   : > { %s877_s20 = smov %s871_s23 }

// kernel: up_forward.13
= control target key start
LH: loop header
LB: loop body
LE: loop exit
PB: predicated region body
PF: predicated region fallthrough
CT: control target
= control target key end

     0   :  { %vm348_vm0 = vcmask 64512   ;;  %s1088_s0 = inlined_call_operand.vmem [shape: bf16[512,8], index: 0, kind: input, shape index: {}]   ;;  %s1089_s1 = inlined_call_operand.vmem [shape: f32[1,8], index: 1, kind: input, shape index: {}]   ;;  %s1090_s2 = inlined_call_operand.vmem [shape: f32[1,8], index: 2, kind: input, shape index: {}]   ;;  %s1091_s3 = inlined_call_operand.vmem [shape: f32[512,8], index: 3, kind: output, shape index: {}]  }
   0x1   :  { %v420_v0 = vld [vmem:[%s1088_s0] sm:$0xff]   ;;  %v547_v4 = vld [vmem:[%s1088_s0 + $0x8] sm:$0xff]   ;;  %v548_v5 = vld [vmem:[%s1088_s0 + $0x10] sm:$0xff]  }
   0x2   :  { %v604_v1 = vld [vmem:[%s1089_s1] ss:$0 sm:$0xff]  ;;  %v421_v2 = vunpack.c.l.bf16 %v420_v0  ;;  %v422_v3 = vunpack.c.h.bf16 %v420_v0  ;;  %v549_v6 = vld [vmem:[%s1088_s0 + $0x18] sm:$0xff]   ;;  %v425_v8 = vunpack.c.l.bf16 %v547_v4  ;;  %v426_v9 = vunpack.c.h.bf16 %v547_v4  ;;  %v551_v33 = vld [vmem:[%s1088_s0 + $0x28] sm:$0xff]  }
   0x3   :  { %v618_v7 = vld [vmem:[%s1090_s2] ss:$0 sm:$0xff]  ;;  %v429_v10 = vunpack.c.l.bf16 %v548_v5  ;;  %v430_v11 = vunpack.c.h.bf16 %v548_v5  ;;  %v433_v14 = vunpack.c.l.bf16 %v549_v6  ;;  %v434_v15 = vunpack.c.h.bf16 %v549_v6  ;;  %v552_v34 = vld [vmem:[%s1088_s0 + $0x30] sm:$0xff]   ;;  %v553_v39 = vld [vmem:[%s1088_s0 + $0x38] sm:$0xff]  }
   0x4   :  { %v149_v12 = vmul.f32 %v421_v2, %v604_v1  ;;  %v150_v13 = vmul.f32 %v422_v3, %v604_v1  ;;  %v151_v16 = vmul.f32 %v425_v8, %v604_v1  ;;  %v152_v17 = vmul.f32 %v426_v9, %v604_v1  ;;  %v550_v28 = vld [vmem:[%s1088_s0 + $0x20] sm:$0xff]   ;;  %v555_v6 = vld [vmem:[%s1088_s0 + $0x48] sm:$0xff]   ;;  %v556_v8 = vld [vmem:[%s1088_s0 + $0x50] sm:$0xff]  }
   0x5   :  { %v153_v18 = vmul.f32 %v429_v10, %v604_v1  ;;  %v154_v19 = vmul.f32 %v430_v11, %v604_v1  ;;  %v155_v22 = vmul.f32 %v433_v14, %v604_v1  ;;  %v156_v23 = vmul.f32 %v434_v15, %v604_v1  ;;  %v554_v0 = vld [vmem:[%s1088_s0 + $0x40] sm:$0xff]  }
   0x6   :  { %v220_v20 = vadd.f32 %v618_v7, %v149_v12  ;;  %v221_v21 = vadd.f32 %v618_v7, %v150_v13  ;;  %v222_v24 = vadd.f32 %v618_v7, %v151_v16  ;;  %v223_v25 = vadd.f32 %v618_v7, %v152_v17  ;;  %v557_v13 = vld [vmem:[%s1088_s0 + $0x58] sm:$0xff]  }
   0x7   :  { %v224_v26 = vadd.f32 %v618_v7, %v153_v18  ;;  %v225_v27 = vadd.f32 %v618_v7, %v154_v19  ;;  %v226_v31 = vadd.f32 %v618_v7, %v155_v22  ;;  %v227_v32 = vadd.f32 %v618_v7, %v156_v23 }
   0x8   :  { %v284_v29 = vmax.f32 %v220_v20, 0.0  ;;  %v285_v30 = vmax.f32 %v221_v21, 0.0  ;;  %v286_v35 = vmax.f32 %v222_v24, 0.0  ;;  %v287_v36 = vmax.f32 %v223_v25, 0.0 }
   0x9   :  { %v288_v37 = vmax.f32 %v224_v26, 0.0  ;;  %v289_v38 = vmax.f32 %v225_v27, 0.0  ;;  %v290_v40 = vmax.f32 %v226_v31, 0.0  ;;  %v291_v41 = vmax.f32 %v227_v32, 0.0 }
   0xa   :  { %349 = vst.msk [vmem:[%s1091_s3] sm:$0xff] %vm348_vm0, %v284_v29  ;;  %350 = vst.msk [vmem:[%s1091_s3 + $0x8] sm:$0xff] %vm348_vm0, %v285_v30  ;;  %v437_v42 = vunpack.c.l.bf16 %v550_v28  ;;  %v438_v43 = vunpack.c.h.bf16 %v550_v28  ;;  %v441_v44 = vunpack.c.l.bf16 %v551_v33  ;;  %v442_v45 = vunpack.c.h.bf16 %v551_v33 }
   0xb   :  { %351 = vst.msk [vmem:[%s1091_s3 + $0x10] sm:$0xff] %vm348_vm0, %v286_v35  ;;  %352 = vst.msk [vmem:[%s1091_s3 + $0x18] sm:$0xff] %vm348_vm0, %v287_v36  ;;  %v445_v46 = vunpack.c.l.bf16 %v552_v34  ;;  %v446_v47 = vunpack.c.h.bf16 %v552_v34  ;;  %v449_v50 = vunpack.c.l.bf16 %v553_v39  ;;  %v450_v51 = vunpack.c.h.bf16 %v553_v39 }
   0xc   :  { %353 = vst.msk [vmem:[%s1091_s3 + $0x20] sm:$0xff] %vm348_vm0, %v288_v37  ;;  %354 = vst.msk [vmem:[%s1091_s3 + $0x28] sm:$0xff] %vm348_vm0, %v289_v38  ;;  %v157_v48 = vmul.f32 %v437_v42, %v604_v1  ;;  %v158_v49 = vmul.f32 %v438_v43, %v604_v1  ;;  %v159_v52 = vmul.f32 %v441_v44, %v604_v1  ;;  %v453_v16 = vunpack.c.l.bf16 %v554_v0  ;;  %v558_v38 = vld [vmem:[%s1088_s0 + $0x60] sm:$0xff]   ;;  %v559_v43 = vld [vmem:[%s1088_s0 + $0x68] sm:$0xff]  }
   0xd   :  { %355 = vst.msk [vmem:[%s1091_s3 + $0x30] sm:$0xff] %vm348_vm0, %v290_v40  ;;  %356 = vst.msk [vmem:[%s1091_s3 + $0x38] sm:$0xff] %vm348_vm0, %v291_v41  ;;  %v160_v53 = vmul.f32 %v442_v45, %v604_v1  ;;  %v161_v54 = vmul.f32 %v445_v46, %v604_v1  ;;  %v162_v55 = vmul.f32 %v446_v47, %v604_v1  ;;  %v454_v17 = vunpack.c.h.bf16 %v554_v0  ;;  %v560_v44 = vld [vmem:[%s1088_s0 + $0x70] sm:$0xff]  }
   0xe   :  { %v228_v56 = vadd.f32 %v618_v7, %v157_v48  ;;  %v229_v57 = vadd.f32 %v618_v7, %v158_v49  ;;  %v163_v58 = vmul.f32 %v449_v50, %v604_v1  ;;  %v164_v59 = vmul.f32 %v450_v51, %v604_v1  ;;  %v561_v49 = vld [vmem:[%s1088_s0 + $0x78] sm:$0xff]  }
   0xf   :  { %v230_v60 = vadd.f32 %v618_v7, %v159_v52  ;;  %v231_v61 = vadd.f32 %v618_v7, %v160_v53  ;;  %v232_v62 = vadd.f32 %v618_v7, %v161_v54  ;;  %v233_v63 = vadd.f32 %v618_v7, %v162_v55 }
  0x10   :  { %v292_v2 = vmax.f32 %v228_v56, 0.0  ;;  %v293_v3 = vmax.f32 %v229_v57, 0.0  ;;  %v234_v4 = vadd.f32 %v618_v7, %v163_v58  ;;  %v235_v5 = vadd.f32 %v618_v7, %v164_v59 }
  0x11   :  { %v294_v9 = vmax.f32 %v230_v60, 0.0  ;;  %v295_v10 = vmax.f32 %v231_v61, 0.0  ;;  %v296_v11 = vmax.f32 %v232_v62, 0.0  ;;  %v297_v12 = vmax.f32 %v233_v63, 0.0 }
  0x12   :  { %357 = vst.msk [vmem:[%s1091_s3 + $0x40] sm:$0xff] %vm348_vm0, %v292_v2  ;;  %358 = vst.msk [vmem:[%s1091_s3 + $0x48] sm:$0xff] %vm348_vm0, %v293_v3  ;;  %v298_v14 = vmax.f32 %v234_v4, 0.0  ;;  %v299_v15 = vmax.f32 %v235_v5, 0.0  ;;  %v457_v18 = vunpack.c.l.bf16 %v555_v6  ;;  %v458_v19 = vunpack.c.h.bf16 %v555_v6 }
  0x13   :  { %359 = vst.msk [vmem:[%s1091_s3 + $0x50] sm:$0xff] %vm348_vm0, %v294_v9  ;;  %360 = vst.msk [vmem:[%s1091_s3 + $0x58] sm:$0xff] %vm348_vm0, %v295_v10  ;;  %v461_v20 = vunpack.c.l.bf16 %v556_v8  ;;  %v462_v21 = vunpack.c.h.bf16 %v556_v8  ;;  %v165_v22 = vmul.f32 %v453_v16, %v604_v1  ;;  %v166_v23 = vmul.f32 %v454_v17, %v604_v1  ;;  %v563_v17 = vld [vmem:[%s1088_s0 + $0x88] sm:$0xff]  }
  0x14   :  { %361 = vst.msk [vmem:[%s1091_s3 + $0x60] sm:$0xff] %vm348_vm0, %v296_v11  ;;  %362 = vst.msk [vmem:[%s1091_s3 + $0x68] sm:$0xff] %vm348_vm0, %v297_v12  ;;  %v465_v24 = vunpack.c.l.bf16 %v557_v13  ;;  %v466_v25 = vunpack.c.h.bf16 %v557_v13  ;;  %v167_v26 = vmul.f32 %v457_v18, %v604_v1  ;;  %v168_v27 = vmul.f32 %v458_v19, %v604_v1  ;;  %v562_v12 = vld [vmem:[%s1088_s0 + $0x80] sm:$0xff]   ;;  %v564_v18 = vld [vmem:[%s1088_s0 + $0x90] sm:$0xff]  }
  0x15   :  { %363 = vst.msk [vmem:[%s1091_s3 + $0x70] sm:$0xff] %vm348_vm0, %v298_v14  ;;  %364 = vst.msk [vmem:[%s1091_s3 + $0x78] sm:$0xff] %vm348_vm0, %v299_v15  ;;  %v169_v28 = vmul.f32 %v461_v20, %v604_v1  ;;  %v170_v29 = vmul.f32 %v462_v21, %v604_v1  ;;  %v236_v30 = vadd.f32 %v618_v7, %v165_v22  ;;  %v469_v52 = vunpack.c.l.bf16 %v558_v38 }
  0x16   :  { %v237_v31 = vadd.f32 %v618_v7, %v166_v23  ;;  %v171_v32 = vmul.f32 %v465_v24, %v604_v1  ;;  %v172_v33 = vmul.f32 %v466_v25, %v604_v1  ;;  %v238_v34 = vadd.f32 %v618_v7, %v167_v26  ;;  %v565_v23 = vld [vmem:[%s1088_s0 + $0x98] sm:$0xff]  }
  0x17   :  { %v239_v35 = vadd.f32 %v618_v7, %v168_v27  ;;  %v240_v36 = vadd.f32 %v618_v7, %v169_v28  ;;  %v241_v37 = vadd.f32 %v618_v7, %v170_v29  ;;  %v300_v39 = vmax.f32 %v236_v30, 0.0 }
  0x18   :  { %v301_v40 = vmax.f32 %v237_v31, 0.0  ;;  %v242_v41 = vadd.f32 %v618_v7, %v171_v32  ;;  %v243_v42 = vadd.f32 %v618_v7, %v172_v33  ;;  %v302_v45 = vmax.f32 %v238_v34, 0.0 }
  0x19   :  { %v303_v46 = vmax.f32 %v239_v35, 0.0  ;;  %v304_v47 = vmax.f32 %v240_v36, 0.0  ;;  %v305_v48 = vmax.f32 %v241_v37, 0.0  ;;  %365 = vst.msk [vmem:[%s1091_s3 + $0x80] sm:$0xff] %vm348_vm0, %v300_v39  ;;  %v470_v53 = vunpack.c.h.bf16 %v558_v38 }
  0x1a   :  { %366 = vst.msk [vmem:[%s1091_s3 + $0x88] sm:$0xff] %vm348_vm0, %v301_v40  ;;  %v306_v50 = vmax.f32 %v242_v41, 0.0  ;;  %v307_v51 = vmax.f32 %v243_v42, 0.0  ;;  %367 = vst.msk [vmem:[%s1091_s3 + $0x90] sm:$0xff] %vm348_vm0, %v302_v45  ;;  %v473_v54 = vunpack.c.l.bf16 %v559_v43  ;;  %v474_v55 = vunpack.c.h.bf16 %v559_v43 }
  0x1b   :  { %368 = vst.msk [vmem:[%s1091_s3 + $0x98] sm:$0xff] %vm348_vm0, %v303_v46  ;;  %369 = vst.msk [vmem:[%s1091_s3 + $0xa0] sm:$0xff] %vm348_vm0, %v304_v47  ;;  %v477_v56 = vunpack.c.l.bf16 %v560_v44  ;;  %v478_v57 = vunpack.c.h.bf16 %v560_v44  ;;  %v173_v58 = vmul.f32 %v469_v52, %v604_v1  ;;  %v174_v59 = vmul.f32 %v470_v53, %v604_v1  ;;  %v567_v53 = vld [vmem:[%s1088_s0 + $0xa8] sm:$0xff]  }
  0x1c   :  { %370 = vst.msk [vmem:[%s1091_s3 + $0xa8] sm:$0xff] %vm348_vm0, %v305_v48  ;;  %371 = vst.msk [vmem:[%s1091_s3 + $0xb0] sm:$0xff] %vm348_vm0, %v306_v50  ;;  %v481_v60 = vunpack.c.l.bf16 %v561_v49  ;;  %v482_v61 = vunpack.c.h.bf16 %v561_v49  ;;  %v175_v62 = vmul.f32 %v473_v54, %v604_v1  ;;  %v176_v63 = vmul.f32 %v474_v55, %v604_v1  ;;  %v566_v48 = vld [vmem:[%s1088_s0 + $0xa0] sm:$0xff]   ;;  %v568_v54 = vld [vmem:[%s1088_s0 + $0xb0] sm:$0xff]  }
  0x1d   :  { %372 = vst.msk [vmem:[%s1091_s3 + $0xb8] sm:$0xff] %vm348_vm0, %v307_v51  ;;  %v177_v0 = vmul.f32 %v477_v56, %v604_v1  ;;  %v178_v2 = vmul.f32 %v478_v57, %v604_v1  ;;  %v244_v3 = vadd.f32 %v618_v7, %v173_v58  ;;  %v245_v4 = vadd.f32 %v618_v7, %v174_v59  ;;  %v569_v59 = vld [vmem:[%s1088_s0 + $0xb8] sm:$0xff]  }
  0x1e   :  { %v179_v5 = vmul.f32 %v481_v60, %v604_v1  ;;  %v180_v6 = vmul.f32 %v482_v61, %v604_v1  ;;  %v246_v8 = vadd.f32 %v618_v7, %v175_v62  ;;  %v247_v9 = vadd.f32 %v618_v7, %v176_v63 }
  0x1f   :  { %v248_v10 = vadd.f32 %v618_v7, %v177_v0  ;;  %v249_v11 = vadd.f32 %v618_v7, %v178_v2  ;;  %v308_v13 = vmax.f32 %v244_v3, 0.0  ;;  %v309_v14 = vmax.f32 %v245_v4, 0.0 }
  0x20   :  { %v250_v15 = vadd.f32 %v618_v7, %v179_v5  ;;  %v251_v16 = vadd.f32 %v618_v7, %v180_v6  ;;  %v310_v19 = vmax.f32 %v246_v8, 0.0  ;;  %v311_v20 = vmax.f32 %v247_v9, 0.0 }
  0x21   :  { %v312_v21 = vmax.f32 %v248_v10, 0.0  ;;  %v313_v22 = vmax.f32 %v249_v11, 0.0  ;;  %373 = vst.msk [vmem:[%s1091_s3 + $0xc0] sm:$0xff] %vm348_vm0, %v308_v13  ;;  %374 = vst.msk [vmem:[%s1091_s3 + $0xc8] sm:$0xff] %vm348_vm0, %v309_v14  ;;  %v485_v26 = vunpack.c.l.bf16 %v562_v12  ;;  %v486_v27 = vunpack.c.h.bf16 %v562_v12 }
  0x22   :  { %v314_v24 = vmax.f32 %v250_v15, 0.0  ;;  %v315_v25 = vmax.f32 %v251_v16, 0.0  ;;  %375 = vst.msk [vmem:[%s1091_s3 + $0xd0] sm:$0xff] %vm348_vm0, %v310_v19  ;;  %376 = vst.msk [vmem:[%s1091_s3 + $0xd8] sm:$0xff] %vm348_vm0, %v311_v20  ;;  %v489_v28 = vunpack.c.l.bf16 %v563_v17  ;;  %v490_v29 = vunpack.c.h.bf16 %v563_v17 }
  0x23   :  { %377 = vst.msk [vmem:[%s1091_s3 + $0xe0] sm:$0xff] %vm348_vm0, %v312_v21  ;;  %378 = vst.msk [vmem:[%s1091_s3 + $0xe8] sm:$0xff] %vm348_vm0, %v313_v22  ;;  %v493_v30 = vunpack.c.l.bf16 %v564_v18  ;;  %v494_v31 = vunpack.c.h.bf16 %v564_v18  ;;  %v181_v32 = vmul.f32 %v485_v26, %v604_v1  ;;  %v182_v33 = vmul.f32 %v486_v27, %v604_v1  ;;  %v570_v22 = vld [vmem:[%s1088_s0 + $0xc0] sm:$0xff]   ;;  %v571_v27 = vld [vmem:[%s1088_s0 + $0xc8] sm:$0xff]  }
  0x24   :  { %379 = vst.msk [vmem:[%s1091_s3 + $0xf0] sm:$0xff] %vm348_vm0, %v314_v24  ;;  %380 = vst.msk [vmem:[%s1091_s3 + $0xf8] sm:$0xff] %vm348_vm0, %v315_v25  ;;  %v497_v34 = vunpack.c.l.bf16 %v565_v23  ;;  %v498_v35 = vunpack.c.h.bf16 %v565_v23  ;;  %v183_v36 = vmul.f32 %v489_v28, %v604_v1  ;;  %v184_v37 = vmul.f32 %v490_v29, %v604_v1  ;;  %v572_v28 = vld [vmem:[%s1088_s0 + $0xd0] sm:$0xff]  }
  0x25   :  { %v185_v38 = vmul.f32 %v493_v30, %v604_v1  ;;  %v186_v39 = vmul.f32 %v494_v31, %v604_v1  ;;  %v252_v40 = vadd.f32 %v618_v7, %v181_v32  ;;  %v253_v41 = vadd.f32 %v618_v7, %v182_v33  ;;  %v573_v33 = vld [vmem:[%s1088_s0 + $0xd8] sm:$0xff]  }
  0x26   :  { %v187_v42 = vmul.f32 %v497_v34, %v604_v1  ;;  %v188_v43 = vmul.f32 %v498_v35, %v604_v1  ;;  %v254_v44 = vadd.f32 %v618_v7, %v183_v36  ;;  %v255_v45 = vadd.f32 %v618_v7, %v184_v37 }
  0x27   :  { %v256_v46 = vadd.f32 %v618_v7, %v185_v38  ;;  %v257_v47 = vadd.f32 %v618_v7, %v186_v39  ;;  %v316_v49 = vmax.f32 %v252_v40, 0.0  ;;  %v317_v50 = vmax.f32 %v253_v41, 0.0 }
  0x28   :  { %v258_v51 = vadd.f32 %v618_v7, %v187_v42  ;;  %v259_v52 = vadd.f32 %v618_v7, %v188_v43  ;;  %v318_v55 = vmax.f32 %v254_v44, 0.0  ;;  %v319_v56 = vmax.f32 %v255_v45, 0.0 }
  0x29   :  { %v320_v57 = vmax.f32 %v256_v46, 0.0  ;;  %v321_v58 = vmax.f32 %v257_v47, 0.0  ;;  %381 = vst.msk [vmem:[%s1091_s3 + $0x100] sm:$0xff] %vm348_vm0, %v316_v49  ;;  %382 = vst.msk [vmem:[%s1091_s3 + $0x108] sm:$0xff] %vm348_vm0, %v317_v50  ;;  %v501_v62 = vunpack.c.l.bf16 %v566_v48  ;;  %v502_v63 = vunpack.c.h.bf16 %v566_v48 }
  0x2a   :  { %v322_v60 = vmax.f32 %v258_v51, 0.0  ;;  %v323_v61 = vmax.f32 %v259_v52, 0.0  ;;  %383 = vst.msk [vmem:[%s1091_s3 + $0x110] sm:$0xff] %vm348_vm0, %v318_v55  ;;  %384 = vst.msk [vmem:[%s1091_s3 + $0x118] sm:$0xff] %vm348_vm0, %v319_v56  ;;  %v505_v0 = vunpack.c.l.bf16 %v567_v53  ;;  %v506_v2 = vunpack.c.h.bf16 %v567_v53 }
  0x2b   :  { %385 = vst.msk [vmem:[%s1091_s3 + $0x120] sm:$0xff] %vm348_vm0, %v320_v57  ;;  %386 = vst.msk [vmem:[%s1091_s3 + $0x128] sm:$0xff] %vm348_vm0, %v321_v58  ;;  %v509_v3 = vunpack.c.l.bf16 %v568_v54  ;;  %v510_v4 = vunpack.c.h.bf16 %v568_v54  ;;  %v189_v5 = vmul.f32 %v501_v62, %v604_v1  ;;  %v190_v6 = vmul.f32 %v502_v63, %v604_v1  ;;  %v574_v58 = vld [vmem:[%s1088_s0 + $0xe0] sm:$0xff]   ;;  %v575_v63 = vld [vmem:[%s1088_s0 + $0xe8] sm:$0xff]  }
  0x2c   :  { %387 = vst.msk [vmem:[%s1091_s3 + $0x130] sm:$0xff] %vm348_vm0, %v322_v60  ;;  %388 = vst.msk [vmem:[%s1091_s3 + $0x138] sm:$0xff] %vm348_vm0, %v323_v61  ;;  %v513_v8 = vunpack.c.l.bf16 %v569_v59  ;;  %v514_v9 = vunpack.c.h.bf16 %v569_v59  ;;  %v191_v10 = vmul.f32 %v505_v0, %v604_v1  ;;  %v192_v11 = vmul.f32 %v506_v2, %v604_v1  ;;  %v576_v0 = vld [vmem:[%s1088_s0 + $0xf0] sm:$0xff]  }
  0x2d   :  { %v193_v12 = vmul.f32 %v509_v3, %v604_v1  ;;  %v194_v13 = vmul.f32 %v510_v4, %v604_v1  ;;  %v260_v14 = vadd.f32 %v618_v7, %v189_v5  ;;  %v261_v15 = vadd.f32 %v618_v7, %v190_v6  ;;  %v577_v6 = vld [vmem:[%s1088_s0 + $0xf8] sm:$0xff]  }
  0x2e   :  { %v195_v16 = vmul.f32 %v513_v8, %v604_v1  ;;  %v196_v17 = vmul.f32 %v514_v9, %v604_v1  ;;  %v262_v18 = vadd.f32 %v618_v7, %v191_v10  ;;  %v263_v19 = vadd.f32 %v618_v7, %v192_v11 }
  0x2f   :  { %v264_v20 = vadd.f32 %v618_v7, %v193_v12  ;;  %v265_v21 = vadd.f32 %v618_v7, %v194_v13  ;;  %v324_v23 = vmax.f32 %v260_v14, 0.0  ;;  %v325_v24 = vmax.f32 %v261_v15, 0.0 }
  0x30   :  { %v266_v25 = vadd.f32 %v618_v7, %v195_v16  ;;  %v267_v26 = vadd.f32 %v618_v7, %v196_v17  ;;  %v326_v29 = vmax.f32 %v262_v18, 0.0  ;;  %v327_v30 = vmax.f32 %v263_v19, 0.0 }
  0x31   :  { %v328_v31 = vmax.f32 %v264_v20, 0.0  ;;  %v329_v32 = vmax.f32 %v265_v21, 0.0  ;;  %389 = vst.msk [vmem:[%s1091_s3 + $0x140] sm:$0xff] %vm348_vm0, %v324_v23  ;;  %390 = vst.msk [vmem:[%s1091_s3 + $0x148] sm:$0xff] %vm348_vm0, %v325_v24  ;;  %v517_v36 = vunpack.c.l.bf16 %v570_v22  ;;  %v518_v37 = vunpack.c.h.bf16 %v570_v22 }
  0x32   :  { %v330_v34 = vmax.f32 %v266_v25, 0.0  ;;  %v331_v35 = vmax.f32 %v267_v26, 0.0  ;;  %391 = vst.msk [vmem:[%s1091_s3 + $0x150] sm:$0xff] %vm348_vm0, %v326_v29  ;;  %392 = vst.msk [vmem:[%s1091_s3 + $0x158] sm:$0xff] %vm348_vm0, %v327_v30  ;;  %v521_v38 = vunpack.c.l.bf16 %v571_v27  ;;  %v522_v39 = vunpack.c.h.bf16 %v571_v27 }
  0x33   :  { %393 = vst.msk [vmem:[%s1091_s3 + $0x160] sm:$0xff] %vm348_vm0, %v328_v31  ;;  %394 = vst.msk [vmem:[%s1091_s3 + $0x168] sm:$0xff] %vm348_vm0, %v329_v32  ;;  %v525_v40 = vunpack.c.l.bf16 %v572_v28  ;;  %v526_v41 = vunpack.c.h.bf16 %v572_v28  ;;  %v197_v42 = vmul.f32 %v517_v36, %v604_v1  ;;  %v198_v43 = vmul.f32 %v518_v37, %v604_v1 }
  0x34   :  { %395 = vst.msk [vmem:[%s1091_s3 + $0x170] sm:$0xff] %vm348_vm0, %v330_v34  ;;  %396 = vst.msk [vmem:[%s1091_s3 + $0x178] sm:$0xff] %vm348_vm0, %v331_v35  ;;  %v529_v44 = vunpack.c.l.bf16 %v573_v33  ;;  %v530_v45 = vunpack.c.h.bf16 %v573_v33  ;;  %v199_v46 = vmul.f32 %v521_v38, %v604_v1  ;;  %v200_v47 = vmul.f32 %v522_v39, %v604_v1 }
  0x35   :  { %v201_v48 = vmul.f32 %v525_v40, %v604_v1  ;;  %v202_v49 = vmul.f32 %v526_v41, %v604_v1  ;;  %v268_v50 = vadd.f32 %v618_v7, %v197_v42  ;;  %v269_v51 = vadd.f32 %v618_v7, %v198_v43 }
  0x36   :  { %v203_v52 = vmul.f32 %v529_v44, %v604_v1  ;;  %v204_v53 = vmul.f32 %v530_v45, %v604_v1  ;;  %v270_v54 = vadd.f32 %v618_v7, %v199_v46  ;;  %v271_v55 = vadd.f32 %v618_v7, %v200_v47 }
  0x37   :  { %v272_v56 = vadd.f32 %v618_v7, %v201_v48  ;;  %v273_v57 = vadd.f32 %v618_v7, %v202_v49  ;;  %v332_v59 = vmax.f32 %v268_v50, 0.0  ;;  %v333_v60 = vmax.f32 %v269_v51, 0.0 }
  0x38   :  { %v274_v61 = vadd.f32 %v618_v7, %v203_v52  ;;  %v275_v62 = vadd.f32 %v618_v7, %v204_v53  ;;  %v334_v2 = vmax.f32 %v270_v54, 0.0  ;;  %v335_v3 = vmax.f32 %v271_v55, 0.0 }
  0x39   :  { %v336_v4 = vmax.f32 %v272_v56, 0.0  ;;  %v337_v5 = vmax.f32 %v273_v57, 0.0  ;;  %397 = vst.msk [vmem:[%s1091_s3 + $0x180] sm:$0xff] %vm348_vm0, %v332_v59  ;;  %398 = vst.msk [vmem:[%s1091_s3 + $0x188] sm:$0xff] %vm348_vm0, %v333_v60  ;;  %v533_v10 = vunpack.c.l.bf16 %v574_v58  ;;  %v534_v11 = vunpack.c.h.bf16 %v574_v58 }
  0x3a   :  { %v338_v8 = vmax.f32 %v274_v61, 0.0  ;;  %v339_v9 = vmax.f32 %v275_v62, 0.0  ;;  %399 = vst.msk [vmem:[%s1091_s3 + $0x190] sm:$0xff] %vm348_vm0, %v334_v2  ;;  %400 = vst.msk [vmem:[%s1091_s3 + $0x198] sm:$0xff] %vm348_vm0, %v335_v3  ;;  %v537_v12 = vunpack.c.l.bf16 %v575_v63  ;;  %v538_v13 = vunpack.c.h.bf16 %v575_v63 }
  0x3b   :  { %401 = vst.msk [vmem:[%s1091_s3 + $0x1a0] sm:$0xff] %vm348_vm0, %v336_v4  ;;  %402 = vst.msk [vmem:[%s1091_s3 + $0x1a8] sm:$0xff] %vm348_vm0, %v337_v5  ;;  %v541_v14 = vunpack.c.l.bf16 %v576_v0  ;;  %v542_v15 = vunpack.c.h.bf16 %v576_v0  ;;  %v205_v16 = vmul.f32 %v533_v10, %v604_v1  ;;  %v206_v17 = vmul.f32 %v534_v11, %v604_v1 }
  0x3c   :  { %403 = vst.msk [vmem:[%s1091_s3 + $0x1b0] sm:$0xff] %vm348_vm0, %v338_v8  ;;  %404 = vst.msk [vmem:[%s1091_s3 + $0x1b8] sm:$0xff] %vm348_vm0, %v339_v9  ;;  %v545_v18 = vunpack.c.l.bf16 %v577_v6  ;;  %v546_v19 = vunpack.c.h.bf16 %v577_v6  ;;  %v207_v20 = vmul.f32 %v537_v12, %v604_v1  ;;  %v208_v21 = vmul.f32 %v538_v13, %v604_v1 }
  0x3d   :  { %v209_v22 = vmul.f32 %v541_v14, %v604_v1  ;;  %v210_v23 = vmul.f32 %v542_v15, %v604_v1  ;;  %v276_v24 = vadd.f32 %v618_v7, %v205_v16  ;;  %v277_v25 = vadd.f32 %v618_v7, %v206_v17 }
  0x3e   :  { %v211_v26 = vmul.f32 %v545_v18, %v604_v1  ;;  %v212_v27 = vmul.f32 %v546_v19, %v604_v1  ;;  %v278_v28 = vadd.f32 %v618_v7, %v207_v20  ;;  %v279_v29 = vadd.f32 %v618_v7, %v208_v21 }
  0x3f   :  { %v280_v30 = vadd.f32 %v618_v7, %v209_v22  ;;  %v281_v31 = vadd.f32 %v618_v7, %v210_v23  ;;  %v340_v32 = vmax.f32 %v276_v24, 0.0  ;;  %v341_v33 = vmax.f32 %v277_v25, 0.0 }
  0x40   :  { %v282_v34 = vadd.f32 %v618_v7, %v211_v26  ;;  %v283_v35 = vadd.f32 %v618_v7, %v212_v27  ;;  %v342_v36 = vmax.f32 %v278_v28, 0.0  ;;  %v343_v37 = vmax.f32 %v279_v29, 0.0 }
  0x41   :  { %v344_v38 = vmax.f32 %v280_v30, 0.0  ;;  %v345_v39 = vmax.f32 %v281_v31, 0.0  ;;  %405 = vst.msk [vmem:[%s1091_s3 + $0x1c0] sm:$0xff] %vm348_vm0, %v340_v32  ;;  %406 = vst.msk [vmem:[%s1091_s3 + $0x1c8] sm:$0xff] %vm348_vm0, %v341_v33 }
  0x42   :  { %v346_v1 = vmax.f32 %v282_v34, 0.0  ;;  %v347_v40 = vmax.f32 %v283_v35, 0.0  ;;  %407 = vst.msk [vmem:[%s1091_s3 + $0x1d0] sm:$0xff] %vm348_vm0, %v342_v36  ;;  %408 = vst.msk [vmem:[%s1091_s3 + $0x1d8] sm:$0xff] %vm348_vm0, %v343_v37 }
  0x43   :  { %409 = vst.msk [vmem:[%s1091_s3 + $0x1e0] sm:$0xff] %vm348_vm0, %v344_v38  ;;  %410 = vst.msk [vmem:[%s1091_s3 + $0x1e8] sm:$0xff] %vm348_vm0, %v345_v39 }
  0x44   :  { %411 = vst.msk [vmem:[%s1091_s3 + $0x1f0] sm:$0xff] %vm348_vm0, %v346_v1  ;;  %412 = vst.msk [vmem:[%s1091_s3 + $0x1f8] sm:$0xff] %vm348_vm0, %v347_v40 }

</bundles_post_ra>
